<compile_context>
chip_gen: v7x
topology: tpu7x:2x2x1
jax: 0.10.0
libtpu: 0.0.40
codegen_flags: <defaults>
</compile_context>

<pallas_src>
import functools

import jax
import jax.numpy as jnp
from jax import lax
from jax.experimental import pallas as pl
from jax.experimental.pallas import tpu as pltpu

N_EMBD = 128      # n_embd in the PyTorch script
BLOCK_SIZE = 128  # block_size (max sequence length for the tril buffer)


def _mha_kernel(x_ref, wqkv_ref, wp_ref, bp_ref, o_ref,
                *, num_heads, head_size):
    """One grid step = `bb` batch elements.

    x_ref    : (bb, T, C)   bf16
    wqkv_ref : (C, 3C)      bf16   [Wq*C^-0.5 | Wk | Wv], heads = 32-col blocks
    wp_ref   : (C, C)       bf16   output projection, stored (in, out)
    bp_ref   : (1, C)       f32
    o_ref    : (bb, T, C)   out dtype (default bf16)
    """
    bb, T, C = x_ref.shape
    N = bb * T
    f32 = jnp.float32
    bf16 = jnp.bfloat16

    # Merging leading dims is a free reshape (minor dim untouched).
    x2 = x_ref[...].reshape(N, C)                                   # (N, C) bf16

    # ---- fused QKV projection: one MXU pass, M=N, K=C, N=3C ----
    # Score scale C**-0.5 is already folded into the Wq columns (wrapper).
    qkv = jnp.dot(x2, wqkv_ref[...], preferred_element_type=f32)    # (N, 3C) f32
    q = qkv[:, 0 * C:1 * C].astype(bf16).reshape(bb, T, C)
    k = qkv[:, 1 * C:2 * C].astype(bf16).reshape(bb, T, C)
    v = qkv[:, 2 * C:3 * C].astype(bf16).reshape(bb, T, C)

    # Causal mask as an additive finite bias; built and pre-broadcast to
    # (bb, T, T) ONCE (head-invariant; avoids per-head broadcast_in_dim).
    row = lax.broadcasted_iota(jnp.int32, (T, T), 0)
    col = lax.broadcasted_iota(jnp.int32, (T, T), 1)
    mask_bias = jnp.broadcast_to(
        jnp.where(col <= row, 0.0, -1e30).astype(f32)[None], (bb, T, T))

    # f32 output accumulator, seeded with the projection bias (broadcast rows).
    y_acc = jnp.broadcast_to(bp_ref[...].astype(f32), (N, C))

    for h in range(num_heads):        # static python loop, num_heads is small
        sl = slice(h * head_size, (h + 1) * head_size)
        qh = q[:, :, sl]              # (bb, T, hs) bf16
        kh = k[:, :, sl]
        vh = v[:, :, sl]

        # batched over the folded batch dim; f32 accumulation on the MXU
        s = jnp.einsum("btd,bsd->bts", qh, kh,
                       preferred_element_type=f32)                  # (bb, T, T)
        s = s + mask_bias
        s = s - jnp.max(s, axis=-1, keepdims=True)
        p = jnp.exp(s)                                              # f32 EUP
        p = p * pl.reciprocal(jnp.sum(p, axis=-1, keepdims=True), approx=True)

        oh = jnp.einsum("bts,bsd->btd", p.astype(bf16), vh,
                        preferred_element_type=f32)                 # (bb, T, hs)

        # Accumulate this head's contribution to the output projection:
        # (N, hs) @ (hs, C) -> (N, C), added into the f32 accumulator.
        # No 32-lane column stores, no concat scratch round trip.
        y_acc = y_acc + jnp.dot(oh.reshape(N, head_size).astype(bf16),
                                wp_ref[sl, :], preferred_element_type=f32)

    # Single lane-dense store of the full (bb, T, C) slab.
    o_ref[...] = y_acc.reshape(bb, T, C).astype(o_ref.dtype)


def _num_tensorcores():
    """Best-effort TensorCore count (v7x has 2 per chip; v5e/v6e have 1)."""
    try:
        info = pltpu.get_tpu_info()
    except Exception:
        return 1
    for name in ("num_tensorcores", "tensor_cores_per_chip",
                 "tensorcores_per_chip", "num_cores", "core_count"):
        n = getattr(info, name, None)
        if isinstance(n, int) and n >= 1:
            return n
    return 1


def pack_mha_params(wq, wk, wv, wp, bp):
    """One-time parameter packing (do this at init time, NOT per call).

    wq/wk/wv: (C, C), head h in columns [h*hs, (h+1)*hs).
    wp: (C, C) already transposed to (in, out).  bp: (C,).
    The C**-0.5 score scale is folded into the Wq columns here.
    """
    C = wq.shape[0]
    w_qkv = jnp.concatenate(
        [wq * (C ** (-0.5)), wk, wv], axis=1).astype(jnp.bfloat16)  # (C, 3C)
    wp_bf = wp.astype(jnp.bfloat16)
    bp2 = bp.reshape(1, C).astype(jnp.float32)
    return w_qkv, wp_bf, bp2


def multi_head_attention(x, w_qkv, wp_bf, bp2, *, num_heads, head_size,
                         batch_block=None, out_dtype=jnp.bfloat16):
    """x: (B, T, C), ideally already bf16 (cast once on the producer side).
    w_qkv/wp_bf/bp2: output of pack_mha_params (packed once at init time).

    batch_block: batch elements per grid step.  Default = B // num_tensorcores
    (grid=(1,) on single-TC v5e/v6e, grid=(2,) on v7x so both cores get work).
    """
    B, T, C = x.shape
    assert C == num_heads * head_size
    if batch_block is None:
        ntc = _num_tensorcores()
        bb = B // ntc if (ntc > 1 and B % ntc == 0) else B
    else:
        bb = batch_block
    assert B % bb == 0
    grid = (B // bb,)

    x_bf = x if x.dtype == jnp.bfloat16 else x.astype(jnp.bfloat16)

    kernel = functools.partial(_mha_kernel, num_heads=num_heads,
                               head_size=head_size)
    return pl.pallas_call(
        kernel,
        out_shape=jax.ShapeDtypeStruct((B, T, C), out_dtype),
        grid_spec=pltpu.PrefetchScalarGridSpec(
            num_scalar_prefetch=0,
            grid=grid,
            in_specs=[
                pl.BlockSpec((bb, T, C), lambda i: (i, 0, 0)),   # x (bf16)
                pl.BlockSpec((C, 3 * C), lambda i: (0, 0)),      # [Wq*s|Wk|Wv]
                pl.BlockSpec((C, C), lambda i: (0, 0)),          # Wp (in,out)
                pl.BlockSpec((1, C), lambda i: (0, 0)),          # bp
            ],
            out_specs=pl.BlockSpec((bb, T, C), lambda i: (i, 0, 0)),
        ),
        compiler_params=pltpu.CompilerParams(
            dimension_semantics=("parallel",),
            vmem_limit_bytes=32 * 1024 * 1024,
        ),
    )(x_bf, w_qkv, wp_bf, bp2)


def _reference(x, wq, wk, wv, wp, bp, *, num_heads, head_size):
    """Plain-JAX reference mirroring the PyTorch forward (eval mode).

    Matmul operands are cast to bf16 (f32 accumulation) to mirror the kernel's
    deliberate MXU precision choice; all other math is f32 with exact softmax.
    """
    bf = jnp.bfloat16
    f32 = jnp.float32
    B, T, C = x.shape
    xb = x.astype(bf)
    q = jnp.einsum("btc,cd->btd", xb, wq.astype(bf), preferred_element_type=f32)
    k = jnp.einsum("btc,cd->btd", xb, wk.astype(bf), preferred_element_type=f32)
    v = jnp.einsum("btc,cd->btd", xb, wv.astype(bf), preferred_element_type=f32)
    causal = jnp.tril(jnp.ones((T, T), dtype=bool))
    outs = []
    for h in range(num_heads):
        sl = slice(h * head_size, (h + 1) * head_size)
        wei = jnp.einsum("btd,bsd->bts", q[..., sl].astype(bf),
                         k[..., sl].astype(bf),
                         preferred_element_type=f32) * C ** (-0.5)
        wei = jnp.where(causal[None], wei, -jnp.inf)
        wei = jax.nn.softmax(wei, axis=-1)
        outs.append(jnp.einsum("bts,bsd->btd", wei.astype(bf),
                               v[..., sl].astype(bf),
                               preferred_element_type=f32))
    attn = jnp.concatenate(outs, axis=-1)
    return jnp.einsum("btc,cd->btd", attn.astype(bf), wp.astype(bf),
                      preferred_element_type=f32) + bp


if __name__ == "__main__":
    num_heads = 4
    head_size = N_EMBD // num_heads   # 32
    B, T, C = 2, BLOCK_SIZE, N_EMBD   # (2, 128, 128)

    key = jax.random.PRNGKey(0)
    kx, kq, kk, kv, kp, kb = jax.random.split(key, 6)

    x = jax.random.normal(kx, (B, T, C), dtype=jnp.float32)
    # Per-head key/query/value weights packed into contiguous column blocks.
    wq = jax.random.normal(kq, (C, C), dtype=jnp.float32) * 0.05
    wk = jax.random.normal(kk, (C, C), dtype=jnp.float32) * 0.05
    wv = jax.random.normal(kv, (C, C), dtype=jnp.float32) * 0.05
    # Projection: stored already transposed as (in, out) for a plain matmul.
    wp = jax.random.normal(kp, (C, C), dtype=jnp.float32) * 0.05
    bp = jax.random.normal(kb, (C,), dtype=jnp.float32) * 0.05

    # One-time packing (init-time, not per call); producer emits x in bf16.
    w_qkv, wp_bf, bp2 = pack_mha_params(wq, wk, wv, wp, bp)
    x_bf = x.astype(jnp.bfloat16)

    out = multi_head_attention(x_bf, w_qkv, wp_bf, bp2,
                               num_heads=num_heads, head_size=head_size)
    out = jax.block_until_ready(out)

    ref = _reference(x, wq, wk, wv, wp, bp,
                     num_heads=num_heads, head_size=head_size)
    assert out.shape == (B, T, C)
    # Tolerance covers accumulation-order differences, the approx reciprocal,
    # the scale folded into bf16 Wq, and the bf16 output store.
    assert jnp.allclose(out.astype(jnp.float32), ref, atol=2e-2, rtol=2e-2), (
        float(jnp.max(jnp.abs(out.astype(jnp.float32) - ref))))

    print("KERNEL_OK")
</pallas_src>

<mosaic_0001>
module attributes {stable_mosaic.version = 11 : i64} {
  func.func @_mha_kernel(%arg0: i32, %arg1: memref<2x128x128xbf16, #tpu.memory_space<vmem>>, %arg2: memref<128x384xbf16, #tpu.memory_space<vmem>>, %arg3: memref<128x128xbf16, #tpu.memory_space<vmem>>, %arg4: memref<1x128xf32, #tpu.memory_space<vmem>>, %arg5: memref<2x128x128xbf16, #tpu.memory_space<vmem>>) attributes {dimension_semantics = [#tpu.dimension_semantics<parallel>], iteration_bounds = array<i64: 1>, scalar_prefetch = 0 : i64, scratch_operands = 0 : i64, tpu.core_type = #tpu.core_type<tc>, window_params = [{transform_indices = @transform_0, window_bounds = array<i64: 2, 128, 128>}, {pipeline_mode = #tpu.pipeline_mode<synchronous>, transform_indices = @transform_1, window_bounds = array<i64: 128, 384>}, {pipeline_mode = #tpu.pipeline_mode<synchronous>, transform_indices = @transform_2, window_bounds = array<i64: 128, 128>}, {pipeline_mode = #tpu.pipeline_mode<synchronous>, transform_indices = @transform_3, window_bounds = array<i64: 1, 128>}, {transform_indices = @transform_4, window_bounds = array<i64: 2, 128, 128>}]} {
    %c0 = arith.constant 0 : index
    %c0_0 = arith.constant 0 : index
    %c0_1 = arith.constant 0 : index
    %0 = vector.load %arg1[%c0, %c0_0, %c0_1] : memref<2x128x128xbf16, #tpu.memory_space<vmem>>, vector<2x128x128xbf16>
    %1 = vector.shape_cast %0 : vector<2x128x128xbf16> to vector<256x128xbf16>
    %c0_2 = arith.constant 0 : index
    %c0_3 = arith.constant 0 : index
    %2 = vector.load %arg2[%c0_2, %c0_3] : memref<128x384xbf16, #tpu.memory_space<vmem>>, vector<128x384xbf16>
    %cst = arith.constant dense<0.000000e+00> : vector<256x384xf32>
    %3 = tpu.matmul %1, %2, %cst {dimension_numbers = #tpu.dot_dimension_numbers<[1], [0], [0], [1], [0, 0, 1, 1], [], []>} : vector<256x128xbf16>, vector<128x384xbf16>, vector<256x384xf32> -> vector<256x384xf32>
    %4 = vector.extract_strided_slice %3 {offsets = [0, 0], sizes = [256, 128], strides = [1, 1]} : vector<256x384xf32> to vector<256x128xf32>
    %5 = arith.truncf %4 : vector<256x128xf32> to vector<256x128xbf16>
    %6 = vector.shape_cast %5 : vector<256x128xbf16> to vector<2x128x128xbf16>
    %7 = vector.extract_strided_slice %3 {offsets = [0, 128], sizes = [256, 128], strides = [1, 1]} : vector<256x384xf32> to vector<256x128xf32>
    %8 = arith.truncf %7 : vector<256x128xf32> to vector<256x128xbf16>
    %9 = vector.shape_cast %8 : vector<256x128xbf16> to vector<2x128x128xbf16>
    %10 = vector.extract_strided_slice %3 {offsets = [0, 256], sizes = [256, 128], strides = [1, 1]} : vector<256x384xf32> to vector<256x128xf32>
    %11 = arith.truncf %10 : vector<256x128xf32> to vector<256x128xbf16>
    %12 = vector.shape_cast %11 : vector<256x128xbf16> to vector<2x128x128xbf16>
    %13 = tpu.iota {dimensions = array<i32: 0>} : vector<128x128xi32>
    %14 = tpu.iota {dimensions = array<i32: 1>} : vector<128x128xi32>
    %15 = arith.cmpi sle, %14, %13 : vector<128x128xi32>
    %cst_4 = arith.constant 0.000000e+00 : f32
    %cst_5 = arith.constant -1.000000e+30 : f32
    %16 = vector.broadcast %cst_4 : f32 to vector<128x128xf32>
    %17 = vector.broadcast %cst_5 : f32 to vector<128x128xf32>
    %18 = arith.select %15, %16, %17 : vector<128x128xi1>, vector<128x128xf32>
    %19 = vector.shape_cast %18 : vector<128x128xf32> to vector<1x128x128xf32>
    %20 = vector.shape_cast %19 : vector<1x128x128xf32> to vector<1x128x128xf32>
    %21 = vector.broadcast %20 : vector<1x128x128xf32> to vector<2x128x128xf32>
    %c0_6 = arith.constant 0 : index
    %c0_7 = arith.constant 0 : index
    %22 = vector.load %arg4[%c0_6, %c0_7] : memref<1x128xf32, #tpu.memory_space<vmem>>, vector<1x128xf32>
    %23 = vector.shape_cast %22 : vector<1x128xf32> to vector<1x128xf32>
    %24 = vector.broadcast %23 : vector<1x128xf32> to vector<256x128xf32>
    %25 = vector.extract_strided_slice %6 {offsets = [0, 0, 0], sizes = [2, 128, 32], strides = [1, 1, 1]} : vector<2x128x128xbf16> to vector<2x128x32xbf16>
    %26 = vector.extract_strided_slice %9 {offsets = [0, 0, 0], sizes = [2, 128, 32], strides = [1, 1, 1]} : vector<2x128x128xbf16> to vector<2x128x32xbf16>
    %27 = vector.extract_strided_slice %12 {offsets = [0, 0, 0], sizes = [2, 128, 32], strides = [1, 1, 1]} : vector<2x128x128xbf16> to vector<2x128x32xbf16>
    "tpu.trace_start"() <{level = 10 : i32, message = "btd,bsd->bts"}> : () -> ()
    %cst_8 = arith.constant dense<0.000000e+00> : vector<2x128x128xf32>
    %28 = tpu.matmul %25, %26, %cst_8 {dimension_numbers = #tpu.dot_dimension_numbers<[2], [2], [1], [1], [0, 0, 0, 1, 1, 1], [0], [0]>} : vector<2x128x32xbf16>, vector<2x128x32xbf16>, vector<2x128x128xf32> -> vector<2x128x128xf32>
    "tpu.trace_stop"() : () -> ()
    %29 = arith.addf %28, %21 : vector<2x128x128xf32>
    %cst_9 = arith.constant dense<0xFF800000> : vector<2x128xf32>
    %30 = vector.multi_reduction <maximumf>, %29, %cst_9 [2] : vector<2x128x128xf32> to vector<2x128xf32>
    %31 = vector.shape_cast %30 : vector<2x128xf32> to vector<2x128x1xf32>
    %32 = vector.broadcast %31 : vector<2x128x1xf32> to vector<2x128x128xf32>
    %33 = arith.subf %29, %32 : vector<2x128x128xf32>
    %34 = math.exp %33 : vector<2x128x128xf32>
    %cst_10 = arith.constant dense<0.000000e+00> : vector<2x128xf32>
    %35 = vector.multi_reduction <add>, %34, %cst_10 [2] : vector<2x128x128xf32> to vector<2x128xf32>
    %36 = vector.shape_cast %35 : vector<2x128xf32> to vector<2x128x1xf32>
    %37 = tpu.reciprocal %36 {approx = true} : vector<2x128x1xf32> -> vector<2x128x1xf32>
    %38 = vector.broadcast %37 : vector<2x128x1xf32> to vector<2x128x128xf32>
    %39 = arith.mulf %34, %38 : vector<2x128x128xf32>
    %40 = arith.truncf %39 : vector<2x128x128xf32> to vector<2x128x128xbf16>
    "tpu.trace_start"() <{level = 10 : i32, message = "bts,bsd->btd"}> : () -> ()
    %cst_11 = arith.constant dense<0.000000e+00> : vector<2x128x32xf32>
    %41 = tpu.matmul %40, %27, %cst_11 {dimension_numbers = #tpu.dot_dimension_numbers<[2], [1], [1], [2], [0, 0, 0, 1, 1, 2], [0], [0]>} : vector<2x128x128xbf16>, vector<2x128x32xbf16>, vector<2x128x32xf32> -> vector<2x128x32xf32>
    "tpu.trace_stop"() : () -> ()
    %42 = vector.shape_cast %41 : vector<2x128x32xf32> to vector<256x32xf32>
    %43 = arith.truncf %42 : vector<256x32xf32> to vector<256x32xbf16>
    %c0_12 = arith.constant 0 : index
    %c0_13 = arith.constant 0 : index
    %44 = vector.load %arg3[%c0_12, %c0_13] : memref<128x128xbf16, #tpu.memory_space<vmem>>, vector<32x128xbf16>
    %cst_14 = arith.constant dense<0.000000e+00> : vector<256x128xf32>
    %45 = tpu.matmul %43, %44, %cst_14 {dimension_numbers = #tpu.dot_dimension_numbers<[1], [0], [0], [1], [0, 0, 1, 1], [], []>} : vector<256x32xbf16>, vector<32x128xbf16>, vector<256x128xf32> -> vector<256x128xf32>
    %46 = arith.addf %24, %45 : vector<256x128xf32>
    %47 = vector.extract_strided_slice %6 {offsets = [0, 0, 32], sizes = [2, 128, 32], strides = [1, 1, 1]} : vector<2x128x128xbf16> to vector<2x128x32xbf16>
    %48 = vector.extract_strided_slice %9 {offsets = [0, 0, 32], sizes = [2, 128, 32], strides = [1, 1, 1]} : vector<2x128x128xbf16> to vector<2x128x32xbf16>
    %49 = vector.extract_strided_slice %12 {offsets = [0, 0, 32], sizes = [2, 128, 32], strides = [1, 1, 1]} : vector<2x128x128xbf16> to vector<2x128x32xbf16>
    "tpu.trace_start"() <{level = 10 : i32, message = "btd,bsd->bts"}> : () -> ()
    %cst_15 = arith.constant dense<0.000000e+00> : vector<2x128x128xf32>
    %50 = tpu.matmul %47, %48, %cst_15 {dimension_numbers = #tpu.dot_dimension_numbers<[2], [2], [1], [1], [0, 0, 0, 1, 1, 1], [0], [0]>} : vector<2x128x32xbf16>, vector<2x128x32xbf16>, vector<2x128x128xf32> -> vector<2x128x128xf32>
    "tpu.trace_stop"() : () -> ()
    %51 = arith.addf %50, %21 : vector<2x128x128xf32>
    %cst_16 = arith.constant dense<0xFF800000> : vector<2x128xf32>
    %52 = vector.multi_reduction <maximumf>, %51, %cst_16 [2] : vector<2x128x128xf32> to vector<2x128xf32>
    %53 = vector.shape_cast %52 : vector<2x128xf32> to vector<2x128x1xf32>
    %54 = vector.broadcast %53 : vector<2x128x1xf32> to vector<2x128x128xf32>
    %55 = arith.subf %51, %54 : vector<2x128x128xf32>
    %56 = math.exp %55 : vector<2x128x128xf32>
    %cst_17 = arith.constant dense<0.000000e+00> : vector<2x128xf32>
    %57 = vector.multi_reduction <add>, %56, %cst_17 [2] : vector<2x128x128xf32> to vector<2x128xf32>
    %58 = vector.shape_cast %57 : vector<2x128xf32> to vector<2x128x1xf32>
    %59 = tpu.reciprocal %58 {approx = true} : vector<2x128x1xf32> -> vector<2x128x1xf32>
    %60 = vector.broadcast %59 : vector<2x128x1xf32> to vector<2x128x128xf32>
    %61 = arith.mulf %56, %60 : vector<2x128x128xf32>
    %62 = arith.truncf %61 : vector<2x128x128xf32> to vector<2x128x128xbf16>
    "tpu.trace_start"() <{level = 10 : i32, message = "bts,bsd->btd"}> : () -> ()
    %cst_18 = arith.constant dense<0.000000e+00> : vector<2x128x32xf32>
    %63 = tpu.matmul %62, %49, %cst_18 {dimension_numbers = #tpu.dot_dimension_numbers<[2], [1], [1], [2], [0, 0, 0, 1, 1, 2], [0], [0]>} : vector<2x128x128xbf16>, vector<2x128x32xbf16>, vector<2x128x32xf32> -> vector<2x128x32xf32>
    "tpu.trace_stop"() : () -> ()
    %64 = vector.shape_cast %63 : vector<2x128x32xf32> to vector<256x32xf32>
    %65 = arith.truncf %64 : vector<256x32xf32> to vector<256x32xbf16>
    %c32 = arith.constant 32 : index
    %c0_19 = arith.constant 0 : index
    %66 = vector.load %arg3[%c32, %c0_19] : memref<128x128xbf16, #tpu.memory_space<vmem>>, vector<32x128xbf16>
    %cst_20 = arith.constant dense<0.000000e+00> : vector<256x128xf32>
    %67 = tpu.matmul %65, %66, %cst_20 {dimension_numbers = #tpu.dot_dimension_numbers<[1], [0], [0], [1], [0, 0, 1, 1], [], []>} : vector<256x32xbf16>, vector<32x128xbf16>, vector<256x128xf32> -> vector<256x128xf32>
    %68 = arith.addf %46, %67 : vector<256x128xf32>
    %69 = vector.extract_strided_slice %6 {offsets = [0, 0, 64], sizes = [2, 128, 32], strides = [1, 1, 1]} : vector<2x128x128xbf16> to vector<2x128x32xbf16>
    %70 = vector.extract_strided_slice %9 {offsets = [0, 0, 64], sizes = [2, 128, 32], strides = [1, 1, 1]} : vector<2x128x128xbf16> to vector<2x128x32xbf16>
    %71 = vector.extract_strided_slice %12 {offsets = [0, 0, 64], sizes = [2, 128, 32], strides = [1, 1, 1]} : vector<2x128x128xbf16> to vector<2x128x32xbf16>
    "tpu.trace_start"() <{level = 10 : i32, message = "btd,bsd->bts"}> : () -> ()
    %cst_21 = arith.constant dense<0.000000e+00> : vector<2x128x128xf32>
    %72 = tpu.matmul %69, %70, %cst_21 {dimension_numbers = #tpu.dot_dimension_numbers<[2], [2], [1], [1], [0, 0, 0, 1, 1, 1], [0], [0]>} : vector<2x128x32xbf16>, vector<2x128x32xbf16>, vector<2x128x128xf32> -> vector<2x128x128xf32>
    "tpu.trace_stop"() : () -> ()
    %73 = arith.addf %72, %21 : vector<2x128x128xf32>
    %cst_22 = arith.constant dense<0xFF800000> : vector<2x128xf32>
    %74 = vector.multi_reduction <maximumf>, %73, %cst_22 [2] : vector<2x128x128xf32> to vector<2x128xf32>
    %75 = vector.shape_cast %74 : vector<2x128xf32> to vector<2x128x1xf32>
    %76 = vector.broadcast %75 : vector<2x128x1xf32> to vector<2x128x128xf32>
    %77 = arith.subf %73, %76 : vector<2x128x128xf32>
    %78 = math.exp %77 : vector<2x128x128xf32>
    %cst_23 = arith.constant dense<0.000000e+00> : vector<2x128xf32>
    %79 = vector.multi_reduction <add>, %78, %cst_23 [2] : vector<2x128x128xf32> to vector<2x128xf32>
    %80 = vector.shape_cast %79 : vector<2x128xf32> to vector<2x128x1xf32>
    %81 = tpu.reciprocal %80 {approx = true} : vector<2x128x1xf32> -> vector<2x128x1xf32>
    %82 = vector.broadcast %81 : vector<2x128x1xf32> to vector<2x128x128xf32>
    %83 = arith.mulf %78, %82 : vector<2x128x128xf32>
    %84 = arith.truncf %83 : vector<2x128x128xf32> to vector<2x128x128xbf16>
    "tpu.trace_start"() <{level = 10 : i32, message = "bts,bsd->btd"}> : () -> ()
    %cst_24 = arith.constant dense<0.000000e+00> : vector<2x128x32xf32>
    %85 = tpu.matmul %84, %71, %cst_24 {dimension_numbers = #tpu.dot_dimension_numbers<[2], [1], [1], [2], [0, 0, 0, 1, 1, 2], [0], [0]>} : vector<2x128x128xbf16>, vector<2x128x32xbf16>, vector<2x128x32xf32> -> vector<2x128x32xf32>
    "tpu.trace_stop"() : () -> ()
    %86 = vector.shape_cast %85 : vector<2x128x32xf32> to vector<256x32xf32>
    %87 = arith.truncf %86 : vector<256x32xf32> to vector<256x32xbf16>
    %c64 = arith.constant 64 : index
    %c0_25 = arith.constant 0 : index
    %88 = vector.load %arg3[%c64, %c0_25] : memref<128x128xbf16, #tpu.memory_space<vmem>>, vector<32x128xbf16>
    %cst_26 = arith.constant dense<0.000000e+00> : vector<256x128xf32>
    %89 = tpu.matmul %87, %88, %cst_26 {dimension_numbers = #tpu.dot_dimension_numbers<[1], [0], [0], [1], [0, 0, 1, 1], [], []>} : vector<256x32xbf16>, vector<32x128xbf16>, vector<256x128xf32> -> vector<256x128xf32>
    %90 = arith.addf %68, %89 : vector<256x128xf32>
    %91 = vector.extract_strided_slice %6 {offsets = [0, 0, 96], sizes = [2, 128, 32], strides = [1, 1, 1]} : vector<2x128x128xbf16> to vector<2x128x32xbf16>
    %92 = vector.extract_strided_slice %9 {offsets = [0, 0, 96], sizes = [2, 128, 32], strides = [1, 1, 1]} : vector<2x128x128xbf16> to vector<2x128x32xbf16>
    %93 = vector.extract_strided_slice %12 {offsets = [0, 0, 96], sizes = [2, 128, 32], strides = [1, 1, 1]} : vector<2x128x128xbf16> to vector<2x128x32xbf16>
    "tpu.trace_start"() <{level = 10 : i32, message = "btd,bsd->bts"}> : () -> ()
    %cst_27 = arith.constant dense<0.000000e+00> : vector<2x128x128xf32>
    %94 = tpu.matmul %91, %92, %cst_27 {dimension_numbers = #tpu.dot_dimension_numbers<[2], [2], [1], [1], [0, 0, 0, 1, 1, 1], [0], [0]>} : vector<2x128x32xbf16>, vector<2x128x32xbf16>, vector<2x128x128xf32> -> vector<2x128x128xf32>
    "tpu.trace_stop"() : () -> ()
    %95 = arith.addf %94, %21 : vector<2x128x128xf32>
    %cst_28 = arith.constant dense<0xFF800000> : vector<2x128xf32>
    %96 = vector.multi_reduction <maximumf>, %95, %cst_28 [2] : vector<2x128x128xf32> to vector<2x128xf32>
    %97 = vector.shape_cast %96 : vector<2x128xf32> to vector<2x128x1xf32>
    %98 = vector.broadcast %97 : vector<2x128x1xf32> to vector<2x128x128xf32>
    %99 = arith.subf %95, %98 : vector<2x128x128xf32>
    %100 = math.exp %99 : vector<2x128x128xf32>
    %cst_29 = arith.constant dense<0.000000e+00> : vector<2x128xf32>
    %101 = vector.multi_reduction <add>, %100, %cst_29 [2] : vector<2x128x128xf32> to vector<2x128xf32>
    %102 = vector.shape_cast %101 : vector<2x128xf32> to vector<2x128x1xf32>
    %103 = tpu.reciprocal %102 {approx = true} : vector<2x128x1xf32> -> vector<2x128x1xf32>
    %104 = vector.broadcast %103 : vector<2x128x1xf32> to vector<2x128x128xf32>
    %105 = arith.mulf %100, %104 : vector<2x128x128xf32>
    %106 = arith.truncf %105 : vector<2x128x128xf32> to vector<2x128x128xbf16>
    "tpu.trace_start"() <{level = 10 : i32, message = "bts,bsd->btd"}> : () -> ()
    %cst_30 = arith.constant dense<0.000000e+00> : vector<2x128x32xf32>
    %107 = tpu.matmul %106, %93, %cst_30 {dimension_numbers = #tpu.dot_dimension_numbers<[2], [1], [1], [2], [0, 0, 0, 1, 1, 2], [0], [0]>} : vector<2x128x128xbf16>, vector<2x128x32xbf16>, vector<2x128x32xf32> -> vector<2x128x32xf32>
    "tpu.trace_stop"() : () -> ()
    %108 = vector.shape_cast %107 : vector<2x128x32xf32> to vector<256x32xf32>
    %109 = arith.truncf %108 : vector<256x32xf32> to vector<256x32xbf16>
    %c96 = arith.constant 96 : index
    %c0_31 = arith.constant 0 : index
    %110 = vector.load %arg3[%c96, %c0_31] : memref<128x128xbf16, #tpu.memory_space<vmem>>, vector<32x128xbf16>
    %cst_32 = arith.constant dense<0.000000e+00> : vector<256x128xf32>
    %111 = tpu.matmul %109, %110, %cst_32 {dimension_numbers = #tpu.dot_dimension_numbers<[1], [0], [0], [1], [0, 0, 1, 1], [], []>} : vector<256x32xbf16>, vector<32x128xbf16>, vector<256x128xf32> -> vector<256x128xf32>
    %112 = arith.addf %90, %111 : vector<256x128xf32>
    %113 = vector.shape_cast %112 : vector<256x128xf32> to vector<2x128x128xf32>
    %114 = arith.truncf %113 : vector<2x128x128xf32> to vector<2x128x128xbf16>
    %c0_33 = arith.constant 0 : index
    %c0_34 = arith.constant 0 : index
    %c0_35 = arith.constant 0 : index
    %115 = vector.load %arg5[%c0_33, %c0_34, %c0_35] : memref<2x128x128xbf16, #tpu.memory_space<vmem>>, vector<2x128x128xbf16>
    tpu.vector_store %arg5[%c0_33, %c0_34, %c0_35], %114 {strides = array<i32>} : memref<2x128x128xbf16, #tpu.memory_space<vmem>>, vector<2x128x128xbf16>,
    return
  }
  func.func @transform_0(%arg0: i32) -> (i32, i32, i32) {
    %c0_i32 = arith.constant 0 : i32
    %c0_i32_0 = arith.constant 0 : i32
    %c0_i32_1 = arith.constant 0 : i32
    return %arg0, %c0_i32, %c0_i32_0 : i32, i32, i32
  }
  func.func @transform_1(%arg0: i32) -> (i32, i32) {
    %c0_i32 = arith.constant 0 : i32
    %c0_i32_0 = arith.constant 0 : i32
    %c0_i32_1 = arith.constant 0 : i32
    return %c0_i32, %c0_i32_0 : i32, i32
  }
  func.func @transform_2(%arg0: i32) -> (i32, i32) {
    %c0_i32 = arith.constant 0 : i32
    %c0_i32_0 = arith.constant 0 : i32
    %c0_i32_1 = arith.constant 0 : i32
    return %c0_i32, %c0_i32_0 : i32, i32
  }
  func.func @transform_3(%arg0: i32) -> (i32, i32) {
    %c0_i32 = arith.constant 0 : i32
    %c0_i32_0 = arith.constant 0 : i32
    %c0_i32_1 = arith.constant 0 : i32
    return %c0_i32, %c0_i32_0 : i32, i32
  }
  func.func @transform_4(%arg0: i32) -> (i32, i32, i32) {
    %c0_i32 = arith.constant 0 : i32
    %c0_i32_0 = arith.constant 0 : i32
    %c0_i32_1 = arith.constant 0 : i32
    return %arg0, %c0_i32, %c0_i32_0 : i32, i32, i32
  }
}

</mosaic_0001>

<bundles_post_ra>
// kernel: tpu_custom_call.1
= control target key start
LH: loop header
LB: loop body
LE: loop exit
PB: predicated region body
PF: predicated region fallthrough
CT: control target
= control target key end

     0   :  { %9 = vsyncpa [#allocation3], 0  ;;  %s10149_s0 = inlined_call_operand.hbm [shape: bf16[2,128,128], index: 0, kind: input, shape index: {}]   ;;  %s10150_s1 = inlined_call_operand.hbm [shape: bf16[128,384], index: 1, kind: input, shape index: {}]   ;;  %s10151_s2 = inlined_call_operand.hbm [shape: bf16[128,128], index: 2, kind: input, shape index: {}]   ;;  %s10152_s3 = inlined_call_operand.vmem [shape: f32[1,128], index: 3, kind: input, shape index: {}]   ;;  %s10153_s4 = inlined_call_operand.hbm [shape: bf16[2,128,128], index: 4, kind: output, shape index: {}]  }
   0x1   :  { %10 = vsyncpa [#allocation6], 0 }
   0x2   :  { %11 = vsyncpa [#allocation4], 0  ;;  %s7889_s15 = smov [#allocation5]   ;;  %s7795_s19 = scalar_lea.hbm %s10150_s1, 3072 }
   0x3   :  { %s29_s16 = sshll.u32 %s7889_s15, 4  ;;  %p7796_p0 = scmp.ne.s32.totalorder %s10150_s1, %s7795_s19  ;;  %s30_s16 = int_to_ptr.vmem [resolvable:$true] %s29_s16 }
   0x4   :  { %p7799_p1 = scmp.lt.u32.totalorder %s7795_s19, %s10150_s1 }
   0x6   :  { %p7801_p2 = pnand %p7799_p1, %p7796_p0 }
   0x8   :  { %7804 = shalt.err (!%p7801_p2)
}
   0x9   :  { %s7805_s24 = scalar_lea.vmem %s30_s16, 3072  ;;  %p7810_p4 = scmp.lt.s32.totalorder %s30_s16, %s30_s16 }
   0xa   :  { %p7806_p3 = scmp.ne.s32.totalorder %s30_s16, %s7805_s24  ;;  %p7811_p5 = scmp.lt.s32.totalorder %s7805_s24, %s7805_s24 }
   0xc   :  { %p7812_p6 = por %p7811_p5, %p7810_p4 }
   0xe   :  { %p7813_p7 = pnand %p7812_p6, %p7806_p3 }
  0x10   :  { %7816 = shalt.err (!%p7813_p7)
}
  0x11   :  { %s7890_s25 = smov 192   ;;  %s7891_s26 = smov 12  }
  0x12   :  { %35 = dma.hbm_to_vmem [thread:$0]  %s10150_s1, 3072, %s30_s16, [#allocation6], %s7890_s25, %s7890_s25, %s7891_s26  }
  0x13   :  { %s7892_s29 = smov [#allocation2]   ;;  %s7817_s7 = scalar_lea.hbm %s10149_s0, 2048 }
  0x14   :  { %s17_s30 = sshll.u32 %s7892_s29, 4  ;;  %p7818_p8 = scmp.ne.s32.totalorder %s10149_s0, %s7817_s7  ;;  %s18_s30 = int_to_ptr.vmem [resolvable:$true] %s17_s30 }
  0x15   :  { %p7821_p9 = scmp.lt.u32.totalorder %s7817_s7, %s10149_s0 }
  0x17   :  { %p7823_p10 = pnand %p7821_p9, %p7818_p8 }
  0x19   :  { %7826 = shalt.err (!%p7823_p10)
}
  0x1a   :  { %s7827_s12 = scalar_lea.vmem %s18_s30, 2048  ;;  %p7832_p12 = scmp.lt.s32.totalorder %s18_s30, %s18_s30 }
  0x1b   :  { %p7828_p11 = scmp.ne.s32.totalorder %s18_s30, %s7827_s12  ;;  %p7833_p13 = scmp.lt.s32.totalorder %s7827_s12, %s7827_s12 }
  0x1d   :  { %p7834_p0 = por %p7833_p13, %p7832_p12 }
  0x1f   :  { %p7835_p1 = pnand %p7834_p0, %p7828_p11 }
  0x21   :  { %7838 = shalt.err (!%p7835_p1)
}
  0x22   :  { %s7893_s1 = smov 64   ;;  %s7894_s13 = smov 4  }
  0x23   :  { %23 = dma.hbm_to_vmem [thread:$0]  %s10149_s0, 2048, %s18_s30, [#allocation3], %s7893_s1, %s7893_s1, %s7894_s13  }
  0x24   :  { %s7895_s16 = smov [#allocation7]   ;;  %s7839_s20 = scalar_lea.hbm %s10151_s2, 1024 }
  0x25   :  { %s41_s17 = sshll.u32 %s7895_s16, 4  ;;  %p7840_p2 = scmp.ne.s32.totalorder %s10151_s2, %s7839_s20  ;;  %s42_s17 = int_to_ptr.vmem [resolvable:$true] %s41_s17 }
  0x26   :  { %p7843_p3 = scmp.lt.u32.totalorder %s7839_s20, %s10151_s2 }
  0x28   :  { %p7845_p4 = pnand %p7843_p3, %p7840_p2 }
  0x2a   :  { %7848 = shalt.err (!%p7845_p4)
}
  0x2b   :  { %s7849_s25 = scalar_lea.vmem %s42_s17, 1024  ;;  %p7854_p6 = scmp.lt.s32.totalorder %s42_s17, %s42_s17 }
  0x2c   :  { %p7850_p5 = scmp.ne.s32.totalorder %s42_s17, %s7849_s25  ;;  %p7855_p7 = scmp.lt.s32.totalorder %s7849_s25, %s7849_s25 }
  0x2e   :  { %p7856_p8 = por %p7855_p7, %p7854_p6 }
  0x30   :  { %p7857_p9 = pnand %p7856_p8, %p7850_p5 }
  0x32   :  { %7860 = shalt.err (!%p7857_p9)
}
  0x33   :  { %47 = dma.hbm_to_vmem [thread:$0]  %s10151_s2, 1024, %s42_s17, [#allocation6], %s7893_s1, %s7893_s1, %s7894_s13  }
  0x34   :  { %7883 = dma.done.wait [#allocation3], 2048  }
  0x35   :  { %7884 = vsyncadd [#allocation3], 4294965248 }
  0x36   :  { %7885 = dma.done.wait [#allocation6], 4096  }
  0x37   :  { %7886 = vsyncadd [#allocation6], 4294963200  ;;  %v7896_v0 = vmov 0   ;;  %v7227_v1 = vld [vmem:[#allocation5 + $0x4] ss:$12 sps:$4 sm:$0xff]   ;;  %v7252_v22 = vld [vmem:[#allocation2 + $0x8] sm:$0xff]  }
  0x38   :  { %380 = vmatprep.mubr.bf16.mxu0 %v7896_v0  ;;  %480 = vmatprep.mubr.bf16.mxu1 %v7896_v0  ;;  %v7229_v2 = vld [vmem:[#allocation5] ss:$12 sps:$4 sm:$0xff]   ;;  %v7230_v3 = vld [vmem:[#allocation5 + $0x1c] ss:$12 sps:$4 sm:$0xff]   ;;  %v7232_v4 = vld [vmem:[#allocation5 + $0x18] ss:$12 sps:$4 sm:$0xff]  }
  0x39   :  { %348 = vmatprep.subr.bf16.mxu0 %v7227_v1  ;;  %7007 = vmatprep.subr.bf16.mxu1 %v7227_v1  ;;  %v7233_v5 = vld [vmem:[#allocation5 + $0x34] ss:$12 sps:$4 sm:$0xff]   ;;  %v7235_v6 = vld [vmem:[#allocation5 + $0x30] ss:$12 sps:$4 sm:$0xff]   ;;  %v7236_v7 = vld [vmem:[#allocation5 + $0x4c] ss:$12 sps:$4 sm:$0xff]  }
  0x3a   :  { %349 = vmatpush1.bf16.msra.mxu0 %v7229_v2  ;;  %7015 = vmatpush1.bf16.msra.mxu1 %v7229_v2  ;;  %v7238_v8 = vld [vmem:[#allocation5 + $0x48] ss:$12 sps:$4 sm:$0xff]   ;;  %v7239_v9 = vld [vmem:[#allocation5 + $0x64] ss:$12 sps:$4 sm:$0xff]   ;;  %v7241_v10 = vld [vmem:[#allocation5 + $0x60] ss:$12 sps:$4 sm:$0xff]  }
  0x3b   :  { %350 = vmatprep.subr.bf16.mxu0 %v7230_v3  ;;  %7008 = vmatprep.subr.bf16.mxu1 %v7230_v3  ;;  %v7242_v11 = vld [vmem:[#allocation5 + $0x7c] ss:$12 sps:$4 sm:$0xff]   ;;  %v7244_v12 = vld [vmem:[#allocation5 + $0x78] ss:$12 sps:$4 sm:$0xff]   ;;  %v7245_v13 = vld [vmem:[#allocation5 + $0x94] ss:$12 sps:$4 sm:$0xff]  }
  0x3c   :  { %v7247_v14 = vld [vmem:[#allocation5 + $0x90] ss:$12 sps:$4 sm:$0xff]   ;;  %v7248_v15 = vld [vmem:[#allocation5 + $0xac] ss:$12 sps:$4 sm:$0xff]   ;;  %v7250_v16 = vld [vmem:[#allocation5 + $0xa8] ss:$12 sps:$4 sm:$0xff]  }
  0x3d   :  { %v7267_v17 = vld [vmem:[#allocation5 + $0x8] ss:$12 sps:$4 sm:$0xff]   ;;  %v7251_v18 = vld [vmem:[#allocation2] sm:$0xff]   ;;  %v7975_v23 = vld [vmem:[#allocation2 + $0x58] sm:$0xff]   ;;  %vm808_vm0 = vcmask 261120   ;;  %s7898_s2 = smov 96  }
  0x3e   :  { %351 = vmatpush1.bf16.msra.mxu0 %v7232_v4  ;;  %7016 = vmatpush1.bf16.msra.mxu1 %v7232_v4  ;;  %v7970_v19 = vld [vmem:[#allocation2 + $0x50] sm:$0xff]   ;;  %v7268_v20 = vld [vmem:[#allocation5 + $0x20] ss:$12 sps:$4 sm:$0xff]   ;;  %v7269_v21 = vld [vmem:[#allocation5 + $0x38] ss:$12 sps:$4 sm:$0xff]   ;;  %s7899_s27 = smov 32  }
  0x3f   :  { %352 = vmatprep.subr.bf16.mxu0 %v7233_v5  ;;  %7009 = vmatprep.subr.bf16.mxu1 %v7233_v5  ;;  %v7270_v24 = vld [vmem:[#allocation5 + $0x50] ss:$12 sps:$4 sm:$0xff]   ;;  %v7271_v25 = vld [vmem:[#allocation5 + $0x68] ss:$12 sps:$4 sm:$0xff]   ;;  %v7263_v27 = vld [vmem:[#allocation2 + $0x60] sm:$0xff]  }
  0x40   :  { %v7253_v26 = vld [vmem:[#allocation2 + $0x10] sm:$0xff]   ;;  %v7272_v28 = vld [vmem:[#allocation5 + $0x80] ss:$12 sps:$4 sm:$0xff]   ;;  %v7273_v29 = vld [vmem:[#allocation5 + $0x98] ss:$12 sps:$4 sm:$0xff]  }
  0x41   :  { %v7254_v30 = vld [vmem:[#allocation2 + $0x18] sm:$0xff]   ;;  %v7264_v31 = vld [vmem:[#allocation2 + $0x68] sm:$0xff]   ;;  %v7255_v33 = vld [vmem:[#allocation2 + $0x20] sm:$0xff]  }
  0x42   :  { %353 = vmatpush1.bf16.msra.mxu0 %v7235_v6  ;;  %7017 = vmatpush1.bf16.msra.mxu1 %v7235_v6  ;;  %v7274_v32 = vld [vmem:[#allocation5 + $0xb0] ss:$12 sps:$4 sm:$0xff]   ;;  %v7256_v35 = vld [vmem:[#allocation2 + $0x28] sm:$0xff]   ;;  %v7259_v39 = vld [vmem:[#allocation2 + $0x40] sm:$0xff]  }
  0x43   :  { %354 = vmatprep.subr.bf16.mxu0 %v7236_v7  ;;  %7010 = vmatprep.subr.bf16.mxu1 %v7236_v7  ;;  %v7265_v34 = vld [vmem:[#allocation2 + $0x70] sm:$0xff]   ;;  %v7266_v36 = vld [vmem:[#allocation2 + $0x78] sm:$0xff]   ;;  %v7260_v40 = vld [vmem:[#allocation2 + $0x48] sm:$0xff]  }
  0x44   :  { %v7257_v37 = vld [vmem:[#allocation2 + $0x30] sm:$0xff]   ;;  %v7258_v38 = vld [vmem:[#allocation2 + $0x38] sm:$0xff]  }
  0x46   :  { %355 = vmatpush1.bf16.msra.mxu0 %v7238_v8  ;;  %7018 = vmatpush1.bf16.msra.mxu1 %v7238_v8 }
  0x47   :  { %356 = vmatprep.subr.bf16.mxu0 %v7239_v9  ;;  %7011 = vmatprep.subr.bf16.mxu1 %v7239_v9 }
  0x4a   :  { %357 = vmatpush1.bf16.msra.mxu0 %v7241_v10  ;;  %7019 = vmatpush1.bf16.msra.mxu1 %v7241_v10 }
  0x4b   :  { %358 = vmatprep.subr.bf16.mxu0 %v7242_v11  ;;  %7012 = vmatprep.subr.bf16.mxu1 %v7242_v11 }
  0x4e   :  { %359 = vmatpush1.bf16.msra.mxu0 %v7244_v12  ;;  %7020 = vmatpush1.bf16.msra.mxu1 %v7244_v12 }
  0x4f   :  { %360 = vmatprep.subr.bf16.mxu0 %v7245_v13  ;;  %7013 = vmatprep.subr.bf16.mxu1 %v7245_v13 }
  0x52   :  { %361 = vmatpush1.bf16.msra.mxu0 %v7247_v14  ;;  %7021 = vmatpush1.bf16.msra.mxu1 %v7247_v14 }
  0x53   :  { %362 = vmatprep.subr.bf16.mxu0 %v7248_v15  ;;  %7014 = vmatprep.subr.bf16.mxu1 %v7248_v15 }
  0x56   :  { %363 = vmatpush1.bf16.msra.mxu0 %v7250_v16  ;;  %7022 = vmatpush1.bf16.msra.mxu1 %v7250_v16 }
  0x57   :  { %6303 = vmatprep.subr.bf16.mxu1 %v7267_v17 }
  0x59   :  { %381 = vmatmul.mubr.bf16.vlgmr.msra.gmra.mrb[0].mxu0 %v7251_v18  ;;  %481 = vmatmul.mubr.bf16.vlgmr.msra.gmra.mrb[0].mxu1 %v7970_v19 }
  0x5a   :  { %390 = vmatprep.mubr.bf16.mxu0 %v7896_v0  ;;  %490 = vmatprep.mubr.bf16.mxu1 %v7896_v0 }
  0x5b   :  { %6304 = vmatpush3.bf16.msra.mxu1 %v7267_v17 }
  0x5c   :  { %6305 = vmatprep.subr.bf16.mxu1 %v7268_v20 }
  0x5f   :  { %6306 = vmatpush3.bf16.msra.mxu1 %v7268_v20 }
  0x60   :  { %6307 = vmatprep.subr.bf16.mxu1 %v7269_v21 }
  0x61   :  { %391 = vmatmul.mubr.bf16.gmra.mrb[4].mxu0 %v7252_v22  ;;  %491 = vmatmul.mubr.bf16.gmra.mrb[4].mxu1 %v7975_v23 }
  0x62   :  { %400 = vmatprep.mubr.bf16.mxu0 %v7896_v0  ;;  %500 = vmatprep.mubr.bf16.mxu1 %v7896_v0 }
  0x63   :  { %6308 = vmatpush3.bf16.msra.mxu1 %v7269_v21 }
  0x64   :  { %6309 = vmatprep.subr.bf16.mxu1 %v7270_v24 }
  0x67   :  { %6310 = vmatpush3.bf16.msra.mxu1 %v7270_v24 }
  0x68   :  { %6311 = vmatprep.subr.bf16.mxu1 %v7271_v25 }
  0x69   :  { %401 = vmatmul.mubr.bf16.gmra.mrb[8].mxu0 %v7253_v26  ;;  %501 = vmatmul.mubr.bf16.gmra.mrb[8].mxu1 %v7263_v27 }
  0x6a   :  { %410 = vmatprep.mubr.bf16.mxu0 %v7896_v0  ;;  %510 = vmatprep.mubr.bf16.mxu1 %v7896_v0 }
  0x6b   :  { %6312 = vmatpush3.bf16.msra.mxu1 %v7271_v25 }
  0x6c   :  { %6313 = vmatprep.subr.bf16.mxu1 %v7272_v28 }
  0x6f   :  { %6314 = vmatpush3.bf16.msra.mxu1 %v7272_v28 }
  0x70   :  { %6315 = vmatprep.subr.bf16.mxu1 %v7273_v29 }
  0x71   :  { %411 = vmatmul.mubr.bf16.gmra.mrb[12].mxu0 %v7254_v30  ;;  %511 = vmatmul.mubr.bf16.gmra.mrb[12].mxu1 %v7264_v31 }
  0x72   :  { %420 = vmatprep.mubr.bf16.mxu0 %v7896_v0  ;;  %520 = vmatprep.mubr.bf16.mxu1 %v7896_v0 }
  0x73   :  { %6316 = vmatpush3.bf16.msra.mxu1 %v7273_v29 }
  0x74   :  { %6317 = vmatprep.subr.bf16.mxu1 %v7274_v32 }
  0x77   :  { %6318 = vmatpush3.bf16.msra.mxu1 %v7274_v32 }
  0x79   :  { %421 = vmatmul.mubr.bf16.gmra.mrb[16].mxu0 %v7255_v33  ;;  %521 = vmatmul.mubr.bf16.gmra.mrb[16].mxu1 %v7265_v34 }
  0x7a   :  { %430 = vmatprep.mubr.bf16.mxu0 %v7896_v0  ;;  %530 = vmatprep.mubr.bf16.mxu1 %v7896_v0 }
  0x81   :  { %431 = vmatmul.mubr.bf16.gmra.mrb[20].mxu0 %v7256_v35  ;;  %531 = vmatmul.mubr.bf16.gmra.mrb[20].mxu1 %v7266_v36 }
  0x82   :  { %440 = vmatprep.mubr.bf16.mxu0 %v7896_v0  ;;  %6319 = vmatprep.mubr.bf16.mxu1 %v7251_v18 }
  0x89   :  { %441 = vmatmul.mubr.bf16.gmra.mrb[24].mxu0 %v7257_v37  ;;  %6320 = vmatmul.mubr.bf16.vlgmr.msra.gmra.mrb[24].mxu1 %v7252_v22 }
  0x8a   :  { %450 = vmatprep.mubr.bf16.mxu0 %v7896_v0  ;;  %6323 = vmatprep.mubr.bf16.mxu1 %v7253_v26 }
  0x91   :  { %451 = vmatmul.mubr.bf16.gmra.mrb[28].mxu0 %v7258_v38  ;;  %6324 = vmatmul.mubr.bf16.gmra.mrb[28].mxu1 %v7254_v30 }
  0x92   :  { %460 = vmatprep.mubr.bf16.mxu0 %v7896_v0  ;;  %6327 = vmatprep.mubr.bf16.mxu1 %v7255_v33 }
  0x99   :  { %461 = vmatmul.mubr.bf16.gmra.mrb[32].mxu0 %v7259_v39  ;;  %6328 = vmatmul.mubr.bf16.gmra.mrb[32].mxu1 %v7256_v35 }
  0x9a   :  { %470 = vmatprep.mubr.bf16.mxu0 %v7896_v0  ;;  %6331 = vmatprep.mubr.bf16.mxu1 %v7257_v37 }
  0xa1   :  { %471 = vmatmul.mubr.bf16.gmra.mrb[36].mxu0 %v7260_v40  ;;  %6332 = vmatmul.mubr.bf16.gmra.mrb[36].mxu1 %v7258_v38 }
  0xa2   :  { %6335 = vmatprep.mubr.bf16.mxu1 %v7259_v39 }
  0xa9   :  { %6336 = vmatmul.mubr.bf16.gmra.mrb[40].mxu1 %v7260_v40 }
  0xaa   :  { %6339 = vmatprep.mubr.bf16.mxu1 %v7970_v19 }
  0xb1   :  { %6340 = vmatmul.mubr.bf16.gmra.mrb[44].mxu1 %v7975_v23 }
  0xb2   :  { %6343 = vmatprep.mubr.bf16.mxu1 %v7263_v27 }
  0xb9   :  { %6344 = vmatmul.mubr.bf16.gmra.mrb[48].mxu1 %v7264_v31 }
  0xba   :  { %6347 = vmatprep.mubr.bf16.mxu1 %v7265_v34 }
  0xc1   :  { %6348 = vmatmul.mubr.bf16.gmra.mrb[52].mxu1 %v7266_v36 }
 0x12c   :  { %v382_v41 = vpop.f32.mrb[0].mxu0  ;;  %v482_v42 = vpop.f32.mrb[0].mxu1 }
 0x12d   :  { %v384_v43 = vpop.f32.mrb[1].mxu0  ;;  %v484_v44 = vpop.f32.mrb[1].mxu1 }
 0x12e   :  { %v386_v45 = vpop.f32.mrb[2].mxu0  ;;  %v486_v46 = vpop.f32.mrb[2].mxu1 }
 0x12f   :  { %v7992_v47 = vpack.c.bf16 %v386_v45, %v382_v41  ;;  %v388_v48 = vpop.f32.mrb[3].mxu0  ;;  %v7994_v49 = vpack.c.bf16 %v486_v46, %v482_v42  ;;  %v488_v50 = vpop.f32.mrb[3].mxu1 }
 0x130   :  { %v7996_v51 = vpack.c.bf16 %v388_v48, %v384_v43  ;;  %v7998_v52 = vpack.c.bf16 %v488_v50, %v484_v44 }
 0x131   :  { %10295 = vst [vmem:[#allocation12_spill] sm:$0xff] %v7992_v47  ;;  %10296 = vst [vmem:[#allocation13_spill] sm:$0xff] %v7994_v49  ;;  %6367 = vmatprep.mubr.msk.bf16.mxu1 %vm808_vm0, %v7992_v47 }
 0x132   :  { %10297 = vst [vmem:[#allocation14_spill] sm:$0xff] %v7996_v51  ;;  %7151 = vmatprep.subr.msk.bf16.mxu1 %vm808_vm0, %v7996_v51  ;;  %v834_v53 = vsel %vm808_vm0, %v7996_v51, 0 }
 0x133   :  { %6352 = vmatpush3.bf16.xpose.msra.mxu1 %v834_v53 }
 0x134   :  { %v392_v54 = vpop.f32.mrb[4].mxu0  ;;  %v492_v55 = vpop.f32.mrb[4].mxu1 }
 0x135   :  { %v394_v56 = vpop.f32.mrb[5].mxu0  ;;  %v494_v57 = vpop.f32.mrb[5].mxu1 }
 0x136   :  { %v396_v58 = vpop.f32.mrb[6].mxu0  ;;  %v496_v59 = vpop.f32.mrb[6].mxu1 }
 0x137   :  { %v8006_v60 = vpack.c.bf16 %v396_v58, %v392_v54  ;;  %v398_v61 = vpop.f32.mrb[7].mxu0  ;;  %v8008_v62 = vpack.c.bf16 %v496_v59, %v492_v55  ;;  %v498_v63 = vpop.f32.mrb[7].mxu1 }
 0x138   :  { %v8010_v0 = vpack.c.bf16 %v398_v61, %v394_v56  ;;  %v8012_v1 = vpack.c.bf16 %v498_v63, %v494_v57 }
 0x139   :  { %10298 = vst [vmem:[#allocation15_spill] sm:$0xff] %v8008_v62 }
 0x13a   :  { %7152 = vmatprep.subr.msk.bf16.mxu1 %vm808_vm0, %v8010_v0  ;;  %v837_v2 = vsel %vm808_vm0, %v8010_v0, 0 }
 0x13b   :  { %6354 = vmatpush3.bf16.xpose.msra.mxu1 %v837_v2 }
 0x13c   :  { %v402_v3 = vpop.f32.mrb[8].mxu0  ;;  %v502_v4 = vpop.f32.mrb[8].mxu1 }
 0x13d   :  { %v404_v5 = vpop.f32.mrb[9].mxu0  ;;  %v504_v6 = vpop.f32.mrb[9].mxu1 }
 0x13e   :  { %v406_v7 = vpop.f32.mrb[10].mxu0  ;;  %v506_v8 = vpop.f32.mrb[10].mxu1 }
 0x13f   :  { %v8018_v9 = vpack.c.bf16 %v406_v7, %v402_v3  ;;  %v408_v10 = vpop.f32.mrb[11].mxu0  ;;  %v8020_v11 = vpack.c.bf16 %v506_v8, %v502_v4  ;;  %v508_v12 = vpop.f32.mrb[11].mxu1 }
 0x140   :  { %v8022_v13 = vpack.c.bf16 %v408_v10, %v404_v5  ;;  %v8024_v14 = vpack.c.bf16 %v508_v12, %v504_v6 }
 0x141   :  { %10299 = vst [vmem:[#allocation16_spill] sm:$0xff] %v8018_v9  ;;  %10300 = vst [vmem:[#allocation17_spill] sm:$0xff] %v8020_v11 }
 0x142   :  { %10301 = vst [vmem:[#allocation18_spill] sm:$0xff] %v8024_v14  ;;  %7153 = vmatprep.subr.msk.bf16.mxu1 %vm808_vm0, %v8022_v13  ;;  %v840_v15 = vsel %vm808_vm0, %v8022_v13, 0 }
 0x143   :  { %6356 = vmatpush3.bf16.xpose.msra.mxu1 %v840_v15 }
 0x144   :  { %v412_v16 = vpop.f32.mrb[12].mxu0  ;;  %v512_v17 = vpop.f32.mrb[12].mxu1 }
 0x145   :  { %v414_v18 = vpop.f32.mrb[13].mxu0  ;;  %v514_v19 = vpop.f32.mrb[13].mxu1 }
 0x146   :  { %v416_v20 = vpop.f32.mrb[14].mxu0  ;;  %v516_v21 = vpop.f32.mrb[14].mxu1 }
 0x147   :  { %v8030_v22 = vpack.c.bf16 %v416_v20, %v412_v16  ;;  %v418_v23 = vpop.f32.mrb[15].mxu0  ;;  %v8032_v24 = vpack.c.bf16 %v516_v21, %v512_v17  ;;  %v518_v25 = vpop.f32.mrb[15].mxu1 }
 0x148   :  { %v8034_v26 = vpack.c.bf16 %v418_v23, %v414_v18  ;;  %v8036_v27 = vpack.c.bf16 %v518_v25, %v514_v19 }
 0x149   :  { %10302 = vst [vmem:[#allocation19_spill] sm:$0xff] %v8030_v22  ;;  %10303 = vst [vmem:[#allocation20_spill] sm:$0xff] %v8032_v24 }
 0x14a   :  { %10304 = vst [vmem:[#allocation21_spill] sm:$0xff] %v8036_v27  ;;  %7154 = vmatprep.subr.msk.bf16.mxu1 %vm808_vm0, %v8034_v26  ;;  %v843_v28 = vsel %vm808_vm0, %v8034_v26, 0 }
 0x14b   :  { %6358 = vmatpush3.bf16.xpose.msra.mxu1 %v843_v28 }
 0x14c   :  { %v422_v29 = vpop.f32.mrb[16].mxu0  ;;  %v522_v30 = vpop.f32.mrb[16].mxu1 }
 0x14d   :  { %v424_v31 = vpop.f32.mrb[17].mxu0  ;;  %v524_v32 = vpop.f32.mrb[17].mxu1 }
 0x14e   :  { %v426_v33 = vpop.f32.mrb[18].mxu0  ;;  %v526_v34 = vpop.f32.mrb[18].mxu1 }
 0x14f   :  { %v8042_v35 = vpack.c.bf16 %v426_v33, %v422_v29  ;;  %v428_v36 = vpop.f32.mrb[19].mxu0  ;;  %v8044_v37 = vpack.c.bf16 %v526_v34, %v522_v30  ;;  %v528_v38 = vpop.f32.mrb[19].mxu1 }
 0x150   :  { %v8046_v39 = vpack.c.bf16 %v428_v36, %v424_v31  ;;  %v8048_v40 = vpack.c.bf16 %v528_v38, %v524_v32 }
 0x151   :  { %10305 = vst [vmem:[#allocation22_spill] sm:$0xff] %v8042_v35  ;;  %10306 = vst [vmem:[#allocation23_spill] sm:$0xff] %v8044_v37 }
 0x152   :  { %10307 = vst [vmem:[#allocation24_spill] sm:$0xff] %v8046_v39  ;;  %10308 = vst [vmem:[#allocation25_spill] sm:$0xff] %v8048_v40  ;;  %7155 = vmatprep.subr.msk.bf16.mxu1 %vm808_vm0, %v8046_v39  ;;  %v846_v41 = vsel %vm808_vm0, %v8046_v39, 0 }
 0x153   :  { %6360 = vmatpush3.bf16.xpose.msra.mxu1 %v846_v41 }
 0x154   :  { %v432_v42 = vpop.f32.mrb[20].mxu0  ;;  %v532_v43 = vpop.f32.mrb[20].mxu1 }
 0x155   :  { %v434_v44 = vpop.f32.mrb[21].mxu0  ;;  %v534_v45 = vpop.f32.mrb[21].mxu1 }
 0x156   :  { %v436_v46 = vpop.f32.mrb[22].mxu0  ;;  %v536_v48 = vpop.f32.mrb[22].mxu1 }
 0x157   :  { %v8054_v50 = vpack.c.bf16 %v436_v46, %v432_v42  ;;  %v438_v53 = vpop.f32.mrb[23].mxu0  ;;  %v8056_v54 = vpack.c.bf16 %v536_v48, %v532_v43  ;;  %v538_v55 = vpop.f32.mrb[23].mxu1 }
 0x158   :  { %v8058_v56 = vpack.c.bf16 %v438_v53, %v434_v44  ;;  %v8060_v57 = vpack.c.bf16 %v538_v55, %v534_v45 }
 0x159   :  { %10309 = vst [vmem:[#allocation26_spill] sm:$0xff] %v8054_v50  ;;  %10310 = vst [vmem:[#allocation27_spill] sm:$0xff] %v8056_v54 }
 0x15a   :  { %10311 = vst [vmem:[#allocation28_spill] sm:$0xff] %v8058_v56  ;;  %10312 = vst [vmem:[#allocation29_spill] sm:$0xff] %v8060_v57  ;;  %7156 = vmatprep.subr.msk.bf16.mxu1 %vm808_vm0, %v8058_v56  ;;  %v849_v58 = vsel %vm808_vm0, %v8058_v56, 0 }
 0x15b   :  { %6362 = vmatpush3.bf16.xpose.msra.mxu1 %v849_v58 }
 0x15c   :  { %v442_v59 = vpop.f32.mrb[24].mxu0  ;;  %v6321_v61 = vpop.f32.mrb[24].mxu1 }
 0x15d   :  { %v444_v63 = vpop.f32.mrb[25].mxu0  ;;  %v575_v2 = vpop.f32.mrb[25].mxu1 }
 0x15e   :  { %v446_v3 = vpop.f32.mrb[26].mxu0  ;;  %v6322_v4 = vpop.f32.mrb[26].mxu1 }
 0x15f   :  { %v8066_v5 = vpack.c.bf16 %v446_v3, %v442_v59  ;;  %v448_v6 = vpop.f32.mrb[27].mxu0  ;;  %v8068_v7 = vpack.c.bf16 %v6322_v4, %v6321_v61  ;;  %v578_v8 = vpop.f32.mrb[27].mxu1 }
 0x160   :  { %v8070_v10 = vpack.c.bf16 %v448_v6, %v444_v63  ;;  %v8072_v12 = vpack.c.bf16 %v578_v8, %v575_v2 }
 0x161   :  { %10313 = vst [vmem:[#allocation30_spill] sm:$0xff] %v8066_v5  ;;  %10314 = vst [vmem:[#allocation31_spill] sm:$0xff] %v8068_v7 }
 0x162   :  { %10315 = vst [vmem:[#allocation32_spill] sm:$0xff] %v8070_v10  ;;  %10316 = vst [vmem:[#allocation33_spill] sm:$0xff] %v8072_v12  ;;  %7157 = vmatprep.subr.msk.bf16.mxu1 %vm808_vm0, %v8070_v10  ;;  %v852_v15 = vsel %vm808_vm0, %v8070_v10, 0 }
 0x163   :  { %6364 = vmatpush3.bf16.xpose.msra.mxu1 %v852_v15 }
 0x164   :  { %v452_v16 = vpop.f32.mrb[28].mxu0  ;;  %v6325_v17 = vpop.f32.mrb[28].mxu1 }
 0x165   :  { %v454_v18 = vpop.f32.mrb[29].mxu0  ;;  %v591_v19 = vpop.f32.mrb[29].mxu1 }
 0x166   :  { %v456_v20 = vpop.f32.mrb[30].mxu0  ;;  %v6326_v21 = vpop.f32.mrb[30].mxu1 }
 0x167   :  { %v8078_v23 = vpack.c.bf16 %v456_v20, %v452_v16  ;;  %v458_v25 = vpop.f32.mrb[31].mxu0  ;;  %v8080_v28 = vpack.c.bf16 %v6326_v21, %v6325_v17  ;;  %v594_v29 = vpop.f32.mrb[31].mxu1 }
 0x168   :  { %v8082_v30 = vpack.c.bf16 %v458_v25, %v454_v18  ;;  %v8084_v31 = vpack.c.bf16 %v594_v29, %v591_v19 }
 0x169   :  { %10317 = vst [vmem:[#allocation34_spill] sm:$0xff] %v8078_v23  ;;  %10318 = vst [vmem:[#allocation35_spill] sm:$0xff] %v8080_v28 }
 0x16a   :  { %10319 = vst [vmem:[#allocation36_spill] sm:$0xff] %v8082_v30  ;;  %10320 = vst [vmem:[#allocation37_spill] sm:$0xff] %v8084_v31  ;;  %7158 = vmatprep.subr.msk.bf16.mxu1 %vm808_vm0, %v8082_v30  ;;  %v855_v32 = vsel %vm808_vm0, %v8082_v30, 0 }
 0x16b   :  { %6366 = vmatpush3.bf16.xpose.msra.mxu1 %v855_v32 }
 0x16c   :  { %v462_v33 = vpop.f32.mrb[32].mxu0  ;;  %v6329_v34 = vpop.f32.mrb[32].mxu1  ;;  %6415 = vmatprep.subr.bf16.mxu1 %v8072_v12 }
 0x16d   :  { %v464_v36 = vpop.f32.mrb[33].mxu0  ;;  %v607_v38 = vpop.f32.mrb[33].mxu1 }
 0x16e   :  { %v466_v41 = vpop.f32.mrb[34].mxu0  ;;  %v6330_v42 = vpop.f32.mrb[34].mxu1 }
 0x16f   :  { %v8091_v43 = vpack.c.bf16 %v466_v41, %v462_v33  ;;  %v468_v44 = vpop.f32.mrb[35].mxu0  ;;  %v8093_v45 = vpack.c.bf16 %v6330_v42, %v6329_v34  ;;  %v610_v46 = vpop.f32.mrb[35].mxu1  ;;  %v985_v33 = vsel %vm808_vm0, %v7998_v52, 0 }
 0x170   :  { %v8095_v48 = vpack.c.bf16 %v468_v44, %v464_v36  ;;  %v8097_v53 = vpack.c.bf16 %v610_v46, %v607_v38  ;;  %v988_v46 = vsel %vm808_vm0, %v8012_v1, 0 }
 0x171   :  { %10321 = vst [vmem:[#allocation38_spill] sm:$0xff] %v8091_v43  ;;  %10322 = vst [vmem:[#allocation39_spill] sm:$0xff] %v8093_v45  ;;  %6399 = vmatprep.mubr.msk.bf16.mxu0 %vm808_vm0, %v8091_v43 }
 0x172   :  { %10323 = vst [vmem:[#allocation40_spill] sm:$0xff] %v8097_v53  ;;  %6368 = vmatmul.mubr.msk.bf16.vlgmr.msra.gmra.mrb[56].mxu1 %vm808_vm0, %v8006_v60  ;;  %7159 = vmatprep.subr.msk.bf16.mxu0 %vm808_vm0, %v8095_v48  ;;  %v979_v55 = vsel %vm808_vm0, %v8095_v48, 0 }
 0x173   :  { %6371 = vmatprep.mubr.msk.bf16.mxu1 %vm808_vm0, %v8018_v9  ;;  %6384 = vmatpush3.bf16.xpose.msra.mxu0 %v979_v55 }
 0x174   :  { %v472_v58 = vpop.f32.mrb[36].mxu0  ;;  %v6333_v59 = vpop.f32.mrb[36].mxu1  ;;  %6416 = vmatpush3.bf16.msra.mxu1 %v8072_v12 }
 0x175   :  { %v474_v61 = vpop.f32.mrb[37].mxu0  ;;  %v623_v63 = vpop.f32.mrb[37].mxu1  ;;  %6417 = vmatprep.subr.bf16.mxu1 %v8068_v7 }
 0x176   :  { %v476_v2 = vpop.f32.mrb[38].mxu0  ;;  %v6334_v3 = vpop.f32.mrb[38].mxu1 }
 0x177   :  { %v8111_v4 = vpack.c.bf16 %v476_v2, %v472_v58  ;;  %v478_v6 = vpop.f32.mrb[39].mxu0  ;;  %v8113_v8 = vpack.c.bf16 %v6334_v3, %v6333_v59  ;;  %v626_v15 = vpop.f32.mrb[39].mxu1  ;;  %v991_v3 = vsel %vm808_vm0, %v8024_v14, 0 }
 0x178   :  { %v8115_v16 = vpack.c.bf16 %v478_v6, %v474_v61  ;;  %v8117_v17 = vpack.c.bf16 %v626_v15, %v623_v63  ;;  %6418 = vmatpush3.bf16.msra.mxu1 %v8068_v7 }
 0x179   :  { %10324 = vst [vmem:[#allocation41_spill] sm:$0xff] %v8111_v4  ;;  %10325 = vst [vmem:[#allocation42_spill] sm:$0xff] %v8113_v8  ;;  %6419 = vmatprep.subr.bf16.mxu1 %v8084_v31 }
 0x17a   :  { %10326 = vst [vmem:[#allocation43_spill] sm:$0xff] %v8117_v17  ;;  %6372 = vmatmul.mubr.msk.bf16.gmra.mrb[60].mxu1 %vm808_vm0, %v8030_v22  ;;  %7160 = vmatprep.subr.msk.bf16.mxu0 %vm808_vm0, %v8115_v16  ;;  %v982_v18 = vsel %vm808_vm0, %v8115_v16, 0 }
 0x17b   :  { %6375 = vmatprep.mubr.msk.bf16.mxu1 %vm808_vm0, %v8042_v35  ;;  %6386 = vmatpush3.bf16.xpose.msra.mxu0 %v982_v18 }
 0x17c   :  { %7161 = vmatprep.subr.msk.bf16.mxu0 %vm808_vm0, %v7998_v52  ;;  %v6337_v19 = vpop.f32.mrb[40].mxu1  ;;  %6420 = vmatpush3.bf16.msra.mxu1 %v8084_v31 }
 0x17d   :  { %v639_v20 = vpop.f32.mrb[41].mxu1  ;;  %6421 = vmatprep.subr.bf16.mxu1 %v8080_v28 }
 0x17e   :  { %v6338_v21 = vpop.f32.mrb[42].mxu1 }
 0x17f   :  { %v8133_v25 = vpack.c.bf16 %v6338_v21, %v6337_v19  ;;  %v642_v29 = vpop.f32.mrb[43].mxu1 }
 0x180   :  { %v8135_v32 = vpack.c.bf16 %v642_v29, %v639_v20  ;;  %6422 = vmatpush3.bf16.msra.mxu1 %v8080_v28  ;;  %v994_v29 = vsel %vm808_vm0, %v8036_v27, 0 }
 0x181   :  { %10327 = vst [vmem:[#allocation44_spill] sm:$0xff] %v8133_v25  ;;  %6423 = vmatprep.subr.bf16.mxu1 %v8097_v53 }
 0x182   :  { %10328 = vst [vmem:[#allocation45_spill] sm:$0xff] %v8135_v32  ;;  %6376 = vmatmul.mubr.msk.bf16.gmra.mrb[64].mxu1 %vm808_vm0, %v8054_v50 }
 0x183   :  { %6379 = vmatprep.mubr.msk.bf16.mxu1 %vm808_vm0, %v8066_v5  ;;  %6388 = vmatpush3.bf16.xpose.msra.mxu0 %v985_v33  ;;  %v997_v33 = vsel %vm808_vm0, %v8048_v40, 0 }
 0x184   :  { %7162 = vmatprep.subr.msk.bf16.mxu0 %vm808_vm0, %v8012_v1  ;;  %v6341_v34 = vpop.f32.mrb[44].mxu1  ;;  %6424 = vmatpush3.bf16.msra.mxu1 %v8097_v53 }
 0x185   :  { %v655_v36 = vpop.f32.mrb[45].mxu1  ;;  %6425 = vmatprep.subr.bf16.mxu1 %v8093_v45 }
 0x186   :  { %v6342_v38 = vpop.f32.mrb[46].mxu1 }
 0x187   :  { %v8149_v41 = vpack.c.bf16 %v6342_v38, %v6341_v34  ;;  %v658_v42 = vpop.f32.mrb[47].mxu1  ;;  %v1000_v34 = vsel %vm808_vm0, %v8060_v57, 0 }
 0x188   :  { %v8151_v44 = vpack.c.bf16 %v658_v42, %v655_v36  ;;  %6426 = vmatpush3.bf16.msra.mxu1 %v8093_v45  ;;  %v750_v36 = vlaneseq }
 0x189   :  { %10329 = vst [vmem:[#allocation46_spill] sm:$0xff] %v8149_v41  ;;  %6427 = vmatprep.subr.bf16.mxu1 %v8117_v17 }
 0x18a   :  { %10330 = vst [vmem:[#allocation47_spill] sm:$0xff] %v8151_v44  ;;  %6380 = vmatmul.mubr.msk.bf16.gmra.mrb[68].mxu1 %vm808_vm0, %v8078_v23  ;;  %v8201_v38 = vshrl.u32 %v750_v36, 7 }
 0x18b   :  { %6390 = vmatpush3.bf16.xpose.msra.mxu0 %v988_v46  ;;  %v8204_v46 = vand.u32 127, %v750_v36 }
 0x18c   :  { %7163 = vmatprep.subr.msk.bf16.mxu0 %vm808_vm0, %v8024_v14  ;;  %v6345_v55 = vpop.f32.mrb[48].mxu1  ;;  %6428 = vmatpush3.bf16.msra.mxu1 %v8117_v17  ;;  %v753_v42 = vadd.s32 16, %v8201_v38  ;;  %v756_v36 = vadd.s32 40, %v8201_v38  ;;  %v760_v17 = vadd.s32 72, %v8201_v38  ;;  %v761_v28 = vadd.s32 80, %v8201_v38 }
 0x18d   :  { %v671_v58 = vpop.f32.mrb[49].mxu1  ;;  %6429 = vmatprep.subr.bf16.mxu1 %v8113_v8  ;;  %vm769_vm2 = vcmp.le.s32.totalorder %v8204_v46, %v8201_v38  ;;  %v762_v7 = vadd.s32 88, %v8201_v38  ;;  %v765_v44 = vadd.s32 112, %v8201_v38 }
 0x18e   :  { %v6346_v59 = vpop.f32.mrb[50].mxu1  ;;  %vm771_vm1 = vcmp.le.s32.totalorder %v8204_v46, %v753_v42  ;;  %vm774_vm6 = vcmp.le.s32.totalorder %v8204_v46, %v756_v36  ;;  %vm778_vm10 = vcmp.le.s32.totalorder %v8204_v46, %v760_v17  ;;  %vm779_vm11 = vcmp.le.s32.totalorder %v8204_v46, %v761_v28 }
 0x18f   :  { %v8163_v61 = vpack.c.bf16 %v6346_v59, %v6345_v55  ;;  %v674_v63 = vpop.f32.mrb[51].mxu1  ;;  %v754_v55 = vadd.s32 24, %v8201_v38  ;;  %v7897_v59 = vmov -1e+30   ;;  %vm780_vm12 = vcmp.le.s32.totalorder %v8204_v46, %v762_v7 }
 0x190   :  { %v8165_v2 = vpack.c.bf16 %v674_v63, %v671_v58  ;;  %6430 = vmatpush3.bf16.msra.mxu1 %v8113_v8  ;;  %v752_v58 = vadd.s32 8, %v8201_v38  ;;  %v8212_v63 = vsel %vm771_vm1, 0.0, %v7897_v59  ;;  %v758_v8 = vadd.s32 56, %v8201_v38 }
 0x191   :  { %10331 = vst [vmem:[#allocation48_spill] sm:$0xff] %v8163_v61  ;;  %6447 = vmatprep.subr.bf16.mxu1 %v8135_v32  ;;  %10335 = vst [vmem:[#allocation52_spill] sm:$0xff] %v8212_v63  ;;  %vm772_vm3 = vcmp.le.s32.totalorder %v8204_v46, %v754_v55  ;;  %v8297_v28 = vsel %vm779_vm11, 0.0, %v7897_v59  ;;  %v8306_v7 = vsel %vm780_vm12, 0.0, %v7897_v59  ;;  %vm783_vm15 = vcmp.le.s32.totalorder %v8204_v46, %v765_v44 }
 0x192   :  { %10332 = vst [vmem:[#allocation49_spill] sm:$0xff] %v8165_v2  ;;  %vm770_vm4 = vcmp.le.s32.totalorder %v8204_v46, %v752_v58  ;;  %v757_v58 = vadd.s32 48, %v8201_v38  ;;  %vm776_vm8 = vcmp.le.s32.totalorder %v8204_v46, %v758_v8  ;;  %10345 = vst [vmem:[#allocation62_spill] sm:$0xff] %v8297_v28 }
 0x193   :  { %6392 = vmatpush3.bf16.xpose.msra.mxu0 %v991_v3  ;;  %v8215_v3 = vsel %vm769_vm2, 0.0, %v7897_v59  ;;  %v8232_v42 = vsel %vm770_vm4, 0.0, %v7897_v59  ;;  %10346 = vst [vmem:[#allocation63_spill] sm:$0xff] %v8306_v7 }
 0x194   :  { %7164 = vmatprep.subr.msk.bf16.mxu0 %vm808_vm0, %v8036_v27  ;;  %v6349_v6 = vpop.f32.mrb[52].mxu1  ;;  %10336 = vst [vmem:[#allocation53_spill] sm:$0xff] %v8215_v3  ;;  %10338 = vst [vmem:[#allocation55_spill] sm:$0xff] %v8232_v42  ;;  %vm775_vm7 = vcmp.le.s32.totalorder %v8204_v46, %v757_v58 }
 0x195   :  { %v687_v15 = vpop.f32.mrb[53].mxu1  ;;  %v8261_v53 = vsel %vm775_vm7, 0.0, %v7897_v59 }
 0x196   :  { %v6350_v18 = vpop.f32.mrb[54].mxu1  ;;  %10341 = vst [vmem:[#allocation58_spill] sm:$0xff] %v8261_v53 }
 0x197   :  { %v8173_v19 = vpack.c.bf16 %v6350_v18, %v6349_v6  ;;  %v690_v20 = vpop.f32.mrb[55].mxu1 }
 0x198   :  { %v8175_v21 = vpack.c.bf16 %v690_v20, %v687_v15  ;;  %v755_v15 = vadd.s32 32, %v8201_v38 }
 0x199   :  { %10333 = vst [vmem:[#allocation50_spill] sm:$0xff] %v8173_v19 }
 0x19a   :  { %10334 = vst [vmem:[#allocation51_spill] sm:$0xff] %v8175_v21  ;;  %vm773_vm5 = vcmp.le.s32.totalorder %v8204_v46, %v755_v15  ;;  %v759_v15 = vadd.s32 64, %v8201_v38 }
 0x19b   :  { %6394 = vmatpush3.bf16.xpose.msra.mxu0 %v994_v29  ;;  %v8247_v19 = vsel %vm773_vm5, 0.0, %v7897_v59 }
 0x19c   :  { %7165 = vmatprep.subr.msk.bf16.mxu0 %vm808_vm0, %v8048_v40  ;;  %10339 = vst [vmem:[#allocation56_spill] sm:$0xff] %v8247_v19  ;;  %vm777_vm9 = vcmp.le.s32.totalorder %v8204_v46, %v759_v15 }
 0x1a3   :  { %6396 = vmatpush3.bf16.xpose.msra.mxu0 %v997_v33  ;;  %v8227_v33 = vsel %vm772_vm3, 0.0, %v7897_v59 }
 0x1a4   :  { %7166 = vmatprep.subr.msk.bf16.mxu0 %vm808_vm0, %v8060_v57  ;;  %10337 = vst [vmem:[#allocation54_spill] sm:$0xff] %v8227_v33 }
 0x1ab   :  { %6398 = vmatpush3.bf16.xpose.msra.mxu0 %v1000_v34 }
 0x1b2   :  { %6400 = vmatmul.mubr.msk.bf16.vlgmr.msra.gmra.mrb[40].mxu0 %vm808_vm0, %v8111_v4 }
 0x1b3   :  { %6403 = vmatprep.mubr.msk.bf16.mxu0 %vm808_vm0, %v7994_v49 }
 0x1ba   :  { %6404 = vmatmul.mubr.msk.bf16.gmra.mrb[44].mxu0 %vm808_vm0, %v8008_v62 }
 0x1bb   :  { %6407 = vmatprep.mubr.msk.bf16.mxu0 %vm808_vm0, %v8020_v11 }
 0x1c2   :  { %6408 = vmatmul.mubr.msk.bf16.gmra.mrb[48].mxu0 %vm808_vm0, %v8032_v24 }
 0x1c3   :  { %6411 = vmatprep.mubr.msk.bf16.mxu0 %vm808_vm0, %v8044_v37  ;;  %v766_v37 = vadd.s32 120, %v8201_v38 }
 0x1c5   :  { %vm784_vm1 = vcmp.le.s32.totalorder %v8204_v46, %v766_v37 }
 0x1c6   :  { %v8338_v32 = vsel %vm784_vm1, 0.0, %v7897_v59 }
 0x1c7   :  { %10350 = vst [vmem:[#allocation67_spill] sm:$0xff] %v8338_v32 }
 0x1ca   :  { %6412 = vmatmul.mubr.msk.bf16.gmra.mrb[52].mxu0 %vm808_vm0, %v8056_v54  ;;  %v8288_v54 = vsel %vm778_vm10, 0.0, %v7897_v59 }
 0x1cb   :  { %10344 = vst [vmem:[#allocation61_spill] sm:$0xff] %v8288_v54 }
 0x245   :  { %v6369_v6 = vpop.f32.mrb[56].mxu1 }
 0x246   :  { %v8221_v18 = vadd.f32 %v6369_v6, %v8212_v63  ;;  %v891_v20 = vpop.f32.mrb[57].mxu1 }
 0x247   :  { %v8224_v29 = vadd.f32 %v891_v20, %v8215_v3  ;;  %v6370_v34 = vpop.f32.mrb[58].mxu1 }
 0x248   :  { %1103 = vmax.xlane.f32.xlu1 %v8221_v18  ;;  %v894_v55 = vpop.f32.mrb[59].mxu1  ;;  %v8238_v6 = vadd.f32 %v6370_v34, %v8227_v33 }
 0x249   :  { %1099 = vmax.xlane.f32.xlu0 %v8224_v29  ;;  %v8241_v20 = vadd.f32 %v894_v55, %v8232_v42  ;;  %v8253_v55 = vsel %vm774_vm6, 0.0, %v7897_v59 }
 0x24a   :  { %10340 = vst [vmem:[#allocation57_spill] sm:$0xff] %v8253_v55 }
 0x24c   :  { %1105 = vmax.xlane.f32.xlu1 %v8238_v6 }
 0x24d   :  { %v6373_v45 = vpop.f32.mrb[60].mxu1  ;;  %1101 = vmax.xlane.f32.xlu0 %v8241_v20 }
 0x24e   :  { %v907_v34 = vpop.f32.mrb[61].mxu1  ;;  %v8273_v8 = vadd.f32 %v6373_v45, %v8261_v53  ;;  %v763_v45 = vadd.s32 96, %v8201_v38 }
 0x24f   :  { %v8256_v21 = vadd.f32 %v907_v34, %v8247_v19  ;;  %v6374_v36 = vpop.f32.mrb[62].mxu1  ;;  %v8270_v34 = vsel %vm776_vm8, 0.0, %v7897_v59 }
 0x250   :  { %v910_v58 = vpop.f32.mrb[63].mxu1  ;;  %10342 = vst [vmem:[#allocation59_spill] sm:$0xff] %v8270_v34  ;;  %v8282_v2 = vadd.f32 %v6374_v36, %v8270_v34  ;;  %v764_v36 = vadd.s32 104, %v8201_v38  ;;  %vm781_vm13 = vcmp.le.s32.totalorder %v8204_v46, %v763_v45 }
 0x251   :  { %v8264_v61 = vadd.f32 %v910_v58, %v8253_v55  ;;  %1107 = vmax.xlane.f32.xlu0 %v8256_v21  ;;  %v8279_v58 = vsel %vm777_vm9, 0.0, %v7897_v59 }
 0x252   :  { %10343 = vst [vmem:[#allocation60_spill] sm:$0xff] %v8279_v58  ;;  %vm782_vm14 = vcmp.le.s32.totalorder %v8204_v46, %v764_v36 }
 0x253   :  { %1109 = vmax.xlane.f32.xlu1 %v8264_v61 }
 0x255   :  { %v6377_v15 = vpop.f32.mrb[64].mxu1  ;;  %1111 = vmax.xlane.f32.xlu0 %v8273_v8 }
 0x256   :  { %v923_v31 = vpop.f32.mrb[65].mxu1 }
 0x257   :  { %v8291_v41 = vadd.f32 %v923_v31, %v8279_v58  ;;  %v6378_v17 = vpop.f32.mrb[66].mxu1  ;;  %1113 = vmax.xlane.f32.xlu1 %v8282_v2  ;;  %v8309_v31 = vadd.f32 %v6377_v15, %v8297_v28  ;;  %v8323_v15 = vsel %vm782_vm14, 0.0, %v7897_v59 }
 0x258   :  { %v926_v12 = vpop.f32.mrb[67].mxu1  ;;  %v8318_v62 = vadd.f32 %v6378_v17, %v8306_v7  ;;  %10348 = vst [vmem:[#allocation65_spill] sm:$0xff] %v8323_v15  ;;  %v8331_v17 = vsel %vm783_vm15, 0.0, %v7897_v59 }
 0x259   :  { %v8300_v24 = vadd.f32 %v926_v12, %v8288_v54  ;;  %1115 = vmax.xlane.f32.xlu0 %v8291_v41  ;;  %v8315_v12 = vsel %vm781_vm13, 0.0, %v7897_v59  ;;  %10349 = vst [vmem:[#allocation66_spill] sm:$0xff] %v8331_v17 }
 0x25a   :  { %10347 = vst [vmem:[#allocation64_spill] sm:$0xff] %v8315_v12 }
 0x25b   :  { %1117 = vmax.xlane.f32.xlu1 %v8300_v24 }
 0x25d   :  { %v6381_v45 = vpop.f32.mrb[68].mxu1  ;;  %1119 = vmax.xlane.f32.xlu0 %v8309_v31 }
 0x25e   :  { %v939_v25 = vpop.f32.mrb[69].mxu1 }
 0x25f   :  { %v8326_v11 = vadd.f32 %v939_v25, %v8315_v12  ;;  %v6382_v38 = vpop.f32.mrb[70].mxu1  ;;  %1121 = vmax.xlane.f32.xlu1 %v8318_v62  ;;  %v8341_v25 = vadd.f32 %v6381_v45, %v8331_v17 }
 0x260   :  { %v942_v36 = vpop.f32.mrb[71].mxu1  ;;  %v8345_v37 = vadd.f32 %v6382_v38, %v8338_v32 }
 0x261   :  { %v8334_v44 = vadd.f32 %v942_v36, %v8323_v15  ;;  %1123 = vmax.xlane.f32.xlu0 %v8326_v11 }
 0x263   :  { %1125 = vmax.xlane.f32.xlu1 %v8334_v44 }
 0x265   :  { %1127 = vmax.xlane.f32.xlu0 %v8341_v25 }
 0x267   :  { %1129 = vmax.xlane.f32.xlu1 %v8345_v37 }
 0x285   :  { %v6401_v46 = vpop.f32.mrb[40].mxu0 }
 0x286   :  { %v1036_v36 = vpop.f32.mrb[41].mxu0  ;;  %v8357_v45 = vadd.f32 %v6401_v46, %v8212_v63 }
 0x287   :  { %v8350_v4 = vadd.f32 %v1036_v36, %v8215_v3  ;;  %v6402_v49 = vpop.f32.mrb[42].mxu0 }
 0x288   :  { %v1039_v59 = vpop.f32.mrb[43].mxu0  ;;  %v8361_v38 = vadd.f32 %v6402_v49, %v8227_v33 }
 0x289   :  { %v8353_v57 = vadd.f32 %v1039_v59, %v8232_v42  ;;  %1131 = vmax.xlane.f32.xlu0 %v8350_v4 }
 0x28b   :  { %1133 = vmax.xlane.f32.xlu1 %v8353_v57 }
 0x28d   :  { %v6405_v43 = vpop.f32.mrb[44].mxu0  ;;  %1135 = vmax.xlane.f32.xlu0 %v8357_v45 }
 0x28e   :  { %v1052_v36 = vpop.f32.mrb[45].mxu0  ;;  %v8373_v46 = vadd.f32 %v6405_v43, %v8261_v53 }
 0x28f   :  { %v8365_v3 = vadd.f32 %v1052_v36, %v8247_v19  ;;  %v6406_v5 = vpop.f32.mrb[46].mxu0  ;;  %1137 = vmax.xlane.f32.xlu1 %v8361_v38 }
 0x290   :  { %v1055_v59 = vpop.f32.mrb[47].mxu0  ;;  %v8377_v49 = vadd.f32 %v6406_v5, %v8270_v34 }
 0x291   :  { %v8369_v42 = vadd.f32 %v1055_v59, %v8253_v55  ;;  %1139 = vmax.xlane.f32.xlu0 %v8365_v3 }
 0x293   :  { %1141 = vmax.xlane.f32.xlu1 %v8369_v42 }
 0x295   :  { %v6409_v33 = vpop.f32.mrb[48].mxu0  ;;  %1143 = vmax.xlane.f32.xlu0 %v8373_v46 }
 0x296   :  { %v1068_v36 = vpop.f32.mrb[49].mxu0  ;;  %v8389_v43 = vadd.f32 %v6409_v33, %v8297_v28 }
 0x297   :  { %v8381_v19 = vadd.f32 %v1068_v36, %v8279_v58  ;;  %v6410_v63 = vpop.f32.mrb[50].mxu0  ;;  %1145 = vmax.xlane.f32.xlu1 %v8377_v49 }
 0x298   :  { %v1071_v59 = vpop.f32.mrb[51].mxu0  ;;  %v8393_v5 = vadd.f32 %v6410_v63, %v8306_v7 }
 0x299   :  { %v8385_v55 = vadd.f32 %v1071_v59, %v8288_v54  ;;  %1147 = vmax.xlane.f32.xlu0 %v8381_v19 }
 0x29b   :  { %1149 = vmax.xlane.f32.xlu1 %v8385_v55 }
 0x29d   :  { %v6413_v53 = vpop.f32.mrb[52].mxu0  ;;  %1151 = vmax.xlane.f32.xlu0 %v8389_v43 }
 0x29e   :  { %v1084_v36 = vpop.f32.mrb[53].mxu0  ;;  %v8405_v33 = vadd.f32 %v6413_v53, %v8331_v17 }
 0x29f   :  { %v8397_v58 = vadd.f32 %v1084_v36, %v8315_v12  ;;  %v6414_v34 = vpop.f32.mrb[54].mxu0  ;;  %1153 = vmax.xlane.f32.xlu1 %v8393_v5 }
 0x2a0   :  { %v1087_v59 = vpop.f32.mrb[55].mxu0  ;;  %v8409_v63 = vadd.f32 %v6414_v34, %v8338_v32 }
 0x2a1   :  { %v8401_v54 = vadd.f32 %v1087_v59, %v8323_v15  ;;  %1155 = vmax.xlane.f32.xlu0 %v8397_v58 }
 0x2a3   :  { %1157 = vmax.xlane.f32.xlu1 %v8401_v54 }
 0x2a5   :  { %1159 = vmax.xlane.f32.xlu0 %v8405_v33 }
 0x2a7   :  { %1161 = vmax.xlane.f32.xlu1 %v8409_v63 }
 0x2d5   :  { %v1104_v36 = vpop.xlane.xlu1 %1103 }
 0x2d6   :  { %v1165_v12 = vsub.f32 %v8221_v18, %v1104_v36  ;;  %v1100_v28 = vpop.xlane.xlu0 %1099 }
 0x2d7   :  { %v1163_v59 = vsub.f32 %v8224_v29, %v1100_v28 }
 0x2d8   :  { %v1199_v23 = vmul.f32 1.442695, %v1165_v12 }
 0x2d9   :  { %v1195_v15 = vmul.f32 1.442695, %v1163_v59  ;;  %v1106_v7 = vpop.xlane.xlu1 %1105 }
 0x2da   :  { %v1166_v53 = vsub.f32 %v8238_v6, %v1106_v7  ;;  %v1102_v17 = vpop.xlane.xlu0 %1101 }
 0x2db   :  { %7283 = vpow2.f32 %v1195_v15  ;;  %v1164_v34 = vsub.f32 %v8241_v20, %v1102_v17 }
 0x2dc   :  { %7285 = vpow2.f32 %v1199_v23  ;;  %v1201_v50 = vmul.f32 1.442695, %v1166_v53 }
 0x2dd   :  { %v1197_v32 = vmul.f32 1.442695, %v1164_v34 }
 0x2de   :  { %v1108_v40 = vpop.xlane.xlu0 %1107 }
 0x2df   :  { %7287 = vpow2.f32 %v1197_v32  ;;  %v1167_v27 = vsub.f32 %v8256_v21, %v1108_v40 }
 0x2e0   :  { %v1110_v18 = vpop.xlane.xlu1 %1109  ;;  %7289 = vpow2.f32 %v1201_v50 }
 0x2e1   :  { %v1203_v36 = vmul.f32 1.442695, %v1167_v27  ;;  %v1168_v29 = vsub.f32 %v8264_v61, %v1110_v18 }
 0x2e2   :  { %v1112_v28 = vpop.xlane.xlu0 %1111 }
 0x2e3   :  { %7291 = vpow2.f32 %v1203_v36  ;;  %v1205_v12 = vmul.f32 1.442695, %v1168_v29  ;;  %v1169_v6 = vsub.f32 %v8273_v8, %v1112_v28 }
 0x2e4   :  { %v1114_v7 = vpop.xlane.xlu1 %1113 }
 0x2e5   :  { %v8420_v15 = vpop.eup %7283  ;;  %v1207_v20 = vmul.f32 1.442695, %v1169_v6  ;;  %v1170_v23 = vsub.f32 %v8282_v2, %v1114_v7  ;;  %7293 = vpow2.f32 %v1205_v12 }
 0x2e6   :  { %v1116_v32 = vpop.xlane.xlu0 %1115  ;;  %1259 = vadd.xlane.f32.xlu0 %v8420_v15  ;;  %v8425_v50 = vpop.eup %7285 }
 0x2e7   :  { %7295 = vpow2.f32 %v1207_v20  ;;  %v1209_v27 = vmul.f32 1.442695, %v1170_v23  ;;  %v1171_v40 = vsub.f32 %v8291_v41, %v1116_v32 }
 0x2e8   :  { %v1118_v61 = vpop.xlane.xlu1 %1117 }
 0x2e9   :  { %v8427_v21 = vpop.eup %7287  ;;  %v1211_v8 = vmul.f32 1.442695, %v1171_v40  ;;  %v1172_v17 = vsub.f32 %v8300_v24, %v1118_v61  ;;  %7297 = vpow2.f32 %v1209_v27 }
 0x2ea   :  { %v1120_v59 = vpop.xlane.xlu0 %1119  ;;  %1261 = vadd.xlane.f32.xlu1 %v8427_v21  ;;  %1263 = vadd.xlane.f32.xlu0 %v8425_v50  ;;  %v8433_v34 = vpop.eup %7289 }
 0x2eb   :  { %7299 = vpow2.f32 %v1211_v8  ;;  %v1213_v2 = vmul.f32 1.442695, %v1172_v17  ;;  %v1173_v53 = vsub.f32 %v8309_v31, %v1120_v59 }
 0x2ec   :  { %v1122_v41 = vpop.xlane.xlu1 %1121 }
 0x2ed   :  { %v8435_v18 = vpop.eup %7291  ;;  %v1215_v36 = vmul.f32 1.442695, %v1173_v53  ;;  %v1174_v29 = vsub.f32 %v8318_v62, %v1122_v41  ;;  %7301 = vpow2.f32 %v1213_v2 }
 0x2ee   :  { %v1124_v24 = vpop.xlane.xlu0 %1123  ;;  %1265 = vadd.xlane.f32.xlu1 %v8433_v34  ;;  %1267 = vadd.xlane.f32.xlu0 %v8435_v18 }
 0x2ef   :  { %7303 = vpow2.f32 %v1215_v36  ;;  %v1217_v28 = vmul.f32 1.442695, %v1174_v29  ;;  %v1175_v12 = vsub.f32 %v8326_v11, %v1124_v24  ;;  %v8441_v6 = vpop.eup %7293 }
 0x2f0   :  { %v1126_v31 = vpop.xlane.xlu1 %1125 }
 0x2f1   :  { %v8443_v7 = vpop.eup %7295  ;;  %v1219_v20 = vmul.f32 1.442695, %v1175_v12  ;;  %v1176_v23 = vsub.f32 %v8334_v44, %v1126_v31  ;;  %7305 = vpow2.f32 %v1217_v28 }
 0x2f2   :  { %v1128_v62 = vpop.xlane.xlu0 %1127  ;;  %1269 = vadd.xlane.f32.xlu1 %v8441_v6  ;;  %1271 = vadd.xlane.f32.xlu0 %v8443_v7 }
 0x2f3   :  { %7307 = vpow2.f32 %v1219_v20  ;;  %v1221_v32 = vmul.f32 1.442695, %v1176_v23  ;;  %v1177_v27 = vsub.f32 %v8341_v25, %v1128_v62  ;;  %v8449_v40 = vpop.eup %7297 }
 0x2f4   :  { %v1130_v11 = vpop.xlane.xlu1 %1129 }
 0x2f5   :  { %v8451_v61 = vpop.eup %7299  ;;  %v1223_v8 = vmul.f32 1.442695, %v1177_v27  ;;  %v1178_v17 = vsub.f32 %v8345_v37, %v1130_v11  ;;  %7309 = vpow2.f32 %v1221_v32 }
 0x2f6   :  { %1273 = vadd.xlane.f32.xlu1 %v8449_v40  ;;  %1275 = vadd.xlane.f32.xlu0 %v8451_v61 }
 0x2f7   :  { %7311 = vpow2.f32 %v1223_v8  ;;  %v1225_v44 = vmul.f32 1.442695, %v1178_v17  ;;  %v8456_v59 = vpop.eup %7301 }
 0x2f9   :  { %v8458_v2 = vpop.eup %7303  ;;  %7313 = vpow2.f32 %v1225_v44 }
 0x2fa   :  { %1277 = vadd.xlane.f32.xlu1 %v8456_v59  ;;  %1279 = vadd.xlane.f32.xlu0 %v8458_v2 }
 0x2fb   :  { %v8462_v25 = vpop.eup %7305 }
 0x2fd   :  { %v8464_v53 = vpop.eup %7307 }
 0x2fe   :  { %1281 = vadd.xlane.f32.xlu1 %v8462_v25  ;;  %1283 = vadd.xlane.f32.xlu0 %v8464_v53 }
 0x2ff   :  { %v8468_v37 = vpop.eup %7309 }
 0x301   :  { %v8470_v41 = vpop.eup %7311 }
 0x302   :  { %1285 = vadd.xlane.f32.xlu1 %v8468_v37  ;;  %1287 = vadd.xlane.f32.xlu0 %v8470_v41 }
 0x303   :  { %v8474_v36 = vpop.eup %7313 }
 0x306   :  { %1289 = vadd.xlane.f32.xlu1 %v8474_v36 }
 0x316   :  { %v1132_v29 = vpop.xlane.xlu0 %1131 }
 0x317   :  { %v1179_v24 = vsub.f32 %v8350_v4, %v1132_v29 }
 0x318   :  { %v1134_v28 = vpop.xlane.xlu1 %1133 }
 0x319   :  { %v1227_v12 = vmul.f32 1.442695, %v1179_v24  ;;  %v1180_v31 = vsub.f32 %v8353_v57, %v1134_v28 }
 0x31a   :  { %v1136_v20 = vpop.xlane.xlu0 %1135 }
 0x31b   :  { %7315 = vpow2.f32 %v1227_v12  ;;  %v1229_v23 = vmul.f32 1.442695, %v1180_v31  ;;  %v1181_v62 = vsub.f32 %v8357_v45, %v1136_v20 }
 0x31c   :  { %v1138_v32 = vpop.xlane.xlu1 %1137 }
 0x31d   :  { %7317 = vpow2.f32 %v1229_v23  ;;  %v1231_v27 = vmul.f32 1.442695, %v1181_v62  ;;  %v1182_v11 = vsub.f32 %v8361_v38, %v1138_v32 }
 0x31e   :  { %v1140_v8 = vpop.xlane.xlu0 %1139 }
 0x31f   :  { %7319 = vpow2.f32 %v1231_v27  ;;  %v1233_v17 = vmul.f32 1.442695, %v1182_v11  ;;  %v1183_v44 = vsub.f32 %v8365_v3, %v1140_v8 }
 0x320   :  { %v1142_v4 = vpop.xlane.xlu1 %1141 }
 0x321   :  { %7321 = vpow2.f32 %v1233_v17  ;;  %v1235_v29 = vmul.f32 1.442695, %v1183_v44  ;;  %v1184_v57 = vsub.f32 %v8369_v42, %v1142_v4 }
 0x322   :  { %v1144_v24 = vpop.xlane.xlu0 %1143 }
 0x323   :  { %7323 = vpow2.f32 %v1235_v29  ;;  %v1237_v28 = vmul.f32 1.442695, %v1184_v57  ;;  %v1185_v45 = vsub.f32 %v8373_v46, %v1144_v24 }
 0x324   :  { %v1146_v12 = vpop.xlane.xlu1 %1145 }
 0x325   :  { %v8484_v31 = vpop.eup %7315  ;;  %7325 = vpow2.f32 %v1237_v28  ;;  %v1239_v38 = vmul.f32 1.442695, %v1185_v45  ;;  %v1186_v20 = vsub.f32 %v8377_v49, %v1146_v12 }
 0x326   :  { %1291 = vadd.xlane.f32.xlu0 %v8484_v31  ;;  %v1148_v3 = vpop.xlane.xlu0 %1147 }
 0x327   :  { %v8488_v23 = vpop.eup %7317  ;;  %7327 = vpow2.f32 %v1239_v38  ;;  %v1241_v62 = vmul.f32 1.442695, %v1186_v20  ;;  %v1187_v42 = vsub.f32 %v8381_v19, %v1148_v3 }
 0x328   :  { %1293 = vadd.xlane.f32.xlu1 %v8488_v23  ;;  %v1150_v32 = vpop.xlane.xlu1 %1149 }
 0x329   :  { %v8492_v46 = vpop.eup %7319  ;;  %7329 = vpow2.f32 %v1241_v62  ;;  %v1243_v27 = vmul.f32 1.442695, %v1187_v42  ;;  %v1188_v11 = vsub.f32 %v8385_v55, %v1150_v32 }
 0x32a   :  { %1295 = vadd.xlane.f32.xlu0 %v8492_v46  ;;  %v1152_v49 = vpop.xlane.xlu0 %1151 }
 0x32b   :  { %v8496_v8 = vpop.eup %7321  ;;  %7331 = vpow2.f32 %v1243_v27  ;;  %v1245_v17 = vmul.f32 1.442695, %v1188_v11  ;;  %v1189_v44 = vsub.f32 %v8389_v43, %v1152_v49 }
 0x32c   :  { %1297 = vadd.xlane.f32.xlu1 %v8496_v8  ;;  %v1154_v19 = vpop.xlane.xlu1 %1153 }
 0x32d   :  { %v8500_v4 = vpop.eup %7323  ;;  %7333 = vpow2.f32 %v1245_v17  ;;  %v1247_v29 = vmul.f32 1.442695, %v1189_v44  ;;  %v1190_v57 = vsub.f32 %v8393_v5, %v1154_v19 }
 0x32e   :  { %1299 = vadd.xlane.f32.xlu0 %v8500_v4  ;;  %v1156_v55 = vpop.xlane.xlu0 %1155 }
 0x32f   :  { %v8504_v24 = vpop.eup %7325  ;;  %7335 = vpow2.f32 %v1247_v29  ;;  %v1249_v28 = vmul.f32 1.442695, %v1190_v57  ;;  %v1191_v45 = vsub.f32 %v8397_v58, %v1156_v55  ;;  %v7275_v57 = vld [vmem:[#allocation7] sm:$0xff]   ;;  %v7276_v55 = vld [vmem:[#allocation7 + $0x8] sm:$0xff]  }
 0x330   :  { %1301 = vadd.xlane.f32.xlu1 %v8504_v24  ;;  %v1158_v43 = vpop.xlane.xlu1 %1157  ;;  %6479 = vmatprep.subr.bf16.mxu0 %v7275_v57 }
 0x331   :  { %v8508_v12 = vpop.eup %7327  ;;  %7337 = vpow2.f32 %v1249_v28  ;;  %v1251_v38 = vmul.f32 1.442695, %v1191_v45  ;;  %v1192_v20 = vsub.f32 %v8401_v54, %v1158_v43  ;;  %6480 = vmatpush3.bf16.msra.mxu0 %v7275_v57  ;;  %v10355_v57 = vld [vmem:[#allocation30_spill] sm:$0xff] }
 0x332   :  { %1303 = vadd.xlane.f32.xlu0 %v8508_v12  ;;  %v1160_v5 = vpop.xlane.xlu0 %1159  ;;  %6481 = vmatprep.subr.bf16.mxu0 %v7276_v55 }
 0x333   :  { %v8512_v3 = vpop.eup %7329  ;;  %7339 = vpow2.f32 %v1251_v38  ;;  %v1253_v62 = vmul.f32 1.442695, %v1192_v20  ;;  %v1193_v42 = vsub.f32 %v8405_v33, %v1160_v5  ;;  %v10351_v38 = vld [vmem:[#allocation21_spill] sm:$0xff] }
 0x334   :  { %1305 = vadd.xlane.f32.xlu1 %v8512_v3  ;;  %v1162_v58 = vpop.xlane.xlu1 %1161 }
 0x335   :  { %v8516_v32 = vpop.eup %7331  ;;  %7341 = vpow2.f32 %v1253_v62  ;;  %v1255_v27 = vmul.f32 1.442695, %v1193_v42  ;;  %v1194_v11 = vsub.f32 %v8409_v63, %v1162_v58  ;;  %6482 = vmatpush3.bf16.msra.mxu0 %v7276_v55  ;;  %v10352_v62 = vld [vmem:[#allocation25_spill] sm:$0xff]  ;;  %v10353_v42 = vld [vmem:[#allocation26_spill] sm:$0xff] }
 0x336   :  { %1307 = vadd.xlane.f32.xlu0 %v8516_v32 }
 0x337   :  { %v8520_v54 = vpop.eup %7333  ;;  %7343 = vpow2.f32 %v1255_v27  ;;  %v1257_v49 = vmul.f32 1.442695, %v1194_v11 }
 0x338   :  { %1309 = vadd.xlane.f32.xlu1 %v8520_v54 }
 0x339   :  { %v8523_v17 = vpop.eup %7335  ;;  %7345 = vpow2.f32 %v1257_v49  ;;  %v10354_v49 = vld [vmem:[#allocation34_spill] sm:$0xff] }
 0x33a   :  { %1311 = vadd.xlane.f32.xlu0 %v8523_v17 }
 0x33b   :  { %v8526_v33 = vpop.eup %7337 }
 0x33c   :  { %1313 = vadd.xlane.f32.xlu1 %v8526_v33 }
 0x33d   :  { %v8529_v44 = vpop.eup %7339 }
 0x33e   :  { %1315 = vadd.xlane.f32.xlu0 %v8529_v44 }
 0x33f   :  { %v8532_v63 = vpop.eup %7341 }
 0x340   :  { %1317 = vadd.xlane.f32.xlu1 %v8532_v63 }
 0x341   :  { %v8535_v19 = vpop.eup %7343 }
 0x342   :  { %1319 = vadd.xlane.f32.xlu0 %v8535_v19 }
 0x343   :  { %v8538_v29 = vpop.eup %7345 }
 0x344   :  { %1321 = vadd.xlane.f32.xlu1 %v8538_v29 }
 0x355   :  { %1904 = vrot.lane.b32.xlu1 %v8010_v0, %s7898_s2 }
 0x358   :  { %1902 = vrot.lane.b32.xlu0 %v7996_v51, %s7898_s2 }
 0x359   :  { %1906 = vrot.lane.b32.xlu1 %v8022_v13, %s7898_s2 }
 0x35c   :  { %1910 = vrot.lane.b32.xlu0 %v8046_v39, %s7898_s2 }
 0x35d   :  { %1908 = vrot.lane.b32.xlu1 %v8034_v26, %s7898_s2 }
 0x360   :  { %1912 = vrot.lane.b32.xlu0 %v8058_v56, %s7898_s2 }
 0x361   :  { %2095 = vrot.lane.b32.xlu1 %v8095_v48, %s7898_s2 }
 0x364   :  { %1914 = vrot.lane.b32.xlu0 %v8070_v10, %s7898_s2 }
 0x365   :  { %2097 = vrot.lane.b32.xlu1 %v8115_v16, %s7898_s2 }
 0x368   :  { %1916 = vrot.lane.b32.xlu0 %v8082_v30, %s7898_s2 }
 0x369   :  { %2099 = vrot.lane.b32.xlu1 %v7998_v52, %s7898_s2 }
 0x36c   :  { %1878 = vrot.lane.b32.xlu0 %v7992_v47, %s7898_s2 }
 0x36d   :  { %2101 = vrot.lane.b32.xlu1 %v8012_v1, %s7898_s2 }
 0x370   :  { %2103 = vrot.lane.b32.xlu0 %v8024_v14, %s7898_s2 }
 0x371   :  { %1880 = vrot.lane.b32.xlu1 %v8006_v60, %s7898_s2 }
 0x373   :  { %v1260_v28 = vpop.xlane.xlu0 %1259 }
 0x374   :  { %1884 = vrot.lane.b32.xlu0 %v8030_v22, %s7898_s2  ;;  %7347 = vrcp.f32 %v1260_v28 }
 0x375   :  { %1882 = vrot.lane.b32.xlu1 %v8018_v9, %s7898_s2 }
 0x377   :  { %v1262_v45 = vpop.xlane.xlu1 %1261  ;;  %v1264_v43 = vpop.xlane.xlu0 %1263 }
 0x378   :  { %7349 = vrcp.f32 %v1262_v45  ;;  %1886 = vrot.lane.b32.xlu0 %v8042_v35, %s7898_s2 }
 0x379   :  { %2105 = vrot.lane.b32.xlu1 %v10351_v38, %s7898_s2  ;;  %7351 = vrcp.f32 %v1264_v43 }
 0x37b   :  { %v1266_v20 = vpop.xlane.xlu1 %1265  ;;  %v1268_v5 = vpop.xlane.xlu0 %1267 }
 0x37c   :  { %7353 = vrcp.f32 %v1266_v20  ;;  %2107 = vrot.lane.b32.xlu0 %v10352_v62, %s7898_s2 }
 0x37d   :  { %1888 = vrot.lane.b32.xlu1 %v10353_v42, %s7898_s2  ;;  %7355 = vrcp.f32 %v1268_v5  ;;  %v10356_v5 = vld [vmem:[#allocation38_spill] sm:$0xff] }
 0x37e   :  { %v7348_v11 = vpop.eup %7347 }
 0x37f   :  { %v1270_v58 = vpop.xlane.xlu1 %1269  ;;  %v1272_v27 = vpop.xlane.xlu0 %1271  ;;  %v1355_v43 = vmul.f32 %v7348_v11, %v8420_v15 }
 0x380   :  { %7357 = vrcp.f32 %v1270_v58  ;;  %1892 = vrot.lane.b32.xlu0 %v10354_v49, %s7898_s2  ;;  %v10357_v58 = vld [vmem:[#allocation29_spill] sm:$0xff] }
 0x381   :  { %1890 = vrot.lane.b32.xlu1 %v10355_v57, %s7898_s2  ;;  %7359 = vrcp.f32 %v1272_v27 }
 0x382   :  { %v7350_v55 = vpop.eup %7349 }
 0x383   :  { %v1274_v28 = vpop.xlane.xlu1 %1273  ;;  %v1276_v45 = vpop.xlane.xlu0 %1275  ;;  %v1356_v20 = vmul.f32 %v7350_v55, %v8427_v21  ;;  %v10358_v21 = vld [vmem:[#allocation13_spill] sm:$0xff] }
 0x384   :  { %v7352_v62 = vpop.eup %7351  ;;  %7361 = vrcp.f32 %v1274_v28  ;;  %2071 = vrot.lane.b32.xlu0 %v10356_v5, %s7898_s2  ;;  %v10359_v55 = vld [vmem:[#allocation41_spill] sm:$0xff] }
 0x385   :  { %2109 = vrot.lane.b32.xlu1 %v10357_v58, %s7898_s2  ;;  %v1387_v49 = vpack.c.bf16 %v1356_v20, %v1355_v43  ;;  %7363 = vrcp.f32 %v1276_v45  ;;  %v1357_v22 = vmul.f32 %v7352_v62, %v8425_v50  ;;  %v10360_v62 = vld [vmem:[#allocation45_spill] sm:$0xff] }
 0x386   :  { %v7354_v35 = vpop.eup %7353 }
 0x387   :  { %v1358_v27 = vmul.f32 %v7354_v35, %v8433_v34  ;;  %v1278_v14 = vpop.xlane.xlu1 %1277  ;;  %6431 = vmatprep.mubr.bf16.mxu1 %v1387_v49  ;;  %v1280_v15 = vpop.xlane.xlu0 %1279  ;;  %v10362_v49 = vld [vmem:[#allocation44_spill] sm:$0xff] }
 0x388   :  { %v7356_v11 = vpop.eup %7355  ;;  %7365 = vrcp.f32 %v1278_v14  ;;  %2075 = vrot.lane.b32.xlu0 %v10358_v21, %s7898_s2  ;;  %v10361_v14 = vld [vmem:[#allocation17_spill] sm:$0xff] }
 0x389   :  { %2073 = vrot.lane.b32.xlu1 %v10359_v55, %s7898_s2  ;;  %v1388_v28 = vpack.c.bf16 %v1358_v27, %v1357_v22  ;;  %7367 = vrcp.f32 %v1280_v15  ;;  %v1359_v50 = vmul.f32 %v7356_v11, %v8435_v18  ;;  %v10363_v22 = vld [vmem:[#allocation15_spill] sm:$0xff] }
 0x38a   :  { %v7358_v5 = vpop.eup %7357 }
 0x38b   :  { %v1282_v43 = vpop.xlane.xlu1 %1281  ;;  %6432 = vmatmul.mubr.bf16.vlgmr.msra.gmra.mrb[72].mxu1 %v1388_v28  ;;  %v1284_v45 = vpop.xlane.xlu0 %1283  ;;  %v1360_v35 = vmul.f32 %v7358_v5, %v8441_v6  ;;  %v10364_v28 = vld [vmem:[#allocation23_spill] sm:$0xff] }
 0x38c   :  { %v7360_v34 = vpop.eup %7359  ;;  %7369 = vrcp.f32 %v1282_v43  ;;  %6448 = vmatpush3.bf16.msra.mxu1 %v10360_v62  ;;  %2079 = vrot.lane.b32.xlu0 %v10361_v14, %s7898_s2  ;;  %v10365_v43 = vld [vmem:[#allocation47_spill] sm:$0xff] }
 0x38d   :  { %6449 = vmatprep.subr.bf16.mxu1 %v10362_v49  ;;  %2077 = vrot.lane.b32.xlu1 %v10363_v22, %s7898_s2  ;;  %v1389_v20 = vpack.c.bf16 %v1360_v35, %v1359_v50  ;;  %7371 = vrcp.f32 %v1284_v45  ;;  %v1361_v6 = vmul.f32 %v7360_v34, %v8443_v7  ;;  %v10366_v50 = vld [vmem:[#allocation20_spill] sm:$0xff] }
 0x38e   :  { %v7362_v27 = vpop.eup %7361 }
 0x38f   :  { %v1286_v15 = vpop.xlane.xlu1 %1285  ;;  %6435 = vmatprep.mubr.bf16.mxu1 %v1389_v20  ;;  %v1288_v18 = vpop.xlane.xlu0 %1287  ;;  %v1362_v5 = vmul.f32 %v7362_v27, %v8449_v40  ;;  %v10367_v27 = vld [vmem:[#allocation33_spill] sm:$0xff] }
 0x390   :  { %v7364_v11 = vpop.eup %7363  ;;  %7373 = vrcp.f32 %v1286_v15  ;;  %6450 = vmatpush3.bf16.msra.mxu1 %v10362_v49  ;;  %2083 = vrot.lane.b32.xlu0 %v10364_v28, %s7898_s2  ;;  %v10368_v15 = vld [vmem:[#allocation46_spill] sm:$0xff]  ;;  %v10369_v28 = vld [vmem:[#allocation27_spill] sm:$0xff] }
 0x391   :  { %6451 = vmatprep.subr.bf16.mxu1 %v10365_v43  ;;  %2081 = vrot.lane.b32.xlu1 %v10366_v50, %s7898_s2  ;;  %v1390_v45 = vpack.c.bf16 %v1362_v5, %v1361_v6  ;;  %7375 = vrcp.f32 %v1288_v18  ;;  %v1363_v7 = vmul.f32 %v7364_v11, %v8451_v61  ;;  %v10370_v11 = vld [vmem:[#allocation37_spill] sm:$0xff] }
 0x392   :  { %v7366_v35 = vpop.eup %7365 }
 0x393   :  { %v1290_v20 = vpop.xlane.xlu1 %1289  ;;  %6436 = vmatmul.mubr.bf16.gmra.mrb[76].mxu1 %v1390_v45  ;;  %v1364_v40 = vmul.f32 %v7366_v35, %v8456_v59  ;;  %v7368_v34 = vpop.eup %7367  ;;  %v10371_v45 = vld [vmem:[#allocation49_spill] sm:$0xff]  ;;  %v10372_v35 = vld [vmem:[#allocation31_spill] sm:$0xff] }
 0x394   :  { %7377 = vrcp.f32 %v1290_v20  ;;  %6452 = vmatpush3.bf16.msra.mxu1 %v10365_v43  ;;  %2568 = vrot.lane.b32.xlu0 %v10367_v27, %s7898_s2  ;;  %v1365_v5 = vmul.f32 %v7368_v34, %v8458_v2  ;;  %v10374_v34 = vld [vmem:[#allocation48_spill] sm:$0xff] }
 0x395   :  { %6453 = vmatprep.subr.bf16.mxu1 %v10368_v15  ;;  %2085 = vrot.lane.b32.xlu1 %v10369_v28, %s7898_s2  ;;  %v1391_v6 = vpack.c.bf16 %v1364_v40, %v1363_v7 }
 0x396   :  { %v7370_v18 = vpop.eup %7369 }
 0x397   :  { %6439 = vmatprep.mubr.bf16.mxu1 %v1391_v6  ;;  %v1366_v61 = vmul.f32 %v7370_v18, %v8462_v25  ;;  %v7372_v59 = vpop.eup %7371  ;;  %v10373_v25 = vld [vmem:[#allocation35_spill] sm:$0xff]  ;;  %v10375_v6 = vld [vmem:[#allocation40_spill] sm:$0xff] }
 0x398   :  { %6454 = vmatpush3.bf16.msra.mxu1 %v10368_v15  ;;  %2572 = vrot.lane.b32.xlu0 %v10370_v11, %s7898_s2  ;;  %v1367_v7 = vmul.f32 %v7372_v59, %v8464_v53 }
 0x399   :  { %6455 = vmatprep.subr.bf16.mxu1 %v10371_v45  ;;  %2570 = vrot.lane.b32.xlu1 %v10372_v35, %s7898_s2  ;;  %v1392_v20 = vpack.c.bf16 %v1366_v61, %v1365_v5  ;;  %v10378_v61 = vld [vmem:[#allocation39_spill] sm:$0xff] }
 0x39a   :  { %v7374_v27 = vpop.eup %7373 }
 0x39b   :  { %6440 = vmatmul.mubr.bf16.gmra.mrb[80].mxu1 %v1392_v20  ;;  %v1368_v2 = vmul.f32 %v7374_v27, %v8468_v37  ;;  %v7376_v40 = vpop.eup %7375  ;;  %v10376_v37 = vld [vmem:[#allocation43_spill] sm:$0xff] }
 0x39c   :  { %6456 = vmatpush3.bf16.msra.mxu1 %v10371_v45  ;;  %2574 = vrot.lane.b32.xlu0 %v10373_v25, %s7898_s2  ;;  %v1369_v5 = vmul.f32 %v7376_v40, %v8470_v41  ;;  %v10377_v27 = vld [vmem:[#allocation51_spill] sm:$0xff]  ;;  %v10379_v41 = vld [vmem:[#allocation50_spill] sm:$0xff] }
 0x39d   :  { %6457 = vmatprep.subr.bf16.mxu1 %v10374_v34  ;;  %2576 = vrot.lane.b32.xlu1 %v10375_v6, %s7898_s2  ;;  %v1393_v18 = vpack.c.bf16 %v1368_v2, %v1367_v7 }
 0x39e   :  { %v7378_v11 = vpop.eup %7377 }
 0x39f   :  { %6443 = vmatprep.mubr.bf16.mxu1 %v1393_v18  ;;  %v1370_v53 = vmul.f32 %v7378_v11, %v8474_v36  ;;  %v10380_v36 = vld [vmem:[#allocation42_spill] sm:$0xff] }
 0x3a0   :  { %6458 = vmatpush3.bf16.msra.mxu1 %v10374_v34  ;;  %2580 = vrot.lane.b32.xlu0 %v10376_v37, %s7898_s2 }
 0x3a1   :  { %6459 = vmatprep.subr.bf16.mxu1 %v10377_v27  ;;  %2578 = vrot.lane.b32.xlu1 %v10378_v61, %s7898_s2  ;;  %v1394_v59 = vpack.c.bf16 %v1370_v53, %v1369_v5 }
 0x3a3   :  { %6444 = vmatmul.mubr.bf16.gmra.mrb[84].mxu1 %v1394_v59 }
 0x3a4   :  { %6460 = vmatpush3.bf16.msra.mxu1 %v10377_v27  ;;  %2697 = vrot.lane.b32.xlu0 %v10360_v62, %s7898_s2 }
 0x3a5   :  { %6461 = vmatprep.subr.bf16.mxu1 %v10379_v41  ;;  %2582 = vrot.lane.b32.xlu1 %v10380_v36, %s7898_s2  ;;  %v10394_v36 = vld [vmem:[#allocation66_spill] sm:$0xff] }
 0x3a8   :  { %6462 = vmatpush3.bf16.msra.mxu1 %v10379_v41  ;;  %2701 = vrot.lane.b32.xlu0 %v10365_v43, %s7898_s2 }
 0x3a9   :  { %2699 = vrot.lane.b32.xlu1 %v10362_v49, %s7898_s2 }
 0x3ad   :  { %2703 = vrot.lane.b32.xlu1 %v10368_v15, %s7898_s2 }
 0x3b3   :  { %v1292_v11 = vpop.xlane.xlu0 %1291 }
 0x3b4   :  { %7379 = vrcp.f32 %v1292_v11 }
 0x3b5   :  { %v1294_v20 = vpop.xlane.xlu1 %1293 }
 0x3b6   :  { %7381 = vrcp.f32 %v1294_v20 }
 0x3b7   :  { %v1296_v7 = vpop.xlane.xlu0 %1295 }
 0x3b8   :  { %7383 = vrcp.f32 %v1296_v7 }
 0x3b9   :  { %v1298_v2 = vpop.xlane.xlu1 %1297 }
 0x3ba   :  { %7385 = vrcp.f32 %v1298_v2 }
 0x3bb   :  { %v1300_v40 = vpop.xlane.xlu0 %1299 }
 0x3bc   :  { %7387 = vrcp.f32 %v1300_v40 }
 0x3bd   :  { %v1302_v18 = vpop.xlane.xlu1 %1301 }
 0x3be   :  { %v7380_v5 = vpop.eup %7379  ;;  %7389 = vrcp.f32 %v1302_v18 }
 0x3bf   :  { %v1304_v53 = vpop.xlane.xlu0 %1303  ;;  %v1371_v62 = vmul.f32 %v7380_v5, %v8484_v31 }
 0x3c0   :  { %v7382_v59 = vpop.eup %7381  ;;  %7391 = vrcp.f32 %v1304_v53 }
 0x3c1   :  { %v1306_v43 = vpop.xlane.xlu1 %1305  ;;  %v1372_v37 = vmul.f32 %v7382_v59, %v8488_v23 }
 0x3c2   :  { %v7384_v11 = vpop.eup %7383  ;;  %7393 = vrcp.f32 %v1306_v43 }
 0x3c3   :  { %v1308_v20 = vpop.xlane.xlu0 %1307  ;;  %v1395_v25 = vpack.c.bf16 %v1372_v37, %v1371_v62  ;;  %v1373_v2 = vmul.f32 %v7384_v11, %v8492_v46 }
 0x3c4   :  { %v7386_v7 = vpop.eup %7385  ;;  %7395 = vrcp.f32 %v1308_v20 }
 0x3c5   :  { %v1374_v40 = vmul.f32 %v7386_v7, %v8496_v8  ;;  %v1310_v14 = vpop.xlane.xlu1 %1309  ;;  %6463 = vmatprep.mubr.bf16.mxu1 %v1395_v25 }
 0x3c6   :  { %v7388_v18 = vpop.eup %7387  ;;  %7397 = vrcp.f32 %v1310_v14 }
 0x3c7   :  { %v1312_v53 = vpop.xlane.xlu0 %1311  ;;  %v1396_v21 = vpack.c.bf16 %v1374_v40, %v1373_v2  ;;  %v1375_v23 = vmul.f32 %v7388_v18, %v8500_v4 }
 0x3c8   :  { %v7390_v15 = vpop.eup %7389  ;;  %7399 = vrcp.f32 %v1312_v53 }
 0x3c9   :  { %v1314_v31 = vpop.xlane.xlu1 %1313  ;;  %6464 = vmatmul.mubr.bf16.vlgmr.msra.gmra.mrb[88].mxu1 %v1396_v21  ;;  %v1376_v62 = vmul.f32 %v7390_v15, %v8504_v24 }
 0x3ca   :  { %v7392_v43 = vpop.eup %7391  ;;  %7401 = vrcp.f32 %v1314_v31 }
 0x3cb   :  { %v1316_v37 = vpop.xlane.xlu0 %1315  ;;  %v1397_v46 = vpack.c.bf16 %v1376_v62, %v1375_v23  ;;  %v1377_v14 = vmul.f32 %v7392_v43, %v8508_v12 }
 0x3cc   :  { %v7394_v5 = vpop.eup %7393  ;;  %7403 = vrcp.f32 %v1316_v37 }
 0x3cd   :  { %v1318_v8 = vpop.xlane.xlu1 %1317  ;;  %6467 = vmatprep.mubr.bf16.mxu1 %v1397_v46  ;;  %v1378_v25 = vmul.f32 %v7394_v5, %v8512_v3 }
 0x3ce   :  { %v7396_v59 = vpop.eup %7395  ;;  %7405 = vrcp.f32 %v1318_v8 }
 0x3cf   :  { %v1320_v11 = vpop.xlane.xlu0 %1319  ;;  %v1398_v21 = vpack.c.bf16 %v1378_v25, %v1377_v14  ;;  %v1379_v24 = vmul.f32 %v7396_v59, %v8516_v32 }
 0x3d0   :  { %v7398_v20 = vpop.eup %7397  ;;  %7407 = vrcp.f32 %v1320_v11 }
 0x3d1   :  { %v1322_v4 = vpop.xlane.xlu1 %1321  ;;  %6468 = vmatmul.mubr.bf16.gmra.mrb[92].mxu1 %v1398_v21  ;;  %v1380_v15 = vmul.f32 %v7398_v20, %v8520_v54 }
 0x3d2   :  { %v7400_v7 = vpop.eup %7399  ;;  %7409 = vrcp.f32 %v1322_v4 }
 0x3d3   :  { %v1903_v2 = vpop.permute.xlu0 %1902  ;;  %v1399_v40 = vpack.c.bf16 %v1380_v15, %v1379_v24  ;;  %v1381_v53 = vmul.f32 %v7400_v7, %v8523_v17 }
 0x3d4   :  { %v7402_v18 = vpop.eup %7401  ;;  %7167 = vmatprep.subr.msk.bf16.mxu1 %vm808_vm0, %v1903_v2  ;;  %v1943_v12 = vsel %vm808_vm0, %v1903_v2, 0 }
 0x3d5   :  { %v1905_v3 = vpop.permute.xlu1 %1904  ;;  %6471 = vmatprep.mubr.bf16.mxu1 %v1399_v40  ;;  %6516 = vmatpush3.bf16.xpose.msra.mxu1 %v1943_v12  ;;  %v1382_v31 = vmul.f32 %v7402_v18, %v8526_v33 }
 0x3d6   :  { %v7404_v23 = vpop.eup %7403  ;;  %7168 = vmatprep.subr.msk.bf16.mxu1 %vm808_vm0, %v1905_v3  ;;  %v1946_v17 = vsel %vm808_vm0, %v1905_v3, 0 }
 0x3d7   :  { %v1911_v32 = vpop.permute.xlu0 %1910  ;;  %v1400_v54 = vpack.c.bf16 %v1382_v31, %v1381_v53  ;;  %v1383_v37 = vmul.f32 %v7404_v23, %v8529_v44 }
 0x3d8   :  { %v7406_v62 = vpop.eup %7405  ;;  %v1955_v3 = vsel %vm808_vm0, %v1911_v32, 0 }
 0x3d9   :  { %v1907_v43 = vpop.permute.xlu1 %1906  ;;  %6472 = vmatmul.mubr.bf16.gmra.mrb[96].mxu1 %v1400_v54  ;;  %v1384_v46 = vmul.f32 %v7406_v62, %v8532_v63 }
 0x3da   :  { %v7408_v5 = vpop.eup %7407  ;;  %v1949_v4 = vsel %vm808_vm0, %v1907_v43, 0 }
 0x3db   :  { %v1913_v8 = vpop.permute.xlu0 %1912  ;;  %v1401_v14 = vpack.c.bf16 %v1384_v46, %v1383_v37  ;;  %v1385_v33 = vmul.f32 %v7408_v5, %v8535_v19 }
 0x3dc   :  { %v7410_v25 = vpop.eup %7409  ;;  %v1958_v62 = vsel %vm808_vm0, %v1913_v8, 0 }
 0x3dd   :  { %v1909_v59 = vpop.permute.xlu1 %1908  ;;  %6475 = vmatprep.mubr.bf16.mxu1 %v1401_v14  ;;  %6518 = vmatpush3.bf16.xpose.msra.mxu1 %v1946_v17  ;;  %v1386_v11 = vmul.f32 %v7410_v25, %v8538_v29 }
 0x3de   :  { %7169 = vmatprep.subr.msk.bf16.mxu1 %vm808_vm0, %v1907_v43  ;;  %v1952_v7 = vsel %vm808_vm0, %v1909_v59, 0 }
 0x3df   :  { %v1915_v21 = vpop.permute.xlu0 %1914  ;;  %v1402_v20 = vpack.c.bf16 %v1386_v11, %v1385_v33 }
 0x3e1   :  { %v8681_v44 = vpop.permute.xlu1 %2095  ;;  %6476 = vmatmul.mubr.bf16.gmra.mrb[100].mxu1 %v1402_v20 }
 0x3e2   :  { %7175 = vmatprep.subr.msk.bf16.mxu0 %vm808_vm0, %v8681_v44 }
 0x3e3   :  { %v1917_v63 = vpop.permute.xlu0 %1916 }
 0x3e5   :  { %v8686_v24 = vpop.permute.xlu1 %2097  ;;  %6520 = vmatpush3.bf16.xpose.msra.mxu1 %v1949_v4 }
 0x3e6   :  { %7170 = vmatprep.subr.msk.bf16.mxu1 %vm808_vm0, %v1909_v59  ;;  %v1964_v59 = vsel %vm808_vm0, %v1917_v63, 0 }
 0x3e7   :  { %v1879_v19 = vpop.permute.xlu0 %1878 }
 0x3e8   :  { %6531 = vmatprep.mubr.msk.bf16.mxu1 %vm808_vm0, %v1879_v19 }
 0x3e9   :  { %v8690_v29 = vpop.permute.xlu1 %2099 }
 0x3eb   :  { %v8692_v15 = vpop.permute.xlu0 %2103 }
 0x3ed   :  { %v8695_v2 = vpop.permute.xlu1 %2101  ;;  %6522 = vmatpush3.bf16.xpose.msra.mxu1 %v1952_v7 }
 0x3ee   :  { %7171 = vmatprep.subr.msk.bf16.mxu1 %vm808_vm0, %v1911_v32  ;;  %v1961_v32 = vsel %vm808_vm0, %v1915_v21, 0 }
 0x3ef   :  { %v1885_v40 = vpop.permute.xlu0 %1884 }
 0x3f1   :  { %v1881_v18 = vpop.permute.xlu1 %1880 }
 0x3f3   :  { %v1887_v12 = vpop.permute.xlu0 %1886 }
 0x3f5   :  { %v1883_v53 = vpop.permute.xlu1 %1882  ;;  %6524 = vmatpush3.bf16.xpose.msra.mxu1 %v1955_v3 }
 0x3f6   :  { %7172 = vmatprep.subr.msk.bf16.mxu1 %vm808_vm0, %v1913_v8 }
 0x3f7   :  { %v8700_v31 = vpop.permute.xlu0 %2107 }
 0x3f9   :  { %v8702_v23 = vpop.permute.xlu1 %2105 }
 0x3fb   :  { %v1893_v54 = vpop.permute.xlu0 %1892 }
 0x3fd   :  { %v1889_v43 = vpop.permute.xlu1 %1888  ;;  %6526 = vmatpush3.bf16.xpose.msra.mxu1 %v1958_v62 }
 0x3fe   :  { %7173 = vmatprep.subr.msk.bf16.mxu1 %vm808_vm0, %v1915_v21 }
 0x3ff   :  { %v8706_v37 = vpop.permute.xlu0 %2071 }
 0x401   :  { %v1891_v46 = vpop.permute.xlu1 %1890 }
 0x403   :  { %v8708_v5 = vpop.permute.xlu0 %2075 }
 0x405   :  { %v8711_v14 = vpop.permute.xlu1 %2109  ;;  %6528 = vmatpush3.bf16.xpose.msra.mxu1 %v1961_v32 }
 0x406   :  { %7174 = vmatprep.subr.msk.bf16.mxu1 %vm808_vm0, %v1917_v63 }
 0x407   :  { %v8714_v25 = vpop.permute.xlu0 %2079 }
 0x409   :  { %v8716_v17 = vpop.permute.xlu1 %2073 }
 0x40b   :  { %v8718_v8 = vpop.permute.xlu0 %2083 }
 0x40d   :  { %v8721_v33 = vpop.permute.xlu1 %2077  ;;  %6530 = vmatpush3.bf16.xpose.msra.mxu1 %v1964_v59 }
 0x40f   :  { %v2569_v11 = vpop.permute.xlu0 %2568 }
 0x410   :  { %6579 = vmatprep.subr.bf16.mxu1 %v2569_v11 }
 0x411   :  { %v8723_v20 = vpop.permute.xlu1 %2081 }
 0x413   :  { %v2573_v4 = vpop.permute.xlu0 %2572 }
 0x414   :  { %6532 = vmatmul.mubr.msk.bf16.vlgmr.msra.gmra.mrb[104].mxu1 %vm808_vm0, %v1881_v18 }
 0x415   :  { %v8726_v21 = vpop.permute.xlu1 %2085  ;;  %6535 = vmatprep.mubr.msk.bf16.mxu1 %vm808_vm0, %v1883_v53  ;;  %6580 = vmatpush3.bf16.msra.mxu1 %v2569_v11 }
 0x417   :  { %v2575_v63 = vpop.permute.xlu0 %2574 }
 0x419   :  { %v2571_v19 = vpop.permute.xlu1 %2570 }
 0x41a   :  { %6581 = vmatprep.subr.bf16.mxu1 %v2571_v19 }
 0x41b   :  { %6582 = vmatpush3.bf16.msra.mxu1 %v2571_v19  ;;  %v2581_v3 = vpop.permute.xlu0 %2580 }
 0x41c   :  { %6536 = vmatmul.mubr.msk.bf16.gmra.mrb[108].mxu1 %vm808_vm0, %v1885_v40  ;;  %6583 = vmatprep.subr.bf16.mxu1 %v2573_v4 }
 0x41d   :  { %6539 = vmatprep.mubr.msk.bf16.mxu1 %vm808_vm0, %v1887_v12  ;;  %v2577_v7 = vpop.permute.xlu1 %2576 }
 0x41f   :  { %6584 = vmatpush3.bf16.msra.mxu1 %v2573_v4 }
 0x420   :  { %6585 = vmatprep.subr.bf16.mxu1 %v2575_v63 }
 0x421   :  { %v2579_v18 = vpop.permute.xlu1 %2578 }
 0x423   :  { %6586 = vmatpush3.bf16.msra.mxu1 %v2575_v63 }
 0x424   :  { %6540 = vmatmul.mubr.msk.bf16.gmra.mrb[112].mxu1 %vm808_vm0, %v1889_v43  ;;  %6587 = vmatprep.subr.bf16.mxu1 %v2577_v7 }
 0x425   :  { %6543 = vmatprep.mubr.msk.bf16.mxu1 %vm808_vm0, %v1891_v46  ;;  %v2583_v40 = vpop.permute.xlu1 %2582  ;;  %v2136_v46 = vsel %vm808_vm0, %v8681_v44, 0 }
 0x427   :  { %6588 = vmatpush3.bf16.msra.mxu1 %v2577_v7 }
 0x428   :  { %6589 = vmatprep.subr.bf16.mxu1 %v2579_v18 }
 0x42b   :  { %6590 = vmatpush3.bf16.msra.mxu1 %v2579_v18  ;;  %v2139_v18 = vsel %vm808_vm0, %v8686_v24, 0 }
 0x42c   :  { %6544 = vmatmul.mubr.msk.bf16.gmra.mrb[116].mxu1 %vm808_vm0, %v1893_v54  ;;  %6591 = vmatprep.subr.bf16.mxu1 %v2581_v3 }
 0x42f   :  { %6592 = vmatpush3.bf16.msra.mxu1 %v2581_v3 }
 0x430   :  { %6593 = vmatprep.subr.bf16.mxu1 %v2583_v40 }
 0x433   :  { %6594 = vmatpush3.bf16.msra.mxu1 %v2583_v40 }
 0x45e   :  { %v6433_v12 = vpop.f32.mrb[72].mxu1 }
 0x45f   :  { %v1437_v53 = vpop.f32.mrb[73].mxu1 }
 0x460   :  { %v6434_v62 = vpop.f32.mrb[74].mxu1 }
 0x461   :  { %v1598_v32 = vpack.c.bf16 %v6434_v62, %v6433_v12  ;;  %v1440_v43 = vpop.f32.mrb[75].mxu1 }
 0x462   :  { %v1597_v59 = vpack.c.bf16 %v1440_v43, %v1437_v53 }
 0x464   :  { %6483 = vmatprep.mubr.msk.bf16.mxu0 %vm808_vm0, %v1597_v59 }
 0x465   :  { %6484 = vmatmul.mubr.msk.bf16.vlgmr.msra.gmra.mrb[56].mxu0 %vm808_vm0, %v1598_v32  ;;  %v2142_v32 = vsel %vm808_vm0, %v8690_v29, 0 }
 0x466   :  { %6548 = vmatpush3.bf16.xpose.msra.mxu0 %v2136_v46  ;;  %v6437_v54 = vpop.f32.mrb[76].mxu1 }
 0x467   :  { %7176 = vmatprep.subr.msk.bf16.mxu0 %vm808_vm0, %v8686_v24  ;;  %v1453_v11 = vpop.f32.mrb[77].mxu1 }
 0x468   :  { %v6438_v4 = vpop.f32.mrb[78].mxu1 }
 0x469   :  { %v1600_v19 = vpack.c.bf16 %v6438_v4, %v6437_v54  ;;  %v1456_v63 = vpop.f32.mrb[79].mxu1  ;;  %v2145_v4 = vsel %vm808_vm0, %v8695_v2, 0 }
 0x46a   :  { %v1599_v7 = vpack.c.bf16 %v1456_v63, %v1453_v11 }
 0x46c   :  { %6487 = vmatprep.mubr.msk.bf16.mxu0 %vm808_vm0, %v1599_v7  ;;  %v2157_v7 = vsel %vm808_vm0, %v8711_v14, 0 }
 0x46d   :  { %6488 = vmatmul.mubr.msk.bf16.gmra.mrb[60].mxu0 %vm808_vm0, %v1600_v19  ;;  %v2151_v19 = vsel %vm808_vm0, %v8702_v23, 0 }
 0x46e   :  { %6550 = vmatpush3.bf16.xpose.msra.mxu0 %v2139_v18  ;;  %v6441_v3 = vpop.f32.mrb[80].mxu1  ;;  %v2698_v18 = vpop.permute.xlu0 %2697 }
 0x46f   :  { %7177 = vmatprep.subr.msk.bf16.mxu0 %vm808_vm0, %v8690_v29  ;;  %v1469_v44 = vpop.f32.mrb[81].mxu1  ;;  %v2148_v29 = vsel %vm808_vm0, %v8692_v15, 0 }
 0x470   :  { %v6442_v40 = vpop.f32.mrb[82].mxu1 }
 0x471   :  { %v1602_v12 = vpack.c.bf16 %v6442_v40, %v6441_v3  ;;  %v1472_v53 = vpop.f32.mrb[83].mxu1 }
 0x472   :  { %v1601_v62 = vpack.c.bf16 %v1472_v53, %v1469_v44 }
 0x474   :  { %6491 = vmatprep.mubr.msk.bf16.mxu0 %vm808_vm0, %v1601_v62 }
 0x475   :  { %6492 = vmatmul.mubr.msk.bf16.gmra.mrb[64].mxu0 %vm808_vm0, %v1602_v12 }
 0x476   :  { %6552 = vmatpush3.bf16.xpose.msra.mxu0 %v2142_v32  ;;  %v6445_v43 = vpop.f32.mrb[84].mxu1 }
 0x477   :  { %7178 = vmatprep.subr.msk.bf16.mxu0 %vm808_vm0, %v8695_v2  ;;  %v1485_v24 = vpop.f32.mrb[85].mxu1  ;;  %v2154_v2 = vsel %vm808_vm0, %v8700_v31, 0 }
 0x478   :  { %v6446_v59 = vpop.f32.mrb[86].mxu1 }
 0x479   :  { %v1604_v46 = vpack.c.bf16 %v6446_v59, %v6445_v43  ;;  %v1488_v54 = vpop.f32.mrb[87].mxu1 }
 0x47a   :  { %v1603_v11 = vpack.c.bf16 %v1488_v54, %v1485_v24 }
 0x47c   :  { %6495 = vmatprep.mubr.msk.bf16.mxu0 %vm808_vm0, %v1603_v11 }
 0x47d   :  { %6496 = vmatmul.mubr.msk.bf16.gmra.mrb[68].mxu0 %vm808_vm0, %v1604_v46 }
 0x47e   :  { %6554 = vmatpush3.bf16.xpose.msra.mxu0 %v2145_v4 }
 0x47f   :  { %7179 = vmatprep.subr.msk.bf16.mxu0 %vm808_vm0, %v8692_v15 }
 0x486   :  { %6556 = vmatpush3.bf16.xpose.msra.mxu0 %v2148_v29 }
 0x487   :  { %7180 = vmatprep.subr.msk.bf16.mxu0 %vm808_vm0, %v8702_v23 }
 0x48e   :  { %6558 = vmatpush3.bf16.xpose.msra.mxu0 %v2151_v19 }
 0x48f   :  { %7181 = vmatprep.subr.msk.bf16.mxu0 %vm808_vm0, %v8700_v31 }
 0x496   :  { %6560 = vmatpush3.bf16.xpose.msra.mxu0 %v2154_v2 }
 0x497   :  { %7182 = vmatprep.subr.msk.bf16.mxu0 %vm808_vm0, %v8711_v14 }
 0x49c   :  { %v6465_v63 = vpop.f32.mrb[88].mxu1 }
 0x49d   :  { %v1534_v15 = vpop.f32.mrb[89].mxu1 }
 0x49e   :  { %6562 = vmatpush3.bf16.xpose.msra.mxu0 %v2157_v7  ;;  %v6466_v3 = vpop.f32.mrb[90].mxu1  ;;  %v2700_v7 = vpop.permute.xlu1 %2699 }
 0x49f   :  { %v1606_v23 = vpack.c.bf16 %v6466_v3, %v6465_v63  ;;  %6611 = vmatprep.subr.bf16.mxu0 %v2698_v18  ;;  %v1537_v44 = vpop.f32.mrb[91].mxu1  ;;  %v2702_v3 = vpop.permute.xlu0 %2701 }
 0x4a0   :  { %v1605_v40 = vpack.c.bf16 %v1537_v44, %v1534_v15 }
 0x4a2   :  { %6499 = vmatprep.mubr.msk.bf16.mxu0 %vm808_vm0, %v1605_v40  ;;  %v10382_v40 = vld [vmem:[#allocation55_spill] sm:$0xff] }
 0x4a3   :  { %6500 = vmatmul.mubr.msk.bf16.gmra.mrb[72].mxu0 %vm808_vm0, %v1606_v23  ;;  %v2704_v23 = vpop.permute.xlu1 %2703 }
 0x4a4   :  { %v6469_v31 = vpop.f32.mrb[92].mxu1 }
 0x4a5   :  { %v1550_v12 = vpop.f32.mrb[93].mxu1 }
 0x4a6   :  { %v6470_v53 = vpop.f32.mrb[94].mxu1 }
 0x4a7   :  { %v1608_v62 = vpack.c.bf16 %v6470_v53, %v6469_v31  ;;  %v1553_v32 = vpop.f32.mrb[95].mxu1  ;;  %v10383_v31 = vld [vmem:[#allocation53_spill] sm:$0xff]  ;;  %v10384_v53 = vld [vmem:[#allocation54_spill] sm:$0xff] }
 0x4a8   :  { %v1607_v43 = vpack.c.bf16 %v1553_v32, %v1550_v12 }
 0x4aa   :  { %6503 = vmatprep.mubr.msk.bf16.mxu0 %vm808_vm0, %v1607_v43  ;;  %v10385_v43 = vld [vmem:[#allocation59_spill] sm:$0xff] }
 0x4ab   :  { %6504 = vmatmul.mubr.msk.bf16.gmra.mrb[76].mxu0 %vm808_vm0, %v1608_v62 }
 0x4ac   :  { %v6473_v14 = vpop.f32.mrb[96].mxu1 }
 0x4ad   :  { %v1566_v24 = vpop.f32.mrb[97].mxu1 }
 0x4ae   :  { %v6474_v59 = vpop.f32.mrb[98].mxu1 }
 0x4af   :  { %v1610_v46 = vpack.c.bf16 %v6474_v59, %v6473_v14  ;;  %v1569_v54 = vpop.f32.mrb[99].mxu1 }
 0x4b0   :  { %v1609_v11 = vpack.c.bf16 %v1569_v54, %v1566_v24  ;;  %v10386_v24 = vld [vmem:[#allocation58_spill] sm:$0xff] }
 0x4b2   :  { %6507 = vmatprep.mubr.msk.bf16.mxu0 %vm808_vm0, %v1609_v11 }
 0x4b3   :  { %6508 = vmatmul.mubr.msk.bf16.gmra.mrb[80].mxu0 %vm808_vm0, %v1610_v46  ;;  %v10387_v46 = vld [vmem:[#allocation57_spill] sm:$0xff] }
 0x4b4   :  { %v6477_v4 = vpop.f32.mrb[100].mxu1 }
 0x4b5   :  { %v1582_v29 = vpop.f32.mrb[101].mxu1 }
 0x4b6   :  { %v6478_v19 = vpop.f32.mrb[102].mxu1 }
 0x4b7   :  { %v1612_v2 = vpack.c.bf16 %v6478_v19, %v6477_v4  ;;  %v1585_v63 = vpop.f32.mrb[103].mxu1  ;;  %v10388_v4 = vld [vmem:[#allocation56_spill] sm:$0xff] }
 0x4b8   :  { %v1611_v15 = vpack.c.bf16 %v1585_v63, %v1582_v29  ;;  %v10389_v63 = vld [vmem:[#allocation63_spill] sm:$0xff] }
 0x4ba   :  { %6511 = vmatprep.mubr.msk.bf16.mxu0 %vm808_vm0, %v1611_v15 }
 0x4bb   :  { %6512 = vmatmul.mubr.msk.bf16.gmra.mrb[84].mxu0 %vm808_vm0, %v1612_v2 }
 0x4bc   :  { %6563 = vmatprep.mubr.msk.bf16.mxu0 %vm808_vm0, %v8706_v37 }
 0x4c3   :  { %6564 = vmatmul.mubr.msk.bf16.vlgmr.msra.gmra.mrb[88].mxu0 %vm808_vm0, %v8716_v17 }
 0x4c4   :  { %6612 = vmatpush3.bf16.msra.mxu0 %v2698_v18  ;;  %6567 = vmatprep.mubr.msk.bf16.mxu0 %vm808_vm0, %v8708_v5  ;;  %v10381_v5 = vld [vmem:[#allocation52_spill] sm:$0xff] }
 0x4c5   :  { %6613 = vmatprep.subr.bf16.mxu0 %v2700_v7 }
 0x4c8   :  { %6614 = vmatpush3.bf16.msra.mxu0 %v2700_v7 }
 0x4c9   :  { %6615 = vmatprep.subr.bf16.mxu0 %v2702_v3 }
 0x4cb   :  { %6568 = vmatmul.mubr.msk.bf16.gmra.mrb[92].mxu0 %vm808_vm0, %v8721_v33 }
 0x4cc   :  { %6616 = vmatpush3.bf16.msra.mxu0 %v2702_v3  ;;  %6571 = vmatprep.mubr.msk.bf16.mxu0 %vm808_vm0, %v8714_v25  ;;  %v10390_v3 = vld [vmem:[#allocation62_spill] sm:$0xff] }
 0x4cd   :  { %6617 = vmatprep.subr.bf16.mxu0 %v2704_v23 }
 0x4d0   :  { %6618 = vmatpush3.bf16.msra.mxu0 %v2704_v23 }
 0x4d3   :  { %6572 = vmatmul.mubr.msk.bf16.gmra.mrb[96].mxu0 %vm808_vm0, %v8723_v20 }
 0x4d4   :  { %6575 = vmatprep.mubr.msk.bf16.mxu0 %vm808_vm0, %v8718_v8 }
 0x4db   :  { %6576 = vmatmul.mubr.msk.bf16.gmra.mrb[100].mxu0 %vm808_vm0, %v8726_v21 }
 0x4e7   :  { %v6533_v37 = vpop.f32.mrb[104].mxu1 }
 0x4e8   :  { %v2009_v17 = vadd.f32 %v6533_v37, %v10381_v5  ;;  %v2000_v33 = vpop.f32.mrb[105].mxu1  ;;  %v10391_v37 = vld [vmem:[#allocation61_spill] sm:$0xff] }
 0x4e9   :  { %v6534_v18 = vpop.f32.mrb[106].mxu1  ;;  %v2001_v12 = vadd.f32 %v2000_v33, %v10383_v31 }
 0x4ea   :  { %2260 = vmax.xlane.f32.xlu0 %v2009_v17  ;;  %v2003_v44 = vpop.f32.mrb[107].mxu1  ;;  %v2012_v62 = vadd.f32 %v6534_v18, %v10384_v53 }
 0x4eb   :  { %v2004_v25 = vadd.f32 %v2003_v44, %v10382_v40  ;;  %v10392_v44 = vld [vmem:[#allocation60_spill] sm:$0xff] }
 0x4ed   :  { %2258 = vmax.xlane.f32.xlu1 %v2004_v25 }
 0x4ee   :  { %2256 = vmax.xlane.f32.xlu0 %v2001_v12 }
 0x4ef   :  { %v6537_v20 = vpop.f32.mrb[108].mxu1 }
 0x4f0   :  { %v2016_v8 = vpop.f32.mrb[109].mxu1  ;;  %v2025_v59 = vadd.f32 %v6537_v20, %v10386_v24 }
 0x4f1   :  { %v6538_v32 = vpop.f32.mrb[110].mxu1  ;;  %v2017_v29 = vadd.f32 %v2016_v8, %v10388_v4 }
 0x4f2   :  { %v8801_v21 = vadd.f32 %v6538_v32, %v10385_v43  ;;  %2262 = vmax.xlane.f32.xlu0 %v2012_v62  ;;  %v2019_v14 = vpop.f32.mrb[111].mxu1 }
 0x4f3   :  { %v2020_v54 = vadd.f32 %v2019_v14, %v10387_v46  ;;  %v10393_v14 = vld [vmem:[#allocation67_spill] sm:$0xff] }
 0x4f4   :  { %2270 = vmax.xlane.f32.xlu1 %v8801_v21 }
 0x4f6   :  { %2268 = vmax.xlane.f32.xlu0 %v2025_v59 }
 0x4f7   :  { %v6541_v11 = vpop.f32.mrb[112].mxu1 }
 0x4f8   :  { %2266 = vmax.xlane.f32.xlu1 %v2020_v54  ;;  %v2032_v19 = vpop.f32.mrb[113].mxu1  ;;  %v2041_v23 = vadd.f32 %v6541_v11, %v10390_v3 }
 0x4f9   :  { %v6542_v2 = vpop.f32.mrb[114].mxu1  ;;  %v2033_v20 = vadd.f32 %v2032_v19, %v10392_v44  ;;  %v10396_v19 = vld [vmem:[#allocation64_spill] sm:$0xff] }
 0x4fa   :  { %v8808_v15 = vadd.f32 %v6542_v2, %v10389_v63  ;;  %2264 = vmax.xlane.f32.xlu0 %v2017_v29  ;;  %v2035_v7 = vpop.f32.mrb[115].mxu1 }
 0x4fb   :  { %v8813_v33 = vadd.f32 %v2035_v7, %v10391_v37  ;;  %v10395_v7 = vld [vmem:[#allocation65_spill] sm:$0xff] }
 0x4fc   :  { %2278 = vmax.xlane.f32.xlu1 %v8808_v15 }
 0x4fe   :  { %2276 = vmax.xlane.f32.xlu0 %v2041_v23 }
 0x4ff   :  { %v6545_v18 = vpop.f32.mrb[116].mxu1 }
 0x500   :  { %2274 = vmax.xlane.f32.xlu1 %v8813_v33  ;;  %v2048_v8 = vpop.f32.mrb[117].mxu1  ;;  %v8821_v11 = vadd.f32 %v6545_v18, %v10394_v36 }
 0x501   :  { %v6546_v32 = vpop.f32.mrb[118].mxu1  ;;  %v8829_v6 = vadd.f32 %v2048_v8, %v10396_v19 }
 0x502   :  { %v8818_v2 = vadd.f32 %v6546_v32, %v10393_v14  ;;  %2272 = vmax.xlane.f32.xlu0 %v2033_v20  ;;  %v2051_v49 = vpop.f32.mrb[119].mxu1 }
 0x503   :  { %v8825_v61 = vadd.f32 %v2051_v49, %v10395_v7 }
 0x504   :  { %2286 = vmax.xlane.f32.xlu1 %v8818_v2 }
 0x506   :  { %2284 = vmax.xlane.f32.xlu0 %v8821_v11 }
 0x508   :  { %2282 = vmax.xlane.f32.xlu1 %v8825_v61 }
 0x50a   :  { %2280 = vmax.xlane.f32.xlu0 %v8829_v6 }
 0x577   :  { %v2261_v32 = vpop.xlane.xlu0 %2260 }
 0x578   :  { %v2322_v35 = vsub.f32 %v2009_v17, %v2261_v32 }
 0x57a   :  { %v2356_v28 = vmul.f32 1.442695, %v2322_v35  ;;  %v2259_v18 = vpop.xlane.xlu1 %2258 }
 0x57b   :  { %v2257_v47 = vpop.xlane.xlu0 %2256  ;;  %v2321_v22 = vsub.f32 %v2004_v25, %v2259_v18 }
 0x57c   :  { %7411 = vpow2.f32 %v2356_v28  ;;  %v2320_v50 = vsub.f32 %v2001_v12, %v2257_v47 }
 0x57d   :  { %v2354_v8 = vmul.f32 1.442695, %v2321_v22 }
 0x57e   :  { %v2352_v30 = vmul.f32 1.442695, %v2320_v50 }
 0x57f   :  { %v2263_v49 = vpop.xlane.xlu0 %2262 }
 0x580   :  { %7413 = vpow2.f32 %v2352_v30  ;;  %v2323_v10 = vsub.f32 %v2012_v62, %v2263_v49 }
 0x581   :  { %v2271_v55 = vpop.xlane.xlu1 %2270 }
 0x582   :  { %v2358_v56 = vmul.f32 1.442695, %v2323_v10  ;;  %v2327_v28 = vsub.f32 %v8801_v21, %v2271_v55 }
 0x583   :  { %v2269_v58 = vpop.xlane.xlu0 %2268 }
 0x584   :  { %7415 = vpow2.f32 %v2358_v56  ;;  %v2326_v39 = vsub.f32 %v2025_v59, %v2269_v58  ;;  %v2366_v58 = vmul.f32 1.442695, %v2327_v28 }
 0x585   :  { %v2267_v57 = vpop.xlane.xlu1 %2266  ;;  %7417 = vpow2.f32 %v2354_v8 }
 0x586   :  { %v8833_v51 = vpop.eup %7411  ;;  %v2364_v17 = vmul.f32 1.442695, %v2326_v39  ;;  %v2325_v35 = vsub.f32 %v2020_v54, %v2267_v57 }
 0x587   :  { %2420 = vadd.xlane.f32.xlu1 %v8833_v51  ;;  %v2265_v47 = vpop.xlane.xlu0 %2264 }
 0x588   :  { %7419 = vpow2.f32 %v2364_v17  ;;  %v2362_v30 = vmul.f32 1.442695, %v2325_v35  ;;  %v2324_v50 = vsub.f32 %v2017_v29, %v2265_v47 }
 0x589   :  { %v2279_v25 = vpop.xlane.xlu1 %2278 }
 0x58a   :  { %v8837_v10 = vpop.eup %7413  ;;  %v2360_v22 = vmul.f32 1.442695, %v2324_v50  ;;  %7421 = vpow2.f32 %v2362_v30  ;;  %v2331_v62 = vsub.f32 %v8808_v15, %v2279_v25 }
 0x58b   :  { %2416 = vadd.xlane.f32.xlu1 %v8837_v10  ;;  %v2277_v56 = vpop.xlane.xlu0 %2276 }
 0x58c   :  { %7423 = vpow2.f32 %v2360_v22  ;;  %v2330_v39 = vsub.f32 %v2041_v23, %v2277_v56  ;;  %v2374_v18 = vmul.f32 1.442695, %v2331_v62 }
 0x58d   :  { %v2275_v57 = vpop.xlane.xlu1 %2274  ;;  %7425 = vpow2.f32 %v2366_v58 }
 0x58e   :  { %v8840_v12 = vpop.eup %7415  ;;  %v2372_v55 = vmul.f32 1.442695, %v2330_v39  ;;  %v2329_v23 = vsub.f32 %v8813_v33, %v2275_v57 }
 0x58f   :  { %2422 = vadd.xlane.f32.xlu1 %v8840_v12  ;;  %v2273_v21 = vpop.xlane.xlu0 %2272  ;;  %v8844_v54 = vpop.eup %7417 }
 0x590   :  { %v2328_v59 = vsub.f32 %v2033_v20, %v2273_v21  ;;  %7427 = vpow2.f32 %v2372_v55  ;;  %v2370_v28 = vmul.f32 1.442695, %v2329_v23 }
 0x591   :  { %v2287_v49 = vpop.xlane.xlu1 %2286 }
 0x592   :  { %v8846_v29 = vpop.eup %7419  ;;  %v2368_v32 = vmul.f32 1.442695, %v2328_v59  ;;  %v2335_v50 = vsub.f32 %v8818_v2, %v2287_v49 }
 0x593   :  { %2418 = vadd.xlane.f32.xlu1 %v8844_v54  ;;  %2428 = vadd.xlane.f32.xlu0 %v8846_v29  ;;  %v2285_v15 = vpop.xlane.xlu0 %2284 }
 0x594   :  { %7429 = vpow2.f32 %v2368_v32  ;;  %v2334_v8 = vsub.f32 %v8821_v11, %v2285_v15  ;;  %v8852_v17 = vpop.eup %7421  ;;  %v2382_v57 = vmul.f32 1.442695, %v2335_v50 }
 0x595   :  { %7431 = vpow2.f32 %v2374_v18  ;;  %v2283_v22 = vpop.xlane.xlu1 %2282 }
 0x596   :  { %v8854_v20 = vpop.eup %7423  ;;  %v2380_v35 = vmul.f32 1.442695, %v2334_v8  ;;  %v6565_v47 = vpop.f32.mrb[88].mxu0  ;;  %v2333_v62 = vsub.f32 %v8825_v61, %v2283_v22 }
 0x597   :  { %v2193_v30 = vpop.f32.mrb[89].mxu0  ;;  %2426 = vadd.xlane.f32.xlu1 %v8852_v17  ;;  %2424 = vadd.xlane.f32.xlu0 %v8854_v20  ;;  %v2281_v33 = vpop.xlane.xlu0 %2280 }
 0x598   :  { %7433 = vpow2.f32 %v2380_v35  ;;  %v2332_v25 = vsub.f32 %v8829_v6, %v2281_v33  ;;  %v6566_v11 = vpop.f32.mrb[90].mxu0  ;;  %v8860_v58 = vpop.eup %7425  ;;  %v2378_v6 = vmul.f32 1.442695, %v2333_v62 }
 0x599   :  { %v2196_v56 = vpop.f32.mrb[91].mxu0  ;;  %7435 = vpow2.f32 %v2370_v28  ;;  %v8883_v33 = vadd.f32 %v6566_v11, %v10384_v53 }
 0x59a   :  { %v2376_v39 = vmul.f32 1.442695, %v2332_v25  ;;  %v8864_v55 = vpop.eup %7427  ;;  %v8890_v22 = vadd.f32 %v2196_v56, %v10382_v40  ;;  %v8905_v56 = vadd.f32 %v2193_v30, %v10383_v31 }
 0x59b   :  { %2430 = vadd.xlane.f32.xlu0 %v8860_v58 }
 0x59c   :  { %7437 = vpow2.f32 %v2376_v39 }
 0x59d   :  { %7439 = vpow2.f32 %v2382_v57 }
 0x59e   :  { %v8866_v21 = vpop.eup %7429  ;;  %v6569_v2 = vpop.f32.mrb[92].mxu0  ;;  %7441 = vpow2.f32 %v2378_v6  ;;  %v8897_v6 = vadd.f32 %v6565_v47, %v10381_v5 }
 0x59f   :  { %v2209_v59 = vpop.f32.mrb[93].mxu0  ;;  %2436 = vadd.xlane.f32.xlu0 %v8864_v55  ;;  %2432 = vadd.xlane.f32.xlu1 %v8866_v21  ;;  %v8870_v18 = vpop.eup %7431  ;;  %v8913_v47 = vadd.f32 %v6569_v2, %v10386_v24 }
 0x5a0   :  { %v6570_v32 = vpop.f32.mrb[94].mxu0  ;;  %v8921_v30 = vadd.f32 %v2209_v59, %v10388_v4 }
 0x5a1   :  { %v2212_v23 = vpop.f32.mrb[95].mxu0  ;;  %v8900_v53 = vadd.f32 %v6570_v32, %v10385_v43 }
 0x5a2   :  { %v8872_v49 = vpop.eup %7433  ;;  %v8908_v40 = vadd.f32 %v2212_v23, %v10387_v46 }
 0x5a3   :  { %2438 = vadd.xlane.f32.xlu0 %v8870_v18  ;;  %2444 = vadd.xlane.f32.xlu1 %v8872_v49  ;;  %v8876_v61 = vpop.eup %7435 }
 0x5a6   :  { %v8878_v15 = vpop.eup %7437  ;;  %v6573_v8 = vpop.f32.mrb[96].mxu0 }
 0x5a7   :  { %v2225_v35 = vpop.f32.mrb[97].mxu0  ;;  %2434 = vadd.xlane.f32.xlu0 %v8876_v61  ;;  %2440 = vadd.xlane.f32.xlu1 %v8878_v15  ;;  %v8885_v25 = vpop.eup %7439  ;;  %v8929_v2 = vadd.f32 %v6573_v8, %v10390_v3 }
 0x5a8   :  { %v6574_v28 = vpop.f32.mrb[98].mxu0  ;;  %v8892_v39 = vpop.eup %7441  ;;  %v8937_v59 = vadd.f32 %v2225_v35, %v10392_v44 }
 0x5a9   :  { %v2228_v50 = vpop.f32.mrb[99].mxu0  ;;  %v8916_v32 = vadd.f32 %v6574_v28, %v10389_v63 }
 0x5aa   :  { %v8924_v23 = vadd.f32 %v2228_v50, %v10391_v37 }
 0x5ab   :  { %2446 = vadd.xlane.f32.xlu0 %v8885_v25  ;;  %2294 = vmax.xlane.f32.xlu1 %v8883_v33 }
 0x5ae   :  { %v6577_v57 = vpop.f32.mrb[100].mxu0 }
 0x5af   :  { %v2241_v62 = vpop.f32.mrb[101].mxu0  ;;  %2442 = vadd.xlane.f32.xlu0 %v8892_v39  ;;  %2290 = vmax.xlane.f32.xlu1 %v8890_v22  ;;  %v8945_v8 = vadd.f32 %v6577_v57, %v10394_v36 }
 0x5b0   :  { %v6578_v11 = vpop.f32.mrb[102].mxu0 }
 0x5b1   :  { %v2244_v42 = vpop.f32.mrb[103].mxu0  ;;  %v8932_v28 = vadd.f32 %v6578_v11, %v10393_v14  ;;  %v8949_v11 = vadd.f32 %v2241_v62, %v10396_v19 }
 0x5b2   :  { %v8940_v50 = vadd.f32 %v2244_v42, %v10395_v7 }
 0x5b3   :  { %2292 = vmax.xlane.f32.xlu0 %v8897_v6  ;;  %2302 = vmax.xlane.f32.xlu1 %v8900_v53 }
 0x5b7   :  { %2288 = vmax.xlane.f32.xlu0 %v8905_v56  ;;  %2298 = vmax.xlane.f32.xlu1 %v8908_v40 }
 0x5bb   :  { %2300 = vmax.xlane.f32.xlu0 %v8913_v47  ;;  %2310 = vmax.xlane.f32.xlu1 %v8916_v32 }
 0x5bf   :  { %2296 = vmax.xlane.f32.xlu0 %v8921_v30  ;;  %2306 = vmax.xlane.f32.xlu1 %v8924_v23 }
 0x5c3   :  { %2308 = vmax.xlane.f32.xlu0 %v8929_v2  ;;  %2318 = vmax.xlane.f32.xlu1 %v8932_v28 }
 0x5c7   :  { %2304 = vmax.xlane.f32.xlu0 %v8937_v59  ;;  %2314 = vmax.xlane.f32.xlu1 %v8940_v50 }
 0x5cb   :  { %2316 = vmax.xlane.f32.xlu0 %v8945_v8 }
 0x5cf   :  { %2312 = vmax.xlane.f32.xlu0 %v8949_v11 }
 0x5d8   :  { %2707 = vrot.lane.b32.xlu1 %v10374_v34, %s7898_s2 }
 0x5e5   :  { %2705 = vrot.lane.b32.xlu0 %v10371_v45, %s7898_s2 }
 0x614   :  { %v2421_v42 = vpop.xlane.xlu1 %2420 }
 0x618   :  { %v2417_v35 = vpop.xlane.xlu1 %2416 }
 0x61c   :  { %v2423_v7 = vpop.xlane.xlu1 %2422 }
 0x61d   :  { %7443 = vrcp.f32 %v2423_v7 }
 0x61e   :  { %7445 = vrcp.f32 %v2417_v35 }
 0x61f   :  { %7447 = vrcp.f32 %v2421_v42 }
 0x620   :  { %v2419_v57 = vpop.xlane.xlu1 %2418  ;;  %v2429_v36 = vpop.xlane.xlu0 %2428 }
 0x621   :  { %7449 = vrcp.f32 %v2419_v57 }
 0x624   :  { %v2427_v14 = vpop.xlane.xlu1 %2426  ;;  %v2425_v62 = vpop.xlane.xlu0 %2424 }
 0x625   :  { %7451 = vrcp.f32 %v2427_v14 }
 0x626   :  { %7453 = vrcp.f32 %v2425_v62 }
 0x627   :  { %7455 = vrcp.f32 %v2429_v36  ;;  %v7444_v19 = vpop.eup %7443 }
 0x628   :  { %v2431_v44 = vpop.xlane.xlu0 %2430  ;;  %v7446_v34 = vpop.eup %7445  ;;  %v2515_v3 = vmul.f32 %v7444_v19, %v8840_v12 }
 0x629   :  { %7457 = vrcp.f32 %v2431_v44  ;;  %v7448_v37 = vpop.eup %7447  ;;  %v2512_v42 = vmul.f32 %v7446_v34, %v8837_v10 }
 0x62a   :  { %v2514_v57 = vmul.f32 %v7448_v37, %v8833_v51 }
 0x62b   :  { %v7450_v45 = vpop.eup %7449 }
 0x62c   :  { %v2433_v63 = vpop.xlane.xlu1 %2432  ;;  %v2437_v7 = vpop.xlane.xlu0 %2436  ;;  %v2513_v35 = vmul.f32 %v7450_v45, %v8844_v54  ;;  %v2545_v62 = vpack.c.bf16 %v2515_v3, %v2514_v57 }
 0x62d   :  { %7459 = vrcp.f32 %v2433_v63 }
 0x62e   :  { %v2544_v4 = vpack.c.bf16 %v2513_v35, %v2512_v42 }
 0x62f   :  { %v7452_v14 = vpop.eup %7451 }
 0x630   :  { %v7454_v36 = vpop.eup %7453  ;;  %6595 = vmatprep.mubr.bf16.mxu1 %v2544_v4  ;;  %v2445_v46 = vpop.xlane.xlu1 %2444  ;;  %v2517_v44 = vmul.f32 %v7452_v14, %v8852_v17 }
 0x631   :  { %v2439_v24 = vpop.xlane.xlu0 %2438  ;;  %v7456_v43 = vpop.eup %7455  ;;  %6596 = vmatmul.mubr.bf16.vlgmr.msra.gmra.mrb[120].mxu1 %v2545_v62  ;;  %v2516_v19 = vmul.f32 %v7454_v36, %v8854_v20 }
 0x632   :  { %7461 = vrcp.f32 %v2439_v24  ;;  %v2518_v51 = vmul.f32 %v7456_v43, %v8846_v29 }
 0x633   :  { %v7458_v12 = vpop.eup %7457  ;;  %v2546_v34 = vpack.c.bf16 %v2517_v44, %v2516_v19  ;;  %7463 = vrcp.f32 %v2437_v7 }
 0x634   :  { %v2441_v45 = vpop.xlane.xlu1 %2440  ;;  %v2519_v3 = vmul.f32 %v7458_v12, %v8860_v58 }
 0x635   :  { %v2435_v10 = vpop.xlane.xlu0 %2434  ;;  %6599 = vmatprep.mubr.bf16.mxu1 %v2546_v34 }
 0x636   :  { %7465 = vrcp.f32 %v2435_v10  ;;  %v2547_v4 = vpack.c.bf16 %v2519_v3, %v2518_v51 }
 0x637   :  { %7467 = vrcp.f32 %v2441_v45  ;;  %v7460_v24 = vpop.eup %7459 }
 0x638   :  { %v2295_v37 = vpop.xlane.xlu1 %2294 }
 0x639   :  { %v2447_v54 = vpop.xlane.xlu0 %2446  ;;  %v2339_v17 = vsub.f32 %v8883_v33, %v2295_v37  ;;  %6600 = vmatmul.mubr.bf16.gmra.mrb[124].mxu1 %v2547_v4  ;;  %v2520_v33 = vmul.f32 %v7460_v24, %v8866_v21 }
 0x63a   :  { %7469 = vrcp.f32 %v2447_v54 }
 0x63b   :  { %v2390_v63 = vmul.f32 1.442695, %v2339_v17  ;;  %7471 = vrcp.f32 %v2445_v46 }
 0x63c   :  { %v2291_v20 = vpop.xlane.xlu1 %2290  ;;  %v7462_v35 = vpop.eup %7461 }
 0x63d   :  { %v2443_v42 = vpop.xlane.xlu0 %2442  ;;  %7473 = vpow2.f32 %v2390_v63  ;;  %v2337_v43 = vsub.f32 %v8890_v22, %v2291_v20  ;;  %v7464_v29 = vpop.eup %7463  ;;  %v2523_v62 = vmul.f32 %v7462_v35, %v8870_v18 }
 0x63e   :  { %7475 = vrcp.f32 %v2443_v42  ;;  %v2522_v19 = vmul.f32 %v7464_v29, %v8864_v55 }
 0x63f   :  { %v2386_v58 = vmul.f32 1.442695, %v2337_v43 }
 0x640   :  { %v7466_v7 = vpop.eup %7465  ;;  %v2303_v57 = vpop.xlane.xlu1 %2302  ;;  %v2549_v3 = vpack.c.bf16 %v2523_v62, %v2522_v19 }
 0x641   :  { %v2293_v14 = vpop.xlane.xlu0 %2292  ;;  %7477 = vpow2.f32 %v2386_v58  ;;  %v2343_v36 = vsub.f32 %v8900_v53, %v2303_v57  ;;  %v2521_v44 = vmul.f32 %v7466_v7, %v8876_v61  ;;  %v7468_v45 = vpop.eup %7467 }
 0x642   :  { %v2338_v46 = vsub.f32 %v8897_v6, %v2293_v14  ;;  %v2524_v63 = vmul.f32 %v7468_v45, %v8878_v15 }
 0x643   :  { %v2398_v22 = vmul.f32 1.442695, %v2343_v36  ;;  %v2548_v34 = vpack.c.bf16 %v2521_v44, %v2520_v33 }
 0x644   :  { %v2388_v12 = vmul.f32 1.442695, %v2338_v46  ;;  %v2299_v10 = vpop.xlane.xlu1 %2298  ;;  %v7470_v4 = vpop.eup %7469 }
 0x645   :  { %v2289_v51 = vpop.xlane.xlu0 %2288  ;;  %7479 = vpow2.f32 %v2398_v22  ;;  %v2341_v21 = vsub.f32 %v8908_v40, %v2299_v10  ;;  %6603 = vmatprep.mubr.bf16.mxu1 %v2548_v34  ;;  %v7472_v18 = vpop.eup %7471  ;;  %v2527_v24 = vmul.f32 %v7470_v4, %v8885_v25 }
 0x646   :  { %v2336_v53 = vsub.f32 %v8905_v56, %v2289_v51  ;;  %7481 = vpow2.f32 %v2388_v12  ;;  %6604 = vmatmul.mubr.bf16.gmra.mrb[128].mxu1 %v2549_v3  ;;  %v2526_v42 = vmul.f32 %v7472_v18, %v8872_v49 }
 0x647   :  { %v8974_v61 = vpop.eup %7473  ;;  %v2394_v55 = vmul.f32 1.442695, %v2341_v21 }
 0x648   :  { %v2384_v6 = vmul.f32 1.442695, %v2336_v53  ;;  %v7476_v37 = vpop.eup %7475  ;;  %2454 = vadd.xlane.f32.xlu0 %v8974_v61  ;;  %v2311_v54 = vpop.xlane.xlu1 %2310  ;;  %v2551_v25 = vpack.c.bf16 %v2527_v24, %v2526_v42  ;;  %v10400_v42 = vld [vmem:[#allocation24_spill] sm:$0xff] }
 0x649   :  { %v2301_v17 = vpop.xlane.xlu0 %2300  ;;  %7483 = vpow2.f32 %v2394_v55  ;;  %v2347_v40 = vsub.f32 %v8916_v32, %v2311_v54  ;;  %v2525_v20 = vmul.f32 %v7476_v37, %v8892_v39 }
 0x64a   :  { %v2342_v56 = vsub.f32 %v8913_v47, %v2301_v17  ;;  %7485 = vpow2.f32 %v2384_v6 }
 0x64b   :  { %v8983_v35 = vpop.eup %7477  ;;  %v2406_v43 = vmul.f32 1.442695, %v2347_v40  ;;  %v2550_v58 = vpack.c.bf16 %v2525_v20, %v2524_v63  ;;  %v10397_v40 = vld [vmem:[#allocation26_spill] sm:$0xff] }
 0x64c   :  { %v2396_v29 = vmul.f32 1.442695, %v2342_v56  ;;  %2450 = vadd.xlane.f32.xlu0 %v8983_v35  ;;  %v2307_v15 = vpop.xlane.xlu1 %2306  ;;  %v10398_v56 = vld [vmem:[#allocation14_spill] sm:$0xff] }
 0x64d   :  { %v2297_v7 = vpop.xlane.xlu0 %2296  ;;  %7487 = vpow2.f32 %v2406_v43  ;;  %v2345_v32 = vsub.f32 %v8924_v23, %v2307_v15  ;;  %6607 = vmatprep.mubr.bf16.mxu1 %v2550_v58  ;;  %v10399_v20 = vld [vmem:[#allocation30_spill] sm:$0xff]  ;;  %v10401_v43 = vld [vmem:[#allocation29_spill] sm:$0xff]  ;;  %v10404_v15 = vld [vmem:[#allocation32_spill] sm:$0xff] }
 0x64e   :  { %v2340_v47 = vsub.f32 %v8921_v30, %v2297_v7  ;;  %7489 = vpow2.f32 %v2396_v29  ;;  %6608 = vmatmul.mubr.bf16.gmra.mrb[132].mxu1 %v2551_v25  ;;  %v10402_v29 = vld [vmem:[#allocation28_spill] sm:$0xff]  ;;  %v10403_v58 = vld [vmem:[#allocation41_spill] sm:$0xff]  ;;  %v10405_v7 = vld [vmem:[#allocation15_spill] sm:$0xff] }
 0x64f   :  { %v8988_v39 = vpop.eup %7479  ;;  %v2402_v49 = vmul.f32 1.442695, %v2345_v32  ;;  %v10406_v25 = vld [vmem:[#allocation36_spill] sm:$0xff] }
 0x650   :  { %v2392_v57 = vmul.f32 1.442695, %v2340_v47  ;;  %v8990_v14 = vpop.eup %7481  ;;  %2462 = vadd.xlane.f32.xlu0 %v8988_v39  ;;  %v2319_v19 = vpop.xlane.xlu1 %2318  ;;  %v10407_v32 = vld [vmem:[#allocation20_spill] sm:$0xff] }
 0x651   :  { %v2309_v33 = vpop.xlane.xlu0 %2308  ;;  %7491 = vpow2.f32 %v2402_v49  ;;  %2452 = vadd.xlane.f32.xlu1 %v8990_v14  ;;  %v2351_v17 = vsub.f32 %v8932_v28, %v2319_v19  ;;  %v10408_v47 = vld [vmem:[#allocation12_spill] sm:$0xff]  ;;  %v10409_v49 = vld [vmem:[#allocation27_spill] sm:$0xff]  ;;  %v10416_v19 = vld [vmem:[#allocation25_spill] sm:$0xff] }
 0x652   :  { %v2346_v62 = vsub.f32 %v8929_v2, %v2309_v33  ;;  %7493 = vpow2.f32 %v2392_v57  ;;  %v10410_v57 = vld [vmem:[#allocation18_spill] sm:$0xff]  ;;  %v10411_v33 = vld [vmem:[#allocation31_spill] sm:$0xff] }
 0x653   :  { %v8995_v23 = vpop.eup %7483  ;;  %v2414_v24 = vmul.f32 1.442695, %v2351_v17 }
 0x654   :  { %v2404_v30 = vmul.f32 1.442695, %v2346_v62  ;;  %v8997_v36 = vpop.eup %7485  ;;  %2458 = vadd.xlane.f32.xlu0 %v8995_v23  ;;  %v10412_v62 = vld [vmem:[#allocation19_spill] sm:$0xff] }
 0x655   :  { %v2305_v46 = vpop.xlane.xlu0 %2304  ;;  %2448 = vadd.xlane.f32.xlu1 %v8997_v36 }
 0x656   :  { %v2344_v44 = vsub.f32 %v8937_v59, %v2305_v46  ;;  %7495 = vpow2.f32 %v2404_v30  ;;  %v2315_v59 = vpop.xlane.xlu1 %2314  ;;  %v10413_v30 = vld [vmem:[#allocation40_spill] sm:$0xff]  ;;  %v10414_v46 = vld [vmem:[#allocation22_spill] sm:$0xff] }
 0x657   :  { %v9002_v22 = vpop.eup %7487  ;;  %v2349_v54 = vsub.f32 %v8940_v50, %v2315_v59  ;;  %v10420_v59 = vld [vmem:[#allocation38_spill] sm:$0xff] }
 0x658   :  { %v2400_v12 = vmul.f32 1.442695, %v2344_v44  ;;  %v9004_v34 = vpop.eup %7489  ;;  %2470 = vadd.xlane.f32.xlu0 %v9002_v22  ;;  %v10415_v44 = vld [vmem:[#allocation39_spill] sm:$0xff] }
 0x659   :  { %v2317_v2 = vpop.xlane.xlu0 %2316  ;;  %2460 = vadd.xlane.f32.xlu1 %v9004_v34  ;;  %v2410_v63 = vmul.f32 1.442695, %v2349_v54  ;;  %v10423_v54 = vld [vmem:[#allocation17_spill] sm:$0xff] }
 0x65a   :  { %v2350_v45 = vsub.f32 %v8945_v8, %v2317_v2  ;;  %7497 = vpow2.f32 %v2400_v12  ;;  %v2708_v8 = vpop.permute.xlu1 %2707  ;;  %v10417_v12 = vld [vmem:[#allocation42_spill] sm:$0xff] }
 0x65b   :  { %v9009_v10 = vpop.eup %7491  ;;  %v10418_v2 = vld [vmem:[#allocation34_spill] sm:$0xff] }
 0x65c   :  { %v2412_v51 = vmul.f32 1.442695, %v2350_v45  ;;  %v9011_v3 = vpop.eup %7493  ;;  %2466 = vadd.xlane.f32.xlu0 %v9009_v10 }
 0x65d   :  { %v2313_v4 = vpop.xlane.xlu0 %2312  ;;  %2456 = vadd.xlane.f32.xlu1 %v9011_v3 }
 0x65e   :  { %7499 = vpow2.f32 %v2412_v51  ;;  %v2348_v21 = vsub.f32 %v8949_v11, %v2313_v4  ;;  %v10419_v51 = vld [vmem:[#allocation44_spill] sm:$0xff] }
 0x660   :  { %v2408_v53 = vmul.f32 1.442695, %v2348_v21  ;;  %v9016_v18 = vpop.eup %7495  ;;  %v10421_v21 = vld [vmem:[#allocation46_spill] sm:$0xff] }
 0x661   :  { %v2706_v55 = vpop.permute.xlu0 %2705  ;;  %2468 = vadd.xlane.f32.xlu1 %v9016_v18 }
 0x662   :  { %7501 = vpow2.f32 %v2408_v53  ;;  %6619 = vmatprep.subr.bf16.mxu0 %v2706_v55  ;;  %v10422_v53 = vld [vmem:[#allocation13_spill] sm:$0xff] }
 0x663   :  { %6620 = vmatpush3.bf16.msra.mxu0 %v2706_v55  ;;  %7503 = vpow2.f32 %v2410_v63 }
 0x664   :  { %6621 = vmatprep.subr.bf16.mxu0 %v2708_v8  ;;  %v9019_v6 = vpop.eup %7497  ;;  %7505 = vpow2.f32 %v2414_v24  ;;  %v10424_v24 = vld [vmem:[#allocation23_spill] sm:$0xff] }
 0x665   :  { %2464 = vadd.xlane.f32.xlu1 %v9019_v6 }
 0x667   :  { %6622 = vmatpush3.bf16.msra.mxu0 %v2708_v8 }
 0x668   :  { %v9022_v37 = vpop.eup %7499 }
 0x669   :  { %2476 = vadd.xlane.f32.xlu1 %v9022_v37 }
 0x66c   :  { %v9025_v11 = vpop.eup %7501 }
 0x66d   :  { %2472 = vadd.xlane.f32.xlu1 %v9025_v11  ;;  %v9042_v50 = vpop.eup %7503 }
 0x66e   :  { %v9047_v28 = vpop.eup %7505 }
 0x672   :  { %2709 = vrot.lane.b32.xlu0 %v10377_v27, %s7898_s2 }
 0x67e   :  { %2711 = vrot.lane.b32.xlu1 %v10379_v41, %s7898_s2 }
 0x682   :  { %3109 = vrot.lane.b32.xlu1 %v8010_v0, %s7893_s1 }
 0x686   :  { %3111 = vrot.lane.b32.xlu1 %v8022_v13, %s7893_s1 }
 0x68a   :  { %3113 = vrot.lane.b32.xlu1 %v8034_v26, %s7893_s1 }
 0x68e   :  { %3284 = vrot.lane.b32.xlu1 %v8095_v48, %s7893_s1 }
 0x691   :  { %2474 = vadd.xlane.f32.xlu0 %v9042_v50 }
 0x692   :  { %3286 = vrot.lane.b32.xlu1 %v8115_v16, %s7893_s1 }
 0x695   :  { %2478 = vadd.xlane.f32.xlu0 %v9047_v28 }
 0x696   :  { %3288 = vrot.lane.b32.xlu1 %v7998_v52, %s7893_s1 }
 0x69a   :  { %3290 = vrot.lane.b32.xlu1 %v8012_v1, %s7893_s1 }
 0x69e   :  { %3093 = vrot.lane.b32.xlu1 %v8006_v60, %s7893_s1 }
 0x6a2   :  { %3095 = vrot.lane.b32.xlu1 %v8018_v9, %s7893_s1 }
 0x6a6   :  { %3294 = vrot.lane.b32.xlu1 %v10351_v38, %s7893_s1 }
 0x6aa   :  { %3101 = vrot.lane.b32.xlu1 %v10397_v40, %s7893_s1 }
 0x6ab   :  { %3107 = vrot.lane.b32.xlu0 %v10398_v56, %s7893_s1 }
 0x6ae   :  { %3103 = vrot.lane.b32.xlu1 %v10399_v20, %s7893_s1 }
 0x6af   :  { %3115 = vrot.lane.b32.xlu0 %v10400_v42, %s7893_s1 }
 0x6b2   :  { %3298 = vrot.lane.b32.xlu1 %v10401_v43, %s7893_s1 }
 0x6b3   :  { %3117 = vrot.lane.b32.xlu0 %v10402_v29, %s7893_s1 }
 0x6b6   :  { %3270 = vrot.lane.b32.xlu1 %v10403_v58, %s7893_s1 }
 0x6b7   :  { %3119 = vrot.lane.b32.xlu0 %v10404_v15, %s7893_s1 }
 0x6ba   :  { %3274 = vrot.lane.b32.xlu1 %v10405_v7, %s7893_s1 }
 0x6bb   :  { %3121 = vrot.lane.b32.xlu0 %v10406_v25, %s7893_s1 }
 0x6be   :  { %3278 = vrot.lane.b32.xlu1 %v10407_v32, %s7893_s1 }
 0x6bf   :  { %3091 = vrot.lane.b32.xlu0 %v10408_v47, %s7893_s1 }
 0x6c2   :  { %3282 = vrot.lane.b32.xlu1 %v10409_v49, %s7893_s1 }
 0x6c3   :  { %3292 = vrot.lane.b32.xlu0 %v10410_v57, %s7893_s1 }
 0x6c6   :  { %3751 = vrot.lane.b32.xlu1 %v10411_v33, %s7893_s1 }
 0x6c7   :  { %3097 = vrot.lane.b32.xlu0 %v10412_v62, %s7893_s1 }
 0x6ca   :  { %3757 = vrot.lane.b32.xlu1 %v10413_v30, %s7893_s1 }
 0x6cb   :  { %3099 = vrot.lane.b32.xlu0 %v10414_v46, %s7893_s1 }
 0x6ce   :  { %3759 = vrot.lane.b32.xlu1 %v10415_v44, %s7893_s1 }
 0x6cf   :  { %3296 = vrot.lane.b32.xlu0 %v10416_v19, %s7893_s1  ;;  %v10426_v19 = vld [vmem:[#allocation37_spill] sm:$0xff] }
 0x6d2   :  { %3763 = vrot.lane.b32.xlu1 %v10417_v12, %s7893_s1 }
 0x6d3   :  { %3105 = vrot.lane.b32.xlu0 %v10418_v2, %s7893_s1  ;;  %v10425_v2 = vld [vmem:[#allocation33_spill] sm:$0xff] }
 0x6d5   :  { %v2455_v45 = vpop.xlane.xlu0 %2454 }
 0x6d6   :  { %3872 = vrot.lane.b32.xlu1 %v10419_v51, %s7893_s1 }
 0x6d7   :  { %3268 = vrot.lane.b32.xlu0 %v10420_v59, %s7893_s1 }
 0x6d9   :  { %v2451_v4 = vpop.xlane.xlu0 %2450 }
 0x6da   :  { %3876 = vrot.lane.b32.xlu1 %v10421_v21, %s7893_s1  ;;  %7507 = vrcp.f32 %v2451_v4 }
 0x6db   :  { %3272 = vrot.lane.b32.xlu0 %v10422_v53, %s7893_s1 }
 0x6dd   :  { %v2463_v55 = vpop.xlane.xlu0 %2462 }
 0x6de   :  { %v2453_v8 = vpop.xlane.xlu1 %2452 }
 0x6df   :  { %3276 = vrot.lane.b32.xlu0 %v10423_v54, %s7893_s1 }
 0x6e1   :  { %v2459_v17 = vpop.xlane.xlu0 %2458 }
 0x6e2   :  { %v2449_v63 = vpop.xlane.xlu1 %2448 }
 0x6e3   :  { %7509 = vrcp.f32 %v2449_v63  ;;  %3280 = vrot.lane.b32.xlu0 %v10424_v24, %s7893_s1  ;;  %v10427_v24 = vld [vmem:[#allocation35_spill] sm:$0xff] }
 0x6e4   :  { %v7508_v53 = vpop.eup %7507  ;;  %7511 = vrcp.f32 %v2453_v8  ;;  %v7277_v8 = vld [vmem:[#allocation7 + $0x10] sm:$0xff]  }
 0x6e5   :  { %v2471_v59 = vpop.xlane.xlu0 %2470  ;;  %v2529_v46 = vmul.f32 %v7508_v53, %v8983_v35 }
 0x6e6   :  { %v2461_v51 = vpop.xlane.xlu1 %2460 }
 0x6e7   :  { %3749 = vrot.lane.b32.xlu0 %v10425_v2, %s7893_s1 }
 0x6e9   :  { %v2467_v21 = vpop.xlane.xlu0 %2466 }
 0x6ea   :  { %v2457_v12 = vpop.xlane.xlu1 %2456 }
 0x6eb   :  { %3753 = vrot.lane.b32.xlu0 %v10426_v19, %s7893_s1  ;;  %7513 = vrcp.f32 %v2457_v12  ;;  %v10428_v19 = vld [vmem:[#allocation43_spill] sm:$0xff] }
 0x6ec   :  { %7515 = vrcp.f32 %v2455_v45  ;;  %v10430_v12 = vld [vmem:[#allocation47_spill] sm:$0xff] }
 0x6ed   :  { %v7510_v44 = vpop.eup %7509  ;;  %v2710_v54 = vpop.permute.xlu0 %2709  ;;  %7517 = vrcp.f32 %v2459_v17 }
 0x6ee   :  { %v2469_v4 = vpop.xlane.xlu1 %2468  ;;  %6623 = vmatprep.subr.bf16.mxu0 %v2710_v54  ;;  %v2528_v63 = vmul.f32 %v7510_v44, %v8997_v36  ;;  %v10429_v36 = vld [vmem:[#allocation45_spill] sm:$0xff]  ;;  %7519 = vrcp.f32 %v2461_v51  ;;  %v7512_v35 = vpop.eup %7511 }
 0x6ef   :  { %3755 = vrot.lane.b32.xlu0 %v10427_v24, %s7893_s1  ;;  %6624 = vmatpush3.bf16.msra.mxu0 %v2710_v54  ;;  %v2530_v53 = vmul.f32 %v7512_v35, %v8990_v14 }
 0x6f0   :  { %v2552_v2 = vpack.c.bf16 %v2529_v46, %v2528_v63 }
 0x6f2   :  { %v2465_v30 = vpop.xlane.xlu1 %2464  ;;  %6627 = vmatprep.mubr.bf16.mxu0 %v2552_v2 }
 0x6f3   :  { %3761 = vrot.lane.b32.xlu0 %v10428_v19, %s7893_s1  ;;  %7521 = vrcp.f32 %v2465_v30 }
 0x6f4   :  { %7523 = vrcp.f32 %v2463_v55 }
 0x6f5   :  { %v7514_v46 = vpop.eup %7513  ;;  %7525 = vrcp.f32 %v2467_v21  ;;  %v7278_v21 = vld [vmem:[#allocation7 + $0x18] sm:$0xff]  }
 0x6f6   :  { %v9126_v62 = vpop.xlane.xlu1 %2476  ;;  %v7516_v2 = vpop.eup %7515  ;;  %v2532_v17 = vmul.f32 %v7514_v46, %v9011_v3  ;;  %7527 = vrcp.f32 %v2469_v4 }
 0x6f7   :  { %3870 = vrot.lane.b32.xlu0 %v10429_v36, %s7893_s1  ;;  %v7518_v45 = vpop.eup %7517  ;;  %v2531_v51 = vmul.f32 %v7516_v2, %v8974_v61  ;;  %7529 = vrcp.f32 %v2471_v59 }
 0x6f8   :  { %v2533_v30 = vmul.f32 %v7518_v45, %v8995_v23  ;;  %v7520_v63 = vpop.eup %7519 }
 0x6f9   :  { %v2553_v55 = vpack.c.bf16 %v2531_v51, %v2530_v53  ;;  %v2534_v23 = vmul.f32 %v7520_v63, %v9004_v34 }
 0x6fa   :  { %v9130_v44 = vpop.xlane.xlu1 %2472  ;;  %v2554_v36 = vpack.c.bf16 %v2533_v30, %v2532_v17 }
 0x6fb   :  { %3874 = vrot.lane.b32.xlu0 %v10430_v12, %s7893_s1  ;;  %7531 = vrcp.f32 %v9130_v44 }
 0x6fd   :  { %v7522_v14 = vpop.eup %7521 }
 0x6fe   :  { %v2712_v54 = vpop.permute.xlu1 %2711  ;;  %v7524_v35 = vpop.eup %7523  ;;  %v2536_v59 = vmul.f32 %v7522_v14, %v9019_v6 }
 0x6ff   :  { %6625 = vmatprep.subr.bf16.mxu0 %v2712_v54  ;;  %v7526_v61 = vpop.eup %7525 }
 0x700   :  { %6626 = vmatpush3.bf16.msra.mxu0 %v2712_v54  ;;  %v2537_v54 = vmul.f32 %v7526_v61, %v9009_v10  ;;  %v7528_v17 = vpop.eup %7527 }
 0x701   :  { %6643 = vmatprep.subr.bf16.mxu0 %v7277_v8  ;;  %v7530_v6 = vpop.eup %7529 }
 0x702   :  { %v9138_v12 = vpop.permute.xlu1 %3109  ;;  %v2556_v30 = vpack.c.bf16 %v2537_v54, %v2536_v59  ;;  %v2539_v61 = vmul.f32 %v7530_v6, %v9002_v22 }
 0x703   :  { %6628 = vmatmul.mubr.bf16.vlgmr.msra.gmra.mrb[104].mxu0 %v2553_v55 }
 0x704   :  { %6631 = vmatprep.mubr.bf16.mxu0 %v2554_v36  ;;  %v9140_v3 = vpop.f32.mrb[120].mxu1  ;;  %6644 = vmatpush3.bf16.msra.mxu0 %v7277_v8  ;;  %v2535_v36 = vmul.f32 %v7524_v35, %v8988_v39  ;;  %v2538_v39 = vmul.f32 %v7528_v17, %v9016_v18 }
 0x705   :  { %v9142_v4 = vpop.f32.mrb[121].mxu1  ;;  %6645 = vmatprep.subr.bf16.mxu0 %v7278_v21 }
 0x706   :  { %v9145_v46 = vpop.permute.xlu1 %3111  ;;  %v9147_v2 = vpop.f32.mrb[122].mxu1  ;;  %v2555_v34 = vpack.c.bf16 %v2535_v36, %v2534_v23  ;;  %v2557_v59 = vpack.c.bf16 %v2539_v61, %v2538_v39 }
 0x707   :  { %v9152_v53 = vpop.f32.mrb[123].mxu1 }
 0x708   :  { %6646 = vmatpush3.bf16.msra.mxu0 %v7278_v21 }
 0x70a   :  { %v9158_v51 = vpop.permute.xlu1 %3113 }
 0x70b   :  { %6632 = vmatmul.mubr.bf16.gmra.mrb[108].mxu0 %v2555_v34 }
 0x70c   :  { %6635 = vmatprep.mubr.bf16.mxu0 %v2556_v30  ;;  %v9160_v55 = vpop.f32.mrb[124].mxu1 }
 0x70d   :  { %v9162_v63 = vpop.f32.mrb[125].mxu1 }
 0x70e   :  { %v3285_v14 = vpop.permute.xlu1 %3284  ;;  %v9165_v35 = vpop.f32.mrb[126].mxu1 }
 0x70f   :  { %7191 = vmatprep.subr.msk.bf16.mxu0 %vm808_vm0, %v3285_v14  ;;  %v2645_v21 = vpop.f32.mrb[127].mxu1 }
 0x710   :  { %v2820_v23 = vpack.c.bf16 %v2645_v21, %v9162_v63 }
 0x712   :  { %v9176_v18 = vpop.permute.xlu1 %3286 }
 0x713   :  { %6636 = vmatmul.mubr.bf16.gmra.mrb[112].mxu0 %v2557_v59 }
 0x716   :  { %v9187_v63 = vpop.permute.xlu1 %3288 }
 0x719   :  { %v9172_v36 = vpop.f32.mrb[128].mxu1 }
 0x71a   :  { %v9174_v54 = vpop.f32.mrb[129].mxu1 }
 0x71b   :  { %v9178_v34 = vpop.f32.mrb[130].mxu1 }
 0x71c   :  { %v9182_v30 = vpop.f32.mrb[131].mxu1 }
 0x71d   :  { %v2822_v22 = vpack.c.bf16 %v9182_v30, %v9174_v54  ;;  %v7532_v30 = vpop.eup %7531 }
 0x71e   :  { %v2475_v6 = vpop.xlane.xlu0 %2474 }
 0x71f   :  { %7533 = vrcp.f32 %v2475_v6  ;;  %v9202_v6 = vpop.permute.xlu1 %3290 }
 0x720   :  { %7535 = vrcp.f32 %v9126_v62 }
 0x721   :  { %v9189_v39 = vpop.f32.mrb[132].mxu1 }
 0x722   :  { %v9192_v21 = vpop.f32.mrb[133].mxu1  ;;  %v2479_v59 = vpop.xlane.xlu0 %2478 }
 0x723   :  { %v9194_v61 = vpop.f32.mrb[134].mxu1  ;;  %7537 = vrcp.f32 %v2479_v59  ;;  %v2540_v59 = vmul.f32 %v7532_v30, %v9025_v11 }
 0x724   :  { %v9198_v44 = vpop.f32.mrb[135].mxu1 }
 0x725   :  { %v2824_v54 = vpack.c.bf16 %v9198_v44, %v9192_v21  ;;  %v9210_v44 = vpop.permute.xlu1 %3093 }
 0x726   :  { %v3108_v10 = vpop.permute.xlu0 %3107 }
 0x727   :  { %7183 = vmatprep.subr.msk.bf16.mxu1 %vm808_vm0, %v3108_v10  ;;  %v3148_v62 = vsel %vm808_vm0, %v3108_v10, 0 }
 0x728   :  { %6680 = vmatpush3.bf16.xpose.msra.mxu1 %v3148_v62  ;;  %v3151_v62 = vsel %vm808_vm0, %v9138_v12, 0 }
 0x729   :  { %v7534_v45 = vpop.eup %7533  ;;  %7184 = vmatprep.subr.msk.bf16.mxu1 %vm808_vm0, %v9138_v12  ;;  %v9218_v11 = vpop.permute.xlu1 %3095 }
 0x72a   :  { %v2541_v17 = vmul.f32 %v7534_v45, %v9042_v50  ;;  %v3116_v8 = vpop.permute.xlu0 %3115  ;;  %v7536_v19 = vpop.eup %7535  ;;  %v10431_v45 = vpack.c.bf16 %v9152_v53, %v9142_v4 }
 0x72b   :  { %v2542_v57 = vmul.f32 %v7536_v19, %v9022_v37 }
 0x72c   :  { %v2558_v21 = vpack.c.bf16 %v2541_v17, %v2540_v59 }
 0x72d   :  { %v7538_v24 = vpop.eup %7537  ;;  %v3295_v19 = vpop.permute.xlu1 %3294 }
 0x72e   :  { %6639 = vmatprep.mubr.bf16.mxu0 %v2558_v21  ;;  %v3118_v33 = vpop.permute.xlu0 %3117  ;;  %v2543_v10 = vmul.f32 %v7538_v24, %v9047_v28  ;;  %v3154_v28 = vsel %vm808_vm0, %v9145_v46, 0 }
 0x730   :  { %6682 = vmatpush3.bf16.xpose.msra.mxu1 %v3151_v62  ;;  %v2559_v49 = vpack.c.bf16 %v2543_v10, %v2542_v57  ;;  %v10432_v57 = vpack.c.bf16 %v9147_v2, %v9140_v3  ;;  %v10433_v3 = vpack.c.bf16 %v9165_v35, %v9160_v55  ;;  %v3328_v2 = vsel %vm808_vm0, %v9176_v18, 0 }
 0x731   :  { %7185 = vmatprep.subr.msk.bf16.mxu1 %vm808_vm0, %v9145_v46  ;;  %v9237_v12 = vpop.permute.xlu1 %3101  ;;  %v3157_v46 = vsel %vm808_vm0, %v9158_v51, 0  ;;  %v10434_v35 = vpack.c.bf16 %v9178_v34, %v9172_v36  ;;  %v10435_v36 = vpack.c.bf16 %v9194_v61, %v9189_v39  ;;  %v3334_v34 = vsel %vm808_vm0, %v9202_v6, 0 }
 0x732   :  { %6640 = vmatmul.mubr.bf16.gmra.mrb[116].mxu0 %v2559_v49  ;;  %v3120_v50 = vpop.permute.xlu0 %3119  ;;  %v3325_v49 = vsel %vm808_vm0, %v3285_v14, 0 }
 0x733   :  { %6647 = vmatprep.mubr.msk.bf16.mxu0 %vm808_vm0, %v10431_v45  ;;  %v3166_v59 = vsel %vm808_vm0, %v3120_v50, 0 }
 0x735   :  { %v9249_v14 = vpop.permute.xlu1 %3103 }
 0x736   :  { %v3122_v37 = vpop.permute.xlu0 %3121 }
 0x737   :  { %v3169_v10 = vsel %vm808_vm0, %v3122_v37, 0 }
 0x738   :  { %6684 = vmatpush3.bf16.xpose.msra.mxu1 %v3154_v28 }
 0x739   :  { %7186 = vmatprep.subr.msk.bf16.mxu1 %vm808_vm0, %v9158_v51  ;;  %v3299_v55 = vpop.permute.xlu1 %3298 }
 0x73a   :  { %6648 = vmatmul.mubr.msk.bf16.vlgmr.msra.gmra.mrb[56].mxu0 %vm808_vm0, %v10432_v57  ;;  %v3092_v24 = vpop.permute.xlu0 %3091 }
 0x73b   :  { %6712 = vmatpush3.bf16.xpose.msra.mxu0 %v3325_v49  ;;  %6651 = vmatprep.mubr.msk.bf16.mxu0 %vm808_vm0, %v2820_v23  ;;  %v3160_v23 = vsel %vm808_vm0, %v3116_v8, 0 }
 0x73c   :  { %6695 = vmatprep.mubr.msk.bf16.mxu1 %vm808_vm0, %v3092_v24  ;;  %7192 = vmatprep.subr.msk.bf16.mxu0 %vm808_vm0, %v9176_v18  ;;  %v3331_v18 = vsel %vm808_vm0, %v9187_v63, 0 }
 0x73d   :  { %v9265_v30 = vpop.permute.xlu1 %3270 }
 0x73e   :  { %v3293_v4 = vpop.permute.xlu0 %3292 }
 0x73f   :  { %v3337_v39 = vsel %vm808_vm0, %v3293_v4, 0 }
 0x740   :  { %6686 = vmatpush3.bf16.xpose.msra.mxu1 %v3157_v46 }
 0x741   :  { %7187 = vmatprep.subr.msk.bf16.mxu1 %vm808_vm0, %v3116_v8 }
 0x742   :  { %6652 = vmatmul.mubr.msk.bf16.gmra.mrb[60].mxu0 %vm808_vm0, %v10433_v3  ;;  %v3098_v53 = vpop.permute.xlu0 %3097 }
 0x743   :  { %6714 = vmatpush3.bf16.xpose.msra.mxu0 %v3328_v2  ;;  %6655 = vmatprep.mubr.msk.bf16.mxu0 %vm808_vm0, %v2822_v22  ;;  %v3163_v22 = vsel %vm808_vm0, %v3118_v33, 0 }
 0x744   :  { %7193 = vmatprep.subr.msk.bf16.mxu0 %vm808_vm0, %v9187_v63 }
 0x746   :  { %v3100_v51 = vpop.permute.xlu0 %3099 }
 0x748   :  { %6688 = vmatpush3.bf16.xpose.msra.mxu1 %v3160_v23 }
 0x749   :  { %7188 = vmatprep.subr.msk.bf16.mxu1 %vm808_vm0, %v3118_v33 }
 0x74a   :  { %6656 = vmatmul.mubr.msk.bf16.gmra.mrb[64].mxu0 %vm808_vm0, %v10434_v35  ;;  %v3297_v17 = vpop.permute.xlu0 %3296 }
 0x74b   :  { %6716 = vmatpush3.bf16.xpose.msra.mxu0 %v3331_v18  ;;  %6659 = vmatprep.mubr.msk.bf16.mxu0 %vm808_vm0, %v2824_v54  ;;  %v9277_v54 = vpop.permute.xlu1 %3274  ;;  %v3343_v57 = vsel %vm808_vm0, %v3297_v17, 0 }
 0x74c   :  { %7194 = vmatprep.subr.msk.bf16.mxu0 %vm808_vm0, %v9202_v6 }
 0x74e   :  { %v3106_v8 = vpop.permute.xlu0 %3105 }
 0x74f   :  { %v9286_v6 = vpop.permute.xlu1 %3278 }
 0x750   :  { %6690 = vmatpush3.bf16.xpose.msra.mxu1 %v3163_v22 }
 0x751   :  { %7189 = vmatprep.subr.msk.bf16.mxu1 %vm808_vm0, %v3120_v50  ;;  %v3340_v50 = vsel %vm808_vm0, %v3295_v19, 0 }
 0x752   :  { %6660 = vmatmul.mubr.msk.bf16.gmra.mrb[68].mxu0 %vm808_vm0, %v10435_v36  ;;  %v9274_v63 = vpop.permute.xlu0 %3268 }
 0x753   :  { %6718 = vmatpush3.bf16.xpose.msra.mxu0 %v3334_v34  ;;  %v9292_v62 = vpop.permute.xlu1 %3282 }
 0x754   :  { %7195 = vmatprep.subr.msk.bf16.mxu0 %vm808_vm0, %v3293_v4 }
 0x756   :  { %v9279_v33 = vpop.permute.xlu0 %3272 }
 0x757   :  { %v3752_v28 = vpop.permute.xlu1 %3751 }
 0x758   :  { %6692 = vmatpush3.bf16.xpose.msra.mxu1 %v3166_v59 }
 0x759   :  { %7190 = vmatprep.subr.msk.bf16.mxu1 %vm808_vm0, %v3122_v37 }
 0x75a   :  { %v9284_v61 = vpop.permute.xlu0 %3276 }
 0x75b   :  { %6720 = vmatpush3.bf16.xpose.msra.mxu0 %v3337_v39 }
 0x75c   :  { %7196 = vmatprep.subr.msk.bf16.mxu0 %vm808_vm0, %v3295_v19 }
 0x75e   :  { %v9289_v21 = vpop.permute.xlu0 %3280 }
 0x760   :  { %6694 = vmatpush3.bf16.xpose.msra.mxu1 %v3169_v10 }
 0x762   :  { %v3750_v45 = vpop.permute.xlu0 %3749 }
 0x763   :  { %6722 = vmatpush3.bf16.xpose.msra.mxu0 %v3340_v50  ;;  %6743 = vmatprep.subr.bf16.mxu1 %v3750_v45 }
 0x764   :  { %7197 = vmatprep.subr.msk.bf16.mxu0 %vm808_vm0, %v3297_v17 }
 0x766   :  { %v3754_v37 = vpop.permute.xlu0 %3753 }
 0x767   :  { %6696 = vmatmul.mubr.msk.bf16.vlgmr.msra.gmra.mrb[136].mxu1 %vm808_vm0, %v9210_v44  ;;  %v3758_v44 = vpop.permute.xlu1 %3757 }
 0x768   :  { %6699 = vmatprep.mubr.msk.bf16.mxu1 %vm808_vm0, %v9218_v11  ;;  %6744 = vmatpush3.bf16.msra.mxu1 %v3750_v45  ;;  %v3346_v11 = vsel %vm808_vm0, %v3299_v55, 0 }
 0x769   :  { %6745 = vmatprep.subr.bf16.mxu1 %v3752_v28 }
 0x76a   :  { %v3756_v19 = vpop.permute.xlu0 %3755 }
 0x76b   :  { %6724 = vmatpush3.bf16.xpose.msra.mxu0 %v3343_v57  ;;  %v3760_v49 = vpop.permute.xlu1 %3759 }
 0x76c   :  { %7198 = vmatprep.subr.msk.bf16.mxu0 %vm808_vm0, %v3299_v55  ;;  %6746 = vmatpush3.bf16.msra.mxu1 %v3752_v28 }
 0x76d   :  { %6747 = vmatprep.subr.bf16.mxu1 %v3754_v37 }
 0x76e   :  { %v3762_v24 = vpop.permute.xlu0 %3761 }
 0x76f   :  { %6700 = vmatmul.mubr.msk.bf16.gmra.mrb[140].mxu1 %vm808_vm0, %v3098_v53  ;;  %v3764_v4 = vpop.permute.xlu1 %3763 }
 0x770   :  { %6703 = vmatprep.mubr.msk.bf16.mxu1 %vm808_vm0, %v3100_v51  ;;  %6748 = vmatpush3.bf16.msra.mxu1 %v3754_v37 }
 0x771   :  { %6749 = vmatprep.subr.bf16.mxu1 %v3756_v19 }
 0x772   :  { %v9310_v46 = vpop.permute.xlu0 %3870 }
 0x773   :  { %6726 = vmatpush3.bf16.xpose.msra.mxu0 %v3346_v11 }
 0x774   :  { %6750 = vmatpush3.bf16.msra.mxu1 %v3756_v19 }
 0x775   :  { %6751 = vmatprep.subr.bf16.mxu1 %v3758_v44 }
 0x777   :  { %6704 = vmatmul.mubr.msk.bf16.gmra.mrb[144].mxu1 %vm808_vm0, %v9237_v12 }
 0x778   :  { %6707 = vmatprep.mubr.msk.bf16.mxu1 %vm808_vm0, %v9249_v14  ;;  %6752 = vmatpush3.bf16.msra.mxu1 %v3758_v44 }
 0x779   :  { %6753 = vmatprep.subr.bf16.mxu1 %v3760_v49 }
 0x77c   :  { %6754 = vmatpush3.bf16.msra.mxu1 %v3760_v49 }
 0x77d   :  { %6755 = vmatprep.subr.bf16.mxu1 %v3762_v24 }
 0x77f   :  { %6708 = vmatmul.mubr.msk.bf16.gmra.mrb[148].mxu1 %vm808_vm0, %v3106_v8 }
 0x780   :  { %6756 = vmatpush3.bf16.msra.mxu1 %v3762_v24  ;;  %v10437_v24 = vld [vmem:[#allocation54_spill] sm:$0xff] }
 0x781   :  { %6757 = vmatprep.subr.bf16.mxu1 %v3764_v4 }
 0x784   :  { %6758 = vmatpush3.bf16.msra.mxu1 %v3764_v4 }
 0x785   :  { %6775 = vmatprep.subr.bf16.mxu1 %v9310_v46 }
 0x7d6   :  { %v6629_v12 = vpop.f32.mrb[104].mxu0 }
 0x7d7   :  { %v2755_v3 = vpop.f32.mrb[105].mxu0 }
 0x7d8   :  { %v6630_v2 = vpop.f32.mrb[106].mxu0 }
 0x7d9   :  { %v2827_v53 = vpack.c.bf16 %v6630_v2, %v6629_v12  ;;  %v2758_v14 = vpop.f32.mrb[107].mxu0 }
 0x7da   :  { %v2826_v51 = vpack.c.bf16 %v2758_v14, %v2755_v3  ;;  %v10438_v3 = vld [vmem:[#allocation59_spill] sm:$0xff] }
 0x7dc   :  { %6663 = vmatprep.mubr.msk.bf16.mxu0 %vm808_vm0, %v2826_v51  ;;  %v10440_v51 = vld [vmem:[#allocation57_spill] sm:$0xff] }
 0x7dd   :  { %6664 = vmatmul.mubr.msk.bf16.gmra.mrb[72].mxu0 %vm808_vm0, %v2827_v53  ;;  %v10439_v53 = vld [vmem:[#allocation58_spill] sm:$0xff] }
 0x7de   :  { %v6633_v23 = vpop.f32.mrb[108].mxu0 }
 0x7df   :  { %v2771_v55 = vpop.f32.mrb[109].mxu0 }
 0x7e0   :  { %v6634_v35 = vpop.f32.mrb[110].mxu0 }
 0x7e1   :  { %v2829_v18 = vpack.c.bf16 %v6634_v35, %v6633_v23  ;;  %v2774_v17 = vpop.f32.mrb[111].mxu0  ;;  %v10441_v35 = vld [vmem:[#allocation56_spill] sm:$0xff] }
 0x7e2   :  { %v2828_v8 = vpack.c.bf16 %v2774_v17, %v2771_v55 }
 0x7e4   :  { %6667 = vmatprep.mubr.msk.bf16.mxu0 %vm808_vm0, %v2828_v8 }
 0x7e5   :  { %6668 = vmatmul.mubr.msk.bf16.gmra.mrb[76].mxu0 %vm808_vm0, %v2829_v18 }
 0x7e6   :  { %v6637_v22 = vpop.f32.mrb[112].mxu0 }
 0x7e7   :  { %v2787_v36 = vpop.f32.mrb[113].mxu0 }
 0x7e8   :  { %v6638_v34 = vpop.f32.mrb[114].mxu0 }
 0x7e9   :  { %v2831_v59 = vpack.c.bf16 %v6638_v34, %v6637_v22  ;;  %v2790_v39 = vpop.f32.mrb[115].mxu0  ;;  %v10442_v22 = vld [vmem:[#allocation63_spill] sm:$0xff] }
 0x7ea   :  { %v2830_v10 = vpack.c.bf16 %v2790_v39, %v2787_v36 }
 0x7ec   :  { %6671 = vmatprep.mubr.msk.bf16.mxu0 %vm808_vm0, %v2830_v10  ;;  %v10444_v10 = vld [vmem:[#allocation61_spill] sm:$0xff] }
 0x7ed   :  { %6672 = vmatmul.mubr.msk.bf16.gmra.mrb[80].mxu0 %vm808_vm0, %v2831_v59  ;;  %v10443_v59 = vld [vmem:[#allocation62_spill] sm:$0xff] }
 0x805   :  { %v6641_v50 = vpop.f32.mrb[116].mxu0 }
 0x806   :  { %v2803_v45 = vpop.f32.mrb[117].mxu0 }
 0x807   :  { %v6642_v28 = vpop.f32.mrb[118].mxu0 }
 0x808   :  { %v2833_v37 = vpack.c.bf16 %v6642_v28, %v6641_v50  ;;  %v2806_v57 = vpop.f32.mrb[119].mxu0  ;;  %v10445_v28 = vld [vmem:[#allocation60_spill] sm:$0xff] }
 0x809   :  { %v2832_v19 = vpack.c.bf16 %v2806_v57, %v2803_v45 }
 0x80b   :  { %6675 = vmatprep.mubr.msk.bf16.mxu0 %vm808_vm0, %v2832_v19 }
 0x80c   :  { %6676 = vmatmul.mubr.msk.bf16.gmra.mrb[84].mxu0 %vm808_vm0, %v2833_v37 }
 0x80d   :  { %6727 = vmatprep.mubr.msk.bf16.mxu0 %vm808_vm0, %v9274_v63 }
 0x814   :  { %6728 = vmatmul.mubr.msk.bf16.vlgmr.msra.gmra.mrb[120].mxu0 %vm808_vm0, %v9265_v30 }
 0x815   :  { %6731 = vmatprep.mubr.msk.bf16.mxu0 %vm808_vm0, %v9279_v33 }
 0x81c   :  { %6732 = vmatmul.mubr.msk.bf16.gmra.mrb[124].mxu0 %vm808_vm0, %v9277_v54  ;;  %v10436_v54 = vld [vmem:[#allocation55_spill] sm:$0xff] }
 0x81d   :  { %6735 = vmatprep.mubr.msk.bf16.mxu0 %vm808_vm0, %v9284_v61 }
 0x824   :  { %6736 = vmatmul.mubr.msk.bf16.gmra.mrb[128].mxu0 %vm808_vm0, %v9286_v6 }
 0x825   :  { %6739 = vmatprep.mubr.msk.bf16.mxu0 %vm808_vm0, %v9289_v21 }
 0x82c   :  { %6740 = vmatmul.mubr.msk.bf16.gmra.mrb[132].mxu0 %vm808_vm0, %v9292_v62 }
 0x83a   :  { %v6697_v63 = vpop.f32.mrb[136].mxu1 }
 0x83b   :  { %v3214_v30 = vadd.f32 %v6697_v63, %v10381_v5  ;;  %v3205_v44 = vpop.f32.mrb[137].mxu1  ;;  %v10446_v63 = vld [vmem:[#allocation67_spill] sm:$0xff] }
 0x83c   :  { %v6698_v33 = vpop.f32.mrb[138].mxu1  ;;  %v3206_v61 = vadd.f32 %v3205_v44, %v10383_v31 }
 0x83d   :  { %3449 = vmax.xlane.f32.xlu0 %v3214_v30  ;;  %v3208_v11 = vpop.f32.mrb[139].mxu1  ;;  %v3217_v4 = vadd.f32 %v6698_v33, %v10437_v24 }
 0x83e   :  { %v3209_v49 = vadd.f32 %v3208_v11, %v10436_v54  ;;  %v10447_v11 = vld [vmem:[#allocation66_spill] sm:$0xff] }
 0x840   :  { %3447 = vmax.xlane.f32.xlu1 %v3209_v49 }
 0x841   :  { %3445 = vmax.xlane.f32.xlu0 %v3206_v61 }
 0x842   :  { %v6701_v6 = vpop.f32.mrb[140].mxu1 }
 0x843   :  { %v3221_v21 = vpop.f32.mrb[141].mxu1  ;;  %v3230_v14 = vadd.f32 %v6701_v6, %v10439_v53 }
 0x844   :  { %v6702_v12 = vpop.f32.mrb[142].mxu1  ;;  %v3222_v18 = vadd.f32 %v3221_v21, %v10441_v35  ;;  %v10448_v21 = vld [vmem:[#allocation65_spill] sm:$0xff] }
 0x845   :  { %v9342_v62 = vadd.f32 %v6702_v12, %v10438_v3  ;;  %3451 = vmax.xlane.f32.xlu0 %v3217_v4  ;;  %v3224_v2 = vpop.f32.mrb[143].mxu1 }
 0x846   :  { %v3225_v23 = vadd.f32 %v3224_v2, %v10440_v51  ;;  %v10449_v2 = vld [vmem:[#allocation64_spill] sm:$0xff] }
 0x847   :  { %3459 = vmax.xlane.f32.xlu1 %v9342_v62 }
 0x849   :  { %3457 = vmax.xlane.f32.xlu0 %v3230_v14 }
 0x84a   :  { %v6705_v55 = vpop.f32.mrb[144].mxu1 }
 0x84b   :  { %3455 = vmax.xlane.f32.xlu1 %v3225_v23  ;;  %v3237_v17 = vpop.f32.mrb[145].mxu1  ;;  %v9352_v39 = vadd.f32 %v6705_v55, %v10443_v59 }
 0x84c   :  { %v6706_v8 = vpop.f32.mrb[146].mxu1  ;;  %v9360_v37 = vadd.f32 %v3237_v17, %v10445_v28  ;;  %v9380_v17 = vpop.permute.xlu1 %3872 }
 0x84d   :  { %v9349_v36 = vadd.f32 %v6706_v8, %v10442_v22  ;;  %3453 = vmax.xlane.f32.xlu0 %v3222_v18  ;;  %v3240_v34 = vpop.f32.mrb[147].mxu1  ;;  %v9382_v8 = vpop.permute.xlu0 %3874 }
 0x84e   :  { %v9356_v50 = vadd.f32 %v3240_v34, %v10444_v10 }
 0x84f   :  { %3467 = vmax.xlane.f32.xlu1 %v9349_v36 }
 0x851   :  { %3465 = vmax.xlane.f32.xlu0 %v9352_v39 }
 0x852   :  { %v6709_v45 = vpop.f32.mrb[148].mxu1 }
 0x853   :  { %3463 = vmax.xlane.f32.xlu1 %v9356_v50  ;;  %v3253_v57 = vpop.f32.mrb[149].mxu1  ;;  %v9368_v6 = vadd.f32 %v6709_v45, %v10447_v11  ;;  %v9384_v45 = vpop.permute.xlu1 %3876 }
 0x854   :  { %v6710_v19 = vpop.f32.mrb[150].mxu1  ;;  %v9376_v55 = vadd.f32 %v3253_v57, %v10449_v2 }
 0x855   :  { %v9364_v44 = vadd.f32 %v6710_v19, %v10446_v63  ;;  %3461 = vmax.xlane.f32.xlu0 %v9360_v37  ;;  %v3256_v33 = vpop.f32.mrb[151].mxu1 }
 0x856   :  { %v9372_v12 = vadd.f32 %v3256_v33, %v10448_v21 }
 0x857   :  { %3475 = vmax.xlane.f32.xlu1 %v9364_v44 }
 0x859   :  { %3473 = vmax.xlane.f32.xlu0 %v9368_v6 }
 0x85b   :  { %3471 = vmax.xlane.f32.xlu1 %v9372_v12 }
 0x85d   :  { %3469 = vmax.xlane.f32.xlu0 %v9376_v55 }
 0x8ca   :  { %v3450_v34 = vpop.xlane.xlu0 %3449 }
 0x8cb   :  { %v3511_v19 = vsub.f32 %v3214_v30, %v3450_v34 }
 0x8cd   :  { %v3545_v47 = vmul.f32 1.442695, %v3511_v19  ;;  %v3448_v32 = vpop.xlane.xlu1 %3447 }
 0x8ce   :  { %v3446_v33 = vpop.xlane.xlu0 %3445  ;;  %v3510_v57 = vsub.f32 %v3209_v49, %v3448_v32 }
 0x8cf   :  { %7539 = vpow2.f32 %v3545_v47  ;;  %v3509_v25 = vsub.f32 %v3206_v61, %v3446_v33 }
 0x8d0   :  { %v3543_v42 = vmul.f32 1.442695, %v3510_v57 }
 0x8d1   :  { %v3541_v7 = vmul.f32 1.442695, %v3509_v25 }
 0x8d2   :  { %v3452_v15 = vpop.xlane.xlu0 %3451 }
 0x8d3   :  { %7541 = vpow2.f32 %v3541_v7  ;;  %v3512_v58 = vsub.f32 %v3217_v4, %v3452_v15 }
 0x8d4   :  { %v3460_v29 = vpop.xlane.xlu1 %3459 }
 0x8d5   :  { %v3547_v43 = vmul.f32 1.442695, %v3512_v58  ;;  %v3516_v25 = vsub.f32 %v9342_v62, %v3460_v29 }
 0x8d6   :  { %v3458_v20 = vpop.xlane.xlu0 %3457 }
 0x8d7   :  { %7543 = vpow2.f32 %v3547_v43  ;;  %v3515_v56 = vsub.f32 %v3230_v14, %v3458_v20  ;;  %v3555_v43 = vmul.f32 1.442695, %v3516_v25 }
 0x8d8   :  { %v3456_v40 = vpop.xlane.xlu1 %3455  ;;  %7545 = vpow2.f32 %v3543_v42 }
 0x8d9   :  { %v9386_v38 = vpop.eup %7539  ;;  %v3553_v30 = vmul.f32 1.442695, %v3515_v56  ;;  %v3514_v34 = vsub.f32 %v3225_v23, %v3456_v40 }
 0x8da   :  { %3609 = vadd.xlane.f32.xlu1 %v9386_v38  ;;  %v3454_v47 = vpop.xlane.xlu0 %3453 }
 0x8db   :  { %7547 = vpow2.f32 %v3553_v30  ;;  %v3551_v7 = vmul.f32 1.442695, %v3514_v34  ;;  %v3513_v15 = vsub.f32 %v3222_v18, %v3454_v47 }
 0x8dc   :  { %v3468_v32 = vpop.xlane.xlu1 %3467 }
 0x8dd   :  { %v9390_v58 = vpop.eup %7541  ;;  %v3549_v49 = vmul.f32 1.442695, %v3513_v15  ;;  %7549 = vpow2.f32 %v3551_v7  ;;  %v3520_v29 = vsub.f32 %v9349_v36, %v3468_v32 }
 0x8de   :  { %3605 = vadd.xlane.f32.xlu1 %v9390_v58  ;;  %v3466_v20 = vpop.xlane.xlu0 %3465 }
 0x8df   :  { %7551 = vpow2.f32 %v3549_v49  ;;  %v3519_v40 = vsub.f32 %v9352_v39, %v3466_v20  ;;  %v3563_v19 = vmul.f32 1.442695, %v3520_v29 }
 0x8e0   :  { %v3464_v56 = vpop.xlane.xlu1 %3463  ;;  %7553 = vpow2.f32 %v3555_v43 }
 0x8e1   :  { %v9394_v42 = vpop.eup %7543  ;;  %v3561_v61 = vmul.f32 1.442695, %v3519_v40  ;;  %v3518_v39 = vsub.f32 %v9356_v50, %v3464_v56 }
 0x8e2   :  { %3611 = vadd.xlane.f32.xlu1 %v9394_v42  ;;  %v3462_v4 = vpop.xlane.xlu0 %3461  ;;  %v9399_v14 = vpop.eup %7545 }
 0x8e3   :  { %v3517_v62 = vsub.f32 %v9360_v37, %v3462_v4  ;;  %7555 = vpow2.f32 %v3561_v61  ;;  %v3559_v15 = vmul.f32 1.442695, %v3518_v39 }
 0x8e4   :  { %v3476_v33 = vpop.xlane.xlu1 %3475 }
 0x8e5   :  { %v9401_v23 = vpop.eup %7547  ;;  %v3557_v18 = vmul.f32 1.442695, %v3517_v62  ;;  %v3524_v49 = vsub.f32 %v9364_v44, %v3476_v33 }
 0x8e6   :  { %3607 = vadd.xlane.f32.xlu1 %v9399_v14  ;;  %3617 = vadd.xlane.f32.xlu0 %v9401_v23  ;;  %v3474_v36 = vpop.xlane.xlu0 %3473 }
 0x8e7   :  { %7557 = vpow2.f32 %v3557_v18  ;;  %v3523_v57 = vsub.f32 %v9368_v6, %v3474_v36  ;;  %v6729_v30 = vpop.f32.mrb[120].mxu0  ;;  %v9407_v37 = vpop.eup %7549  ;;  %v3571_v56 = vmul.f32 1.442695, %v3524_v49 }
 0x8e8   :  { %v3382_v34 = vpop.f32.mrb[121].mxu0  ;;  %7559 = vpow2.f32 %v3563_v19  ;;  %v3472_v20 = vpop.xlane.xlu1 %3471 }
 0x8e9   :  { %v9409_v47 = vpop.eup %7551  ;;  %v3569_v25 = vmul.f32 1.442695, %v3523_v57  ;;  %v6730_v7 = vpop.f32.mrb[122].mxu0  ;;  %v3522_v29 = vsub.f32 %v9372_v12, %v3472_v20 }
 0x8ea   :  { %v3385_v50 = vpop.f32.mrb[123].mxu0  ;;  %3615 = vadd.xlane.f32.xlu1 %v9407_v37  ;;  %3613 = vadd.xlane.f32.xlu0 %v9409_v47  ;;  %v3470_v32 = vpop.xlane.xlu0 %3469  ;;  %v9438_v49 = vadd.f32 %v6730_v7, %v10437_v24  ;;  %v9452_v7 = vadd.f32 %v6729_v30, %v10381_v5 }
 0x8eb   :  { %7561 = vpow2.f32 %v3569_v25  ;;  %v3521_v6 = vsub.f32 %v9376_v55, %v3470_v32  ;;  %v9415_v43 = vpop.eup %7553  ;;  %v3567_v55 = vmul.f32 1.442695, %v3522_v29 }
 0x8ec   :  { %7563 = vpow2.f32 %v3559_v15 }
 0x8ed   :  { %v3565_v40 = vmul.f32 1.442695, %v3521_v6  ;;  %v9419_v4 = vpop.eup %7555 }
 0x8ee   :  { %3619 = vadd.xlane.f32.xlu0 %v9415_v43 }
 0x8ef   :  { %7565 = vpow2.f32 %v3565_v40  ;;  %v6733_v61 = vpop.f32.mrb[124].mxu0  ;;  %v9445_v40 = vadd.f32 %v3385_v50, %v10436_v54  ;;  %v9460_v50 = vadd.f32 %v3382_v34, %v10383_v31 }
 0x8f0   :  { %v3398_v62 = vpop.f32.mrb[125].mxu0  ;;  %7567 = vpow2.f32 %v3571_v56  ;;  %v9468_v30 = vadd.f32 %v6733_v61, %v10439_v53 }
 0x8f1   :  { %v9421_v18 = vpop.eup %7557  ;;  %v6734_v44 = vpop.f32.mrb[126].mxu0  ;;  %7569 = vpow2.f32 %v3567_v55  ;;  %v9476_v34 = vadd.f32 %v3398_v62, %v10441_v35 }
 0x8f2   :  { %v3401_v19 = vpop.f32.mrb[127].mxu0  ;;  %3625 = vadd.xlane.f32.xlu0 %v9419_v4  ;;  %3621 = vadd.xlane.f32.xlu1 %v9421_v18  ;;  %v9425_v39 = vpop.eup %7559  ;;  %v9455_v24 = vadd.f32 %v6734_v44, %v10438_v3 }
 0x8f3   :  { %v9463_v54 = vadd.f32 %v3401_v19, %v10440_v51 }
 0x8f5   :  { %v9427_v33 = vpop.eup %7561 }
 0x8f6   :  { %3627 = vadd.xlane.f32.xlu0 %v9425_v39  ;;  %3633 = vadd.xlane.f32.xlu1 %v9427_v33  ;;  %v9431_v36 = vpop.eup %7563 }
 0x8f7   :  { %v6737_v12 = vpop.f32.mrb[128].mxu0 }
 0x8f8   :  { %v3414_v57 = vpop.f32.mrb[129].mxu0  ;;  %v9484_v61 = vadd.f32 %v6737_v12, %v10443_v59 }
 0x8f9   :  { %v9433_v25 = vpop.eup %7565  ;;  %v6738_v15 = vpop.f32.mrb[130].mxu0  ;;  %v9492_v62 = vadd.f32 %v3414_v57, %v10445_v28  ;;  %v10450_v57 = vld [vmem:[#allocation48_spill] sm:$0xff] }
 0x8fa   :  { %v3417_v32 = vpop.f32.mrb[131].mxu0  ;;  %3623 = vadd.xlane.f32.xlu0 %v9431_v36  ;;  %3629 = vadd.xlane.f32.xlu1 %v9433_v25  ;;  %v9440_v6 = vpop.eup %7567  ;;  %v9471_v44 = vadd.f32 %v6738_v15, %v10442_v22 }
 0x8fb   :  { %v9447_v29 = vpop.eup %7569  ;;  %v9479_v19 = vadd.f32 %v3417_v32, %v10444_v10 }
 0x8fe   :  { %3635 = vadd.xlane.f32.xlu0 %v9440_v6  ;;  %3483 = vmax.xlane.f32.xlu1 %v9438_v49 }
 0x8ff   :  { %v6741_v20 = vpop.f32.mrb[132].mxu0 }
 0x900   :  { %v3430_v56 = vpop.f32.mrb[133].mxu0  ;;  %v9500_v12 = vadd.f32 %v6741_v20, %v10447_v11 }
 0x901   :  { %v6742_v55 = vpop.f32.mrb[134].mxu0 }
 0x902   :  { %v3433_v9 = vpop.f32.mrb[135].mxu0  ;;  %3631 = vadd.xlane.f32.xlu0 %v9447_v29  ;;  %3479 = vmax.xlane.f32.xlu1 %v9445_v40  ;;  %v9487_v15 = vadd.f32 %v6742_v55, %v10446_v63  ;;  %v9504_v55 = vadd.f32 %v3430_v56, %v10449_v2 }
 0x903   :  { %v9495_v32 = vadd.f32 %v3433_v9, %v10448_v21  ;;  %v10451_v9 = vld [vmem:[#allocation49_spill] sm:$0xff] }
 0x906   :  { %3481 = vmax.xlane.f32.xlu0 %v9452_v7  ;;  %3491 = vmax.xlane.f32.xlu1 %v9455_v24 }
 0x90a   :  { %3477 = vmax.xlane.f32.xlu0 %v9460_v50  ;;  %3487 = vmax.xlane.f32.xlu1 %v9463_v54 }
 0x90e   :  { %3489 = vmax.xlane.f32.xlu0 %v9468_v30  ;;  %3499 = vmax.xlane.f32.xlu1 %v9471_v44 }
 0x912   :  { %3485 = vmax.xlane.f32.xlu0 %v9476_v34  ;;  %3495 = vmax.xlane.f32.xlu1 %v9479_v19 }
 0x916   :  { %3497 = vmax.xlane.f32.xlu0 %v9484_v61  ;;  %3507 = vmax.xlane.f32.xlu1 %v9487_v15 }
 0x91a   :  { %3493 = vmax.xlane.f32.xlu0 %v9492_v62  ;;  %3503 = vmax.xlane.f32.xlu1 %v9495_v32 }
 0x91e   :  { %3505 = vmax.xlane.f32.xlu0 %v9500_v12 }
 0x922   :  { %3501 = vmax.xlane.f32.xlu0 %v9504_v55 }
 0x92b   :  { %3880 = vrot.lane.b32.xlu1 %v10450_v57, %s7893_s1 }
 0x938   :  { %3878 = vrot.lane.b32.xlu0 %v10451_v9, %s7893_s1 }
 0x967   :  { %v3610_v21 = vpop.xlane.xlu1 %3609 }
 0x96b   :  { %v3606_v63 = vpop.xlane.xlu1 %3605 }
 0x96f   :  { %v3612_v28 = vpop.xlane.xlu1 %3611 }
 0x970   :  { %7571 = vrcp.f32 %v3612_v28 }
 0x971   :  { %7573 = vrcp.f32 %v3606_v63 }
 0x972   :  { %7575 = vrcp.f32 %v3610_v21 }
 0x973   :  { %v3608_v20 = vpop.xlane.xlu1 %3607  ;;  %v3618_v11 = vpop.xlane.xlu0 %3617 }
 0x974   :  { %7577 = vrcp.f32 %v3608_v20 }
 0x977   :  { %v3616_v10 = vpop.xlane.xlu1 %3615  ;;  %v3614_v56 = vpop.xlane.xlu0 %3613 }
 0x978   :  { %7579 = vrcp.f32 %v3616_v10 }
 0x979   :  { %7581 = vrcp.f32 %v3614_v56 }
 0x97a   :  { %7583 = vrcp.f32 %v3618_v11  ;;  %v7572_v2 = vpop.eup %7571 }
 0x97b   :  { %v3620_v59 = vpop.xlane.xlu0 %3619  ;;  %v7574_v57 = vpop.eup %7573  ;;  %v3704_v35 = vmul.f32 %v7572_v2, %v9394_v42 }
 0x97c   :  { %7585 = vrcp.f32 %v3620_v59  ;;  %v7576_v22 = vpop.eup %7575  ;;  %v3701_v63 = vmul.f32 %v7574_v57, %v9390_v58 }
 0x97d   :  { %v3703_v20 = vmul.f32 %v7576_v22, %v9386_v38 }
 0x97e   :  { %v7578_v9 = vpop.eup %7577 }
 0x97f   :  { %v3622_v51 = vpop.xlane.xlu1 %3621  ;;  %v3626_v28 = vpop.xlane.xlu0 %3625  ;;  %v3702_v21 = vmul.f32 %v7578_v9, %v9399_v14  ;;  %v3734_v56 = vpack.c.bf16 %v3704_v35, %v3703_v20 }
 0x980   :  { %7587 = vrcp.f32 %v3622_v51 }
 0x981   :  { %v3733_v53 = vpack.c.bf16 %v3702_v21, %v3701_v63 }
 0x982   :  { %v7580_v10 = vpop.eup %7579 }
 0x983   :  { %v7582_v11 = vpop.eup %7581  ;;  %6759 = vmatprep.mubr.bf16.mxu1 %v3733_v53  ;;  %v3634_v3 = vpop.xlane.xlu1 %3633  ;;  %v3706_v59 = vmul.f32 %v7580_v10, %v9407_v37 }
 0x984   :  { %v3628_v31 = vpop.xlane.xlu0 %3627  ;;  %v7584_v5 = vpop.eup %7583  ;;  %6760 = vmatmul.mubr.bf16.vlgmr.msra.gmra.mrb[152].mxu1 %v3734_v56  ;;  %v3705_v2 = vmul.f32 %v7582_v11, %v9409_v47 }
 0x985   :  { %6776 = vmatpush3.bf16.msra.mxu1 %v9310_v46  ;;  %7589 = vrcp.f32 %v3628_v31  ;;  %v3707_v53 = vmul.f32 %v7584_v5, %v9401_v23 }
 0x986   :  { %v7586_v58 = vpop.eup %7585  ;;  %6777 = vmatprep.subr.bf16.mxu1 %v9380_v17  ;;  %v3735_v38 = vpack.c.bf16 %v3706_v59, %v3705_v2  ;;  %7591 = vrcp.f32 %v3626_v28 }
 0x987   :  { %v3630_v22 = vpop.xlane.xlu1 %3629  ;;  %v3708_v42 = vmul.f32 %v7586_v58, %v9415_v43 }
 0x988   :  { %v3624_v35 = vpop.xlane.xlu0 %3623  ;;  %6763 = vmatprep.mubr.bf16.mxu1 %v3735_v38 }
 0x989   :  { %7593 = vrcp.f32 %v3624_v35  ;;  %6778 = vmatpush3.bf16.msra.mxu1 %v9380_v17  ;;  %v3736_v14 = vpack.c.bf16 %v3708_v42, %v3707_v53 }
 0x98a   :  { %6779 = vmatprep.subr.bf16.mxu1 %v9382_v8  ;;  %7595 = vrcp.f32 %v3630_v22  ;;  %v7588_v5 = vpop.eup %7587 }
 0x98b   :  { %v3484_v46 = vpop.xlane.xlu1 %3483  ;;  %v3709_v63 = vmul.f32 %v7588_v5, %v9421_v18 }
 0x98c   :  { %v3636_v51 = vpop.xlane.xlu0 %3635  ;;  %v3528_v31 = vsub.f32 %v9438_v49, %v3484_v46  ;;  %6764 = vmatmul.mubr.bf16.gmra.mrb[156].mxu1 %v3736_v14 }
 0x98d   :  { %6780 = vmatpush3.bf16.msra.mxu1 %v9382_v8  ;;  %7597 = vrcp.f32 %v3636_v51 }
 0x98e   :  { %v3579_v37 = vmul.f32 1.442695, %v3528_v31  ;;  %6781 = vmatprep.subr.bf16.mxu1 %v9384_v45  ;;  %7599 = vrcp.f32 %v3634_v3 }
 0x98f   :  { %v3480_v23 = vpop.xlane.xlu1 %3479  ;;  %v7590_v17 = vpop.eup %7589 }
 0x990   :  { %v3632_v47 = vpop.xlane.xlu0 %3631  ;;  %7601 = vpow2.f32 %v3579_v37  ;;  %v3526_v43 = vsub.f32 %v9445_v40, %v3480_v23  ;;  %v7592_v49 = vpop.eup %7591  ;;  %v3712_v21 = vmul.f32 %v7590_v17, %v9425_v39 }
 0x991   :  { %7603 = vrcp.f32 %v3632_v47  ;;  %6782 = vmatpush3.bf16.msra.mxu1 %v9384_v45  ;;  %v3711_v40 = vmul.f32 %v7592_v49, %v9419_v4 }
 0x992   :  { %v3575_v57 = vmul.f32 1.442695, %v3526_v43 }
 0x993   :  { %v7594_v9 = vpop.eup %7593  ;;  %v3492_v28 = vpop.xlane.xlu1 %3491  ;;  %v3738_v38 = vpack.c.bf16 %v3712_v21, %v3711_v40 }
 0x994   :  { %v3482_v8 = vpop.xlane.xlu0 %3481  ;;  %7605 = vpow2.f32 %v3575_v57  ;;  %v3532_v3 = vsub.f32 %v9455_v24, %v3492_v28  ;;  %v3710_v10 = vmul.f32 %v7594_v9, %v9431_v36  ;;  %v7596_v59 = vpop.eup %7595 }
 0x995   :  { %v3527_v20 = vsub.f32 %v9452_v7, %v3482_v8  ;;  %v3713_v14 = vmul.f32 %v7596_v59, %v9433_v25 }
 0x996   :  { %v3587_v56 = vmul.f32 1.442695, %v3532_v3  ;;  %v3737_v11 = vpack.c.bf16 %v3710_v10, %v3709_v63 }
 0x997   :  { %v3577_v45 = vmul.f32 1.442695, %v3527_v20  ;;  %v3488_v2 = vpop.xlane.xlu1 %3487  ;;  %v7598_v22 = vpop.eup %7597 }
 0x998   :  { %v3478_v58 = vpop.xlane.xlu0 %3477  ;;  %7607 = vpow2.f32 %v3587_v56  ;;  %v3530_v18 = vsub.f32 %v9463_v54, %v3488_v2  ;;  %6767 = vmatprep.mubr.bf16.mxu1 %v3737_v11  ;;  %v7600_v39 = vpop.eup %7599  ;;  %v3716_v46 = vmul.f32 %v7598_v22, %v9440_v6 }
 0x999   :  { %v3525_v24 = vsub.f32 %v9460_v50, %v3478_v58  ;;  %7609 = vpow2.f32 %v3577_v45  ;;  %6768 = vmatmul.mubr.bf16.gmra.mrb[160].mxu1 %v3738_v38  ;;  %v3715_v31 = vmul.f32 %v7600_v39, %v9427_v33 }
 0x99a   :  { %v9536_v36 = vpop.eup %7601  ;;  %v3583_v4 = vmul.f32 1.442695, %v3530_v18 }
 0x99b   :  { %v3573_v7 = vmul.f32 1.442695, %v3525_v24  ;;  %v7604_v35 = vpop.eup %7603  ;;  %3643 = vadd.xlane.f32.xlu0 %v9536_v36  ;;  %v3500_v53 = vpop.xlane.xlu1 %3499  ;;  %v3740_v6 = vpack.c.bf16 %v3716_v46, %v3715_v31  ;;  %v10461_v46 = vld [vmem:[#allocation32_spill] sm:$0xff] }
 0x99c   :  { %v3490_v42 = vpop.xlane.xlu0 %3489  ;;  %7611 = vpow2.f32 %v3583_v4  ;;  %v3536_v54 = vsub.f32 %v9471_v44, %v3500_v53  ;;  %v3714_v51 = vmul.f32 %v7604_v35, %v9447_v29  ;;  %v7279_v4 = vld [vmem:[#allocation7 + $0x20] sm:$0xff]   ;;  %v7280_v53 = vld [vmem:[#allocation7 + $0x28] sm:$0xff]  }
 0x99d   :  { %v3531_v50 = vsub.f32 %v9468_v30, %v3490_v42  ;;  %7613 = vpow2.f32 %v3573_v7  ;;  %6807 = vmatprep.subr.bf16.mxu0 %v7279_v4  ;;  %v10465_v31 = vld [vmem:[#allocation12_spill] sm:$0xff] }
 0x99e   :  { %v9545_v37 = vpop.eup %7605  ;;  %v3595_v5 = vmul.f32 1.442695, %v3536_v54  ;;  %v3739_v47 = vpack.c.bf16 %v3714_v51, %v3713_v14  ;;  %6808 = vmatpush3.bf16.msra.mxu0 %v7279_v4  ;;  %v10460_v14 = vld [vmem:[#allocation41_spill] sm:$0xff]  ;;  %v10462_v54 = vld [vmem:[#allocation15_spill] sm:$0xff]  ;;  %v10464_v51 = vld [vmem:[#allocation20_spill] sm:$0xff] }
 0x99f   :  { %v3585_v23 = vmul.f32 1.442695, %v3531_v50  ;;  %3639 = vadd.xlane.f32.xlu0 %v9545_v37  ;;  %v3496_v25 = vpop.xlane.xlu1 %3495  ;;  %6809 = vmatprep.subr.bf16.mxu0 %v7280_v53  ;;  %v10463_v50 = vld [vmem:[#allocation36_spill] sm:$0xff] }
 0x9a0   :  { %v3486_v17 = vpop.xlane.xlu0 %3485  ;;  %7615 = vpow2.f32 %v3595_v5  ;;  %v3534_v44 = vsub.f32 %v9479_v19, %v3496_v25  ;;  %6771 = vmatprep.mubr.bf16.mxu1 %v3739_v47  ;;  %v10466_v5 = vld [vmem:[#allocation27_spill] sm:$0xff] }
 0x9a1   :  { %v3529_v30 = vsub.f32 %v9476_v34, %v3486_v17  ;;  %7617 = vpow2.f32 %v3585_v23  ;;  %6772 = vmatmul.mubr.bf16.gmra.mrb[164].mxu1 %v3740_v6  ;;  %v10467_v23 = vld [vmem:[#allocation18_spill] sm:$0xff]  ;;  %v10468_v47 = vld [vmem:[#allocation31_spill] sm:$0xff]  ;;  %v10470_v17 = vld [vmem:[#allocation40_spill] sm:$0xff] }
 0x9a2   :  { %v9550_v29 = vpop.eup %7607  ;;  %v3591_v33 = vmul.f32 1.442695, %v3534_v44  ;;  %6810 = vmatpush3.bf16.msra.mxu0 %v7280_v53  ;;  %v10469_v25 = vld [vmem:[#allocation19_spill] sm:$0xff]  ;;  %v10471_v6 = vld [vmem:[#allocation22_spill] sm:$0xff] }
 0x9a3   :  { %v3581_v43 = vmul.f32 1.442695, %v3529_v30  ;;  %v9552_v49 = vpop.eup %7609  ;;  %3651 = vadd.xlane.f32.xlu0 %v9550_v29  ;;  %v3508_v21 = vpop.xlane.xlu1 %3507  ;;  %v10472_v44 = vld [vmem:[#allocation39_spill] sm:$0xff]  ;;  %v10473_v30 = vld [vmem:[#allocation25_spill] sm:$0xff] }
 0x9a4   :  { %v3498_v57 = vpop.xlane.xlu0 %3497  ;;  %7619 = vpow2.f32 %v3591_v33  ;;  %3641 = vadd.xlane.f32.xlu1 %v9552_v49  ;;  %v3540_v7 = vsub.f32 %v9487_v15, %v3508_v21  ;;  %v10474_v33 = vld [vmem:[#allocation42_spill] sm:$0xff]  ;;  %v10479_v21 = vld [vmem:[#allocation13_spill] sm:$0xff] }
 0x9a5   :  { %v3535_v9 = vsub.f32 %v9484_v61, %v3498_v57  ;;  %7621 = vpow2.f32 %v3581_v43  ;;  %v10475_v43 = vld [vmem:[#allocation34_spill] sm:$0xff] }
 0x9a6   :  { %v9557_v19 = vpop.eup %7611  ;;  %v3603_v42 = vmul.f32 1.442695, %v3540_v7  ;;  %v10483_v7 = vld [vmem:[#allocation37_spill] sm:$0xff] }
 0x9a7   :  { %v3593_v34 = vmul.f32 1.442695, %v3535_v9  ;;  %v9559_v28 = vpop.eup %7613  ;;  %3647 = vadd.xlane.f32.xlu0 %v9557_v19  ;;  %v10476_v9 = vld [vmem:[#allocation44_spill] sm:$0xff] }
 0x9a8   :  { %v3494_v8 = vpop.xlane.xlu0 %3493  ;;  %3637 = vadd.xlane.f32.xlu1 %v9559_v28 }
 0x9a9   :  { %v3533_v63 = vsub.f32 %v9492_v62, %v3494_v8  ;;  %7623 = vpow2.f32 %v3593_v34  ;;  %v3504_v62 = vpop.xlane.xlu1 %3503  ;;  %v10477_v34 = vld [vmem:[#allocation38_spill] sm:$0xff] }
 0x9aa   :  { %v9564_v3 = vpop.eup %7615  ;;  %v3538_v39 = vsub.f32 %v9495_v32, %v3504_v62  ;;  %v10459_v32 = vld [vmem:[#allocation28_spill] sm:$0xff] }
 0x9ab   :  { %v3589_v20 = vmul.f32 1.442695, %v3533_v63  ;;  %v9566_v10 = vpop.eup %7617  ;;  %3659 = vadd.xlane.f32.xlu0 %v9564_v3  ;;  %v10478_v63 = vld [vmem:[#allocation46_spill] sm:$0xff] }
 0x9ac   :  { %v3506_v61 = vpop.xlane.xlu0 %3505  ;;  %3649 = vadd.xlane.f32.xlu1 %v9566_v10  ;;  %v3599_v35 = vmul.f32 1.442695, %v3538_v39 }
 0x9ad   :  { %v3539_v40 = vsub.f32 %v9500_v12, %v3506_v61  ;;  %7625 = vpow2.f32 %v3589_v20  ;;  %v3881_v12 = vpop.permute.xlu1 %3880 }
 0x9ae   :  { %v9571_v56 = vpop.eup %7619 }
 0x9af   :  { %v3601_v45 = vmul.f32 1.442695, %v3539_v40  ;;  %v9573_v11 = vpop.eup %7621  ;;  %3655 = vadd.xlane.f32.xlu0 %v9571_v56  ;;  %v10480_v40 = vld [vmem:[#allocation17_spill] sm:$0xff] }
 0x9b0   :  { %v3502_v59 = vpop.xlane.xlu0 %3501  ;;  %3645 = vadd.xlane.f32.xlu1 %v9573_v11 }
 0x9b1   :  { %7627 = vpow2.f32 %v3601_v45  ;;  %v3537_v2 = vsub.f32 %v9504_v55, %v3502_v59  ;;  %v10481_v59 = vld [vmem:[#allocation23_spill] sm:$0xff] }
 0x9b3   :  { %v3597_v58 = vmul.f32 1.442695, %v3537_v2  ;;  %v9578_v38 = vpop.eup %7623 }
 0x9b4   :  { %v3879_v22 = vpop.permute.xlu0 %3878  ;;  %3657 = vadd.xlane.f32.xlu1 %v9578_v38 }
 0x9b5   :  { %7629 = vpow2.f32 %v3597_v58  ;;  %6783 = vmatprep.subr.bf16.mxu1 %v3879_v22 }
 0x9b6   :  { %6784 = vmatpush3.bf16.msra.mxu1 %v3879_v22  ;;  %7631 = vpow2.f32 %v3599_v35  ;;  %v10482_v22 = vld [vmem:[#allocation33_spill] sm:$0xff] }
 0x9b7   :  { %6785 = vmatprep.subr.bf16.mxu1 %v3881_v12  ;;  %v9581_v18 = vpop.eup %7625  ;;  %7633 = vpow2.f32 %v3603_v42 }
 0x9b8   :  { %3653 = vadd.xlane.f32.xlu1 %v9581_v18 }
 0x9ba   :  { %6786 = vmatpush3.bf16.msra.mxu1 %v3881_v12 }
 0x9bb   :  { %v9584_v24 = vpop.eup %7627 }
 0x9bc   :  { %3665 = vadd.xlane.f32.xlu1 %v9584_v24 }
 0x9bf   :  { %v9587_v55 = vpop.eup %7629 }
 0x9c0   :  { %3661 = vadd.xlane.f32.xlu1 %v9587_v55  ;;  %v9604_v15 = vpop.eup %7631 }
 0x9c5   :  { %3882 = vrot.lane.b32.xlu0 %v10377_v27, %s7893_s1 }
 0x9d1   :  { %3884 = vrot.lane.b32.xlu1 %v10379_v41, %s7893_s1 }
 0x9d5   :  { %4282 = vrot.lane.b32.xlu1 %v8010_v0, %s7899_s27  ;;  %v9609_v0 = vpop.eup %7633 }
 0x9d9   :  { %4284 = vrot.lane.b32.xlu1 %v8022_v13, %s7899_s27  ;;  %v10452_v13 = vld [vmem:[#allocation16_spill] sm:$0xff] }
 0x9dd   :  { %4286 = vrot.lane.b32.xlu1 %v8034_v26, %s7899_s27  ;;  %v10453_v26 = vld [vmem:[#allocation21_spill] sm:$0xff] }
 0x9e1   :  { %4457 = vrot.lane.b32.xlu1 %v8095_v48, %s7899_s27  ;;  %v10454_v48 = vld [vmem:[#allocation26_spill] sm:$0xff] }
 0x9e4   :  { %3663 = vadd.xlane.f32.xlu0 %v9604_v15 }
 0x9e5   :  { %4459 = vrot.lane.b32.xlu1 %v8115_v16, %s7899_s27  ;;  %v10455_v16 = vld [vmem:[#allocation14_spill] sm:$0xff] }
 0x9e8   :  { %3667 = vadd.xlane.f32.xlu0 %v9609_v0 }
 0x9e9   :  { %4461 = vrot.lane.b32.xlu1 %v7998_v52, %s7899_s27  ;;  %v10456_v52 = vld [vmem:[#allocation30_spill] sm:$0xff] }
 0x9ed   :  { %4463 = vrot.lane.b32.xlu1 %v8012_v1, %s7899_s27  ;;  %v10457_v1 = vld [vmem:[#allocation24_spill] sm:$0xff] }
 0x9f1   :  { %4266 = vrot.lane.b32.xlu1 %v8006_v60, %s7899_s27  ;;  %v10458_v60 = vld [vmem:[#allocation29_spill] sm:$0xff] }
 0x9f5   :  { %4268 = vrot.lane.b32.xlu1 %v10452_v13, %s7899_s27 }
 0x9f9   :  { %4467 = vrot.lane.b32.xlu1 %v10453_v26, %s7899_s27 }
 0x9fd   :  { %4274 = vrot.lane.b32.xlu1 %v10454_v48, %s7899_s27  ;;  %v10484_v48 = vld [vmem:[#allocation35_spill] sm:$0xff] }
 0x9fe   :  { %4280 = vrot.lane.b32.xlu0 %v10455_v16, %s7899_s27 }
 0xa01   :  { %4276 = vrot.lane.b32.xlu1 %v10456_v52, %s7899_s27 }
 0xa02   :  { %4288 = vrot.lane.b32.xlu0 %v10457_v1, %s7899_s27  ;;  %v10485_v1 = vld [vmem:[#allocation43_spill] sm:$0xff] }
 0xa05   :  { %4471 = vrot.lane.b32.xlu1 %v10458_v60, %s7899_s27 }
 0xa06   :  { %4290 = vrot.lane.b32.xlu0 %v10459_v32, %s7899_s27 }
 0xa09   :  { %4443 = vrot.lane.b32.xlu1 %v10460_v14, %s7899_s27 }
 0xa0a   :  { %4292 = vrot.lane.b32.xlu0 %v10461_v46, %s7899_s27  ;;  %v10487_v46 = vld [vmem:[#allocation47_spill] sm:$0xff] }
 0xa0d   :  { %4447 = vrot.lane.b32.xlu1 %v10462_v54, %s7899_s27 }
 0xa0e   :  { %4294 = vrot.lane.b32.xlu0 %v10463_v50, %s7899_s27 }
 0xa11   :  { %4451 = vrot.lane.b32.xlu1 %v10464_v51, %s7899_s27 }
 0xa12   :  { %4264 = vrot.lane.b32.xlu0 %v10465_v31, %s7899_s27 }
 0xa15   :  { %4455 = vrot.lane.b32.xlu1 %v10466_v5, %s7899_s27 }
 0xa16   :  { %4465 = vrot.lane.b32.xlu0 %v10467_v23, %s7899_s27 }
 0xa19   :  { %4924 = vrot.lane.b32.xlu1 %v10468_v47, %s7899_s27 }
 0xa1a   :  { %4270 = vrot.lane.b32.xlu0 %v10469_v25, %s7899_s27 }
 0xa1d   :  { %4930 = vrot.lane.b32.xlu1 %v10470_v17, %s7899_s27 }
 0xa1e   :  { %4272 = vrot.lane.b32.xlu0 %v10471_v6, %s7899_s27 }
 0xa21   :  { %4932 = vrot.lane.b32.xlu1 %v10472_v44, %s7899_s27 }
 0xa22   :  { %4469 = vrot.lane.b32.xlu0 %v10473_v30, %s7899_s27 }
 0xa25   :  { %4936 = vrot.lane.b32.xlu1 %v10474_v33, %s7899_s27 }
 0xa26   :  { %4278 = vrot.lane.b32.xlu0 %v10475_v43, %s7899_s27 }
 0xa28   :  { %v3644_v57 = vpop.xlane.xlu0 %3643 }
 0xa29   :  { %5045 = vrot.lane.b32.xlu1 %v10476_v9, %s7899_s27 }
 0xa2a   :  { %4441 = vrot.lane.b32.xlu0 %v10477_v34, %s7899_s27 }
 0xa2c   :  { %v3640_v8 = vpop.xlane.xlu0 %3639 }
 0xa2d   :  { %5049 = vrot.lane.b32.xlu1 %v10478_v63, %s7899_s27  ;;  %7635 = vrcp.f32 %v3640_v8 }
 0xa2e   :  { %4445 = vrot.lane.b32.xlu0 %v10479_v21, %s7899_s27 }
 0xa30   :  { %v3652_v20 = vpop.xlane.xlu0 %3651 }
 0xa31   :  { %v3642_v61 = vpop.xlane.xlu1 %3641 }
 0xa32   :  { %4449 = vrot.lane.b32.xlu0 %v10480_v40, %s7899_s27 }
 0xa34   :  { %v3648_v45 = vpop.xlane.xlu0 %3647 }
 0xa35   :  { %v3638_v62 = vpop.xlane.xlu1 %3637 }
 0xa36   :  { %7637 = vrcp.f32 %v3638_v62  ;;  %4453 = vrot.lane.b32.xlu0 %v10481_v59, %s7899_s27 }
 0xa37   :  { %v7636_v4 = vpop.eup %7635  ;;  %7639 = vrcp.f32 %v3642_v61 }
 0xa38   :  { %v3660_v2 = vpop.xlane.xlu0 %3659  ;;  %v3718_v26 = vmul.f32 %v7636_v4, %v9545_v37 }
 0xa39   :  { %v3650_v58 = vpop.xlane.xlu1 %3649 }
 0xa3a   :  { %4922 = vrot.lane.b32.xlu0 %v10482_v22, %s7899_s27 }
 0xa3c   :  { %v3656_v12 = vpop.xlane.xlu0 %3655 }
 0xa3d   :  { %v3646_v39 = vpop.xlane.xlu1 %3645 }
 0xa3e   :  { %4926 = vrot.lane.b32.xlu0 %v10483_v7, %s7899_s27  ;;  %7641 = vrcp.f32 %v3646_v39 }
 0xa3f   :  { %7643 = vrcp.f32 %v3644_v57 }
 0xa40   :  { %v7638_v35 = vpop.eup %7637  ;;  %v3883_v53 = vpop.permute.xlu0 %3882  ;;  %7645 = vrcp.f32 %v3648_v45 }
 0xa41   :  { %v3658_v42 = vpop.xlane.xlu1 %3657  ;;  %6787 = vmatprep.subr.bf16.mxu1 %v3883_v53  ;;  %v3717_v13 = vmul.f32 %v7638_v35, %v9559_v28  ;;  %v10486_v28 = vld [vmem:[#allocation45_spill] sm:$0xff]  ;;  %7647 = vrcp.f32 %v3650_v58  ;;  %v7640_v37 = vpop.eup %7639 }
 0xa42   :  { %4928 = vrot.lane.b32.xlu0 %v10484_v48, %s7899_s27  ;;  %6788 = vmatpush3.bf16.msra.mxu1 %v3883_v53  ;;  %v3719_v51 = vmul.f32 %v7640_v37, %v9552_v49 }
 0xa43   :  { %v3741_v16 = vpack.c.bf16 %v3718_v26, %v3717_v13 }
 0xa45   :  { %v3654_v52 = vpop.xlane.xlu1 %3653  ;;  %6791 = vmatprep.mubr.bf16.mxu1 %v3741_v16 }
 0xa46   :  { %4934 = vrot.lane.b32.xlu0 %v10485_v1, %s7899_s27  ;;  %7649 = vrcp.f32 %v3654_v52 }
 0xa47   :  { %7651 = vrcp.f32 %v3652_v20 }
 0xa48   :  { %v7642_v14 = vpop.eup %7641  ;;  %7653 = vrcp.f32 %v3656_v12 }
 0xa49   :  { %v9688_v60 = vpop.xlane.xlu1 %3665  ;;  %v7644_v54 = vpop.eup %7643  ;;  %v3721_v5 = vmul.f32 %v7642_v14, %v9573_v11  ;;  %7655 = vrcp.f32 %v3658_v42 }
 0xa4a   :  { %5043 = vrot.lane.b32.xlu0 %v10486_v28, %s7899_s27  ;;  %v7646_v50 = vpop.eup %7645  ;;  %v3720_v23 = vmul.f32 %v7644_v54, %v9536_v36  ;;  %7657 = vrcp.f32 %v3660_v2 }
 0xa4b   :  { %v3722_v47 = vmul.f32 %v7646_v50, %v9557_v19  ;;  %v7648_v17 = vpop.eup %7647 }
 0xa4c   :  { %v3742_v25 = vpack.c.bf16 %v3720_v23, %v3719_v51  ;;  %v3723_v36 = vmul.f32 %v7648_v17, %v9566_v10 }
 0xa4d   :  { %v9692_v32 = vpop.xlane.xlu1 %3661  ;;  %v3743_v44 = vpack.c.bf16 %v3722_v47, %v3721_v5 }
 0xa4e   :  { %5047 = vrot.lane.b32.xlu0 %v10487_v46, %s7899_s27  ;;  %7659 = vrcp.f32 %v9692_v32 }
 0xa50   :  { %v7650_v30 = vpop.eup %7649 }
 0xa51   :  { %v3885_v31 = vpop.permute.xlu1 %3884  ;;  %v7652_v33 = vpop.eup %7651  ;;  %v3725_v19 = vmul.f32 %v7650_v30, %v9581_v18 }
 0xa52   :  { %6789 = vmatprep.subr.bf16.mxu1 %v3885_v31  ;;  %v7654_v43 = vpop.eup %7653  ;;  %v3724_v63 = vmul.f32 %v7652_v33, %v9550_v29 }
 0xa53   :  { %6790 = vmatpush3.bf16.msra.mxu1 %v3885_v31  ;;  %v3726_v20 = vmul.f32 %v7654_v43, %v9571_v56  ;;  %v7656_v40 = vpop.eup %7655 }
 0xa54   :  { %v3744_v61 = vpack.c.bf16 %v3724_v63, %v3723_v36  ;;  %v7658_v10 = vpop.eup %7657  ;;  %v3727_v2 = vmul.f32 %v7656_v40, %v9578_v38 }
 0xa55   :  { %v9700_v6 = vpop.permute.xlu1 %4282  ;;  %v3745_v62 = vpack.c.bf16 %v3726_v20, %v3725_v19  ;;  %v3728_v39 = vmul.f32 %v7658_v10, %v9564_v3 }
 0xa56   :  { %6792 = vmatmul.mubr.bf16.vlgmr.msra.gmra.mrb[168].mxu1 %v3742_v25  ;;  %v4324_v19 = vsel %vm808_vm0, %v9700_v6, 0 }
 0xa57   :  { %6795 = vmatprep.mubr.bf16.mxu1 %v3743_v44  ;;  %v6761_v49 = vpop.f32.mrb[152].mxu1  ;;  %v3746_v7 = vpack.c.bf16 %v3728_v39, %v3727_v2 }
 0xa58   :  { %v3807_v11 = vpop.f32.mrb[153].mxu1  ;;  %v7660_v31 = vpop.eup %7659 }
 0xa59   :  { %v9703_v57 = vpop.permute.xlu1 %4284  ;;  %v6762_v9 = vpop.f32.mrb[154].mxu1  ;;  %v3729_v25 = vmul.f32 %v7660_v31, %v9587_v55 }
 0xa5a   :  { %v3992_v34 = vpack.c.bf16 %v6762_v9, %v6761_v49  ;;  %v3810_v8 = vpop.f32.mrb[155].mxu1  ;;  %v4327_v63 = vsel %vm808_vm0, %v9703_v57, 0 }
 0xa5b   :  { %v3991_v21 = vpack.c.bf16 %v3810_v8, %v3807_v11 }
 0xa5d   :  { %v9708_v45 = vpop.permute.xlu1 %4286  ;;  %6811 = vmatprep.mubr.msk.bf16.mxu0 %vm808_vm0, %v3991_v21 }
 0xa5e   :  { %6796 = vmatmul.mubr.bf16.gmra.mrb[172].mxu1 %v3744_v61  ;;  %6812 = vmatmul.mubr.msk.bf16.vlgmr.msra.gmra.mrb[56].mxu0 %vm808_vm0, %v3992_v34  ;;  %v4330_v20 = vsel %vm808_vm0, %v9708_v45, 0 }
 0xa5f   :  { %6799 = vmatprep.mubr.bf16.mxu1 %v3745_v62  ;;  %v6765_v18 = vpop.f32.mrb[156].mxu1 }
 0xa60   :  { %v3823_v59 = vpop.f32.mrb[157].mxu1 }
 0xa61   :  { %v4458_v29 = vpop.permute.xlu1 %4457  ;;  %v6766_v58 = vpop.f32.mrb[158].mxu1 }
 0xa62   :  { %v3994_v22 = vpack.c.bf16 %v6766_v58, %v6765_v18  ;;  %7207 = vmatprep.subr.msk.bf16.mxu0 %vm808_vm0, %v4458_v29  ;;  %v3826_v56 = vpop.f32.mrb[159].mxu1  ;;  %v4498_v12 = vsel %vm808_vm0, %v4458_v29, 0 }
 0xa63   :  { %v3993_v4 = vpack.c.bf16 %v3826_v56, %v3823_v59  ;;  %6876 = vmatpush3.bf16.xpose.msra.mxu0 %v4498_v12 }
 0xa65   :  { %v4460_v35 = vpop.permute.xlu1 %4459  ;;  %6815 = vmatprep.mubr.msk.bf16.mxu0 %vm808_vm0, %v3993_v4 }
 0xa66   :  { %6800 = vmatmul.mubr.bf16.gmra.mrb[176].mxu1 %v3746_v7  ;;  %7208 = vmatprep.subr.msk.bf16.mxu0 %vm808_vm0, %v4460_v35  ;;  %v4501_v38 = vsel %vm808_vm0, %v4460_v35, 0 }
 0xa67   :  { %6816 = vmatmul.mubr.msk.bf16.gmra.mrb[60].mxu0 %vm808_vm0, %v3994_v22 }
 0xa69   :  { %v4462_v53 = vpop.permute.xlu1 %4461 }
 0xa6a   :  { %v4504_v1 = vsel %vm808_vm0, %v4462_v53, 0 }
 0xa6b   :  { %6878 = vmatpush3.bf16.xpose.msra.mxu0 %v4501_v38 }
 0xa6c   :  { %v6769_v42 = vpop.f32.mrb[160].mxu1  ;;  %7209 = vmatprep.subr.msk.bf16.mxu0 %vm808_vm0, %v4462_v53 }
 0xa6d   :  { %v3839_v13 = vpop.f32.mrb[161].mxu1  ;;  %v4464_v28 = vpop.permute.xlu1 %4463 }
 0xa6e   :  { %v6770_v3 = vpop.f32.mrb[162].mxu1  ;;  %v4507_v23 = vsel %vm808_vm0, %v4464_v28, 0 }
 0xa6f   :  { %v3996_v26 = vpack.c.bf16 %v6770_v3, %v6769_v42  ;;  %v3842_v48 = vpop.f32.mrb[163].mxu1 }
 0xa70   :  { %v3995_v16 = vpack.c.bf16 %v3842_v48, %v3839_v13 }
 0xa71   :  { %v3664_v52 = vpop.xlane.xlu0 %3663  ;;  %v9736_v49 = vpop.permute.xlu1 %4266 }
 0xa72   :  { %6819 = vmatprep.mubr.msk.bf16.mxu0 %vm808_vm0, %v3995_v16  ;;  %7661 = vrcp.f32 %v3664_v52 }
 0xa73   :  { %6820 = vmatmul.mubr.msk.bf16.gmra.mrb[64].mxu0 %vm808_vm0, %v3996_v26  ;;  %7663 = vrcp.f32 %v9688_v60 }
 0xa74   :  { %6880 = vmatpush3.bf16.xpose.msra.mxu0 %v4504_v1  ;;  %v6773_v37 = vpop.f32.mrb[164].mxu1 }
 0xa75   :  { %7210 = vmatprep.subr.msk.bf16.mxu0 %vm808_vm0, %v4464_v28  ;;  %v3855_v14 = vpop.f32.mrb[165].mxu1  ;;  %v3668_v54 = vpop.xlane.xlu0 %3667 }
 0xa76   :  { %v6774_v46 = vpop.f32.mrb[166].mxu1  ;;  %7665 = vrcp.f32 %v3668_v54  ;;  %v4269_v55 = vpop.permute.xlu1 %4268 }
 0xa77   :  { %v3998_v32 = vpack.c.bf16 %v6774_v46, %v6773_v37  ;;  %v3858_v50 = vpop.f32.mrb[167].mxu1 }
 0xa78   :  { %v3997_v51 = vpack.c.bf16 %v3858_v50, %v3855_v14 }
 0xa79   :  { %v4281_v5 = vpop.permute.xlu0 %4280 }
 0xa7a   :  { %6823 = vmatprep.mubr.msk.bf16.mxu0 %vm808_vm0, %v3997_v51  ;;  %7199 = vmatprep.subr.msk.bf16.mxu1 %vm808_vm0, %v4281_v5  ;;  %v4321_v60 = vsel %vm808_vm0, %v4281_v5, 0  ;;  %v4468_v21 = vpop.permute.xlu1 %4467 }
 0xa7b   :  { %6824 = vmatmul.mubr.msk.bf16.gmra.mrb[68].mxu0 %vm808_vm0, %v3998_v32  ;;  %6844 = vmatpush3.bf16.xpose.msra.mxu1 %v4321_v60  ;;  %v4513_v10 = vsel %vm808_vm0, %v4468_v21, 0 }
 0xa7c   :  { %v7662_v47 = vpop.eup %7661  ;;  %6882 = vmatpush3.bf16.xpose.msra.mxu0 %v4507_v23  ;;  %7200 = vmatprep.subr.msk.bf16.mxu1 %vm808_vm0, %v9700_v6 }
 0xa7d   :  { %v3730_v17 = vmul.f32 %v7662_v47, %v9604_v15  ;;  %v4289_v44 = vpop.permute.xlu0 %4288  ;;  %v7664_v30 = vpop.eup %7663 }
 0xa7e   :  { %v3731_v36 = vmul.f32 %v7664_v30, %v9584_v24  ;;  %v4333_v18 = vsel %vm808_vm0, %v4289_v44, 0 }
 0xa7f   :  { %v3747_v33 = vpack.c.bf16 %v3730_v17, %v3729_v25 }
 0xa80   :  { %v7666_v43 = vpop.eup %7665 }
 0xa81   :  { %6803 = vmatprep.mubr.bf16.mxu1 %v3747_v33  ;;  %v4291_v11 = vpop.permute.xlu0 %4290  ;;  %v3732_v9 = vmul.f32 %v7666_v43, %v9609_v0  ;;  %v9749_v0 = vpop.permute.xlu1 %4274 }
 0xa82   :  { %v4336_v58 = vsel %vm808_vm0, %v4291_v11, 0 }
 0xa83   :  { %6846 = vmatpush3.bf16.xpose.msra.mxu1 %v4324_v19  ;;  %v3748_v34 = vpack.c.bf16 %v3732_v9, %v3731_v36 }
 0xa84   :  { %7201 = vmatprep.subr.msk.bf16.mxu1 %vm808_vm0, %v9703_v57 }
 0xa85   :  { %6804 = vmatmul.mubr.bf16.gmra.mrb[180].mxu1 %v3748_v34  ;;  %v4293_v15 = vpop.permute.xlu0 %4292  ;;  %v4277_v40 = vpop.permute.xlu1 %4276 }
 0xa86   :  { %v4339_v7 = vsel %vm808_vm0, %v4293_v15, 0 }
 0xa89   :  { %v4295_v8 = vpop.permute.xlu0 %4294 }
 0xa8a   :  { %v4342_v42 = vsel %vm808_vm0, %v4295_v8, 0 }
 0xa8b   :  { %6848 = vmatpush3.bf16.xpose.msra.mxu1 %v4327_v63 }
 0xa8c   :  { %7202 = vmatprep.subr.msk.bf16.mxu1 %vm808_vm0, %v9708_v45  ;;  %v4472_v45 = vpop.permute.xlu1 %4471 }
 0xa8d   :  { %v4265_v24 = vpop.permute.xlu0 %4264  ;;  %v4519_v4 = vsel %vm808_vm0, %v4472_v45, 0 }
 0xa8e   :  { %6859 = vmatprep.mubr.msk.bf16.mxu1 %vm808_vm0, %v4265_v24 }
 0xa90   :  { %v9763_v22 = vpop.permute.xlu1 %4443 }
 0xa91   :  { %v4466_v6 = vpop.permute.xlu0 %4465 }
 0xa92   :  { %7211 = vmatprep.subr.msk.bf16.mxu0 %vm808_vm0, %v4466_v6  ;;  %v4510_v61 = vsel %vm808_vm0, %v4466_v6, 0 }
 0xa93   :  { %6850 = vmatpush3.bf16.xpose.msra.mxu1 %v4330_v20  ;;  %6884 = vmatpush3.bf16.xpose.msra.mxu0 %v4510_v61 }
 0xa94   :  { %7203 = vmatprep.subr.msk.bf16.mxu1 %vm808_vm0, %v4289_v44  ;;  %7212 = vmatprep.subr.msk.bf16.mxu0 %vm808_vm0, %v4468_v21  ;;  %v9769_v12 = vpop.permute.xlu1 %4447 }
 0xa95   :  { %v4271_v57 = vpop.permute.xlu0 %4270 }
 0xa98   :  { %v9778_v38 = vpop.permute.xlu1 %4451 }
 0xa99   :  { %v4273_v62 = vpop.permute.xlu0 %4272 }
 0xa9b   :  { %6852 = vmatpush3.bf16.xpose.msra.mxu1 %v4333_v18  ;;  %6886 = vmatpush3.bf16.xpose.msra.mxu0 %v4513_v10  ;;  %v10490_v10 = vld [vmem:[#allocation53_spill] sm:$0xff] }
 0xa9c   :  { %7204 = vmatprep.subr.msk.bf16.mxu1 %vm808_vm0, %v4291_v11  ;;  %v9783_v13 = vpop.permute.xlu1 %4455 }
 0xa9d   :  { %v4470_v59 = vpop.permute.xlu0 %4469 }
 0xa9e   :  { %7213 = vmatprep.subr.msk.bf16.mxu0 %vm808_vm0, %v4470_v59  ;;  %v4516_v29 = vsel %vm808_vm0, %v4470_v59, 0  ;;  %v10491_v59 = vld [vmem:[#allocation54_spill] sm:$0xff] }
 0xaa0   :  { %v4925_v48 = vpop.permute.xlu1 %4924 }
 0xaa1   :  { %v4279_v2 = vpop.permute.xlu0 %4278 }
 0xaa3   :  { %6854 = vmatpush3.bf16.xpose.msra.mxu1 %v4336_v58  ;;  %6888 = vmatpush3.bf16.xpose.msra.mxu0 %v4516_v29 }
 0xaa4   :  { %7205 = vmatprep.subr.msk.bf16.mxu1 %vm808_vm0, %v4293_v15  ;;  %7214 = vmatprep.subr.msk.bf16.mxu0 %vm808_vm0, %v4472_v45  ;;  %v4931_v1 = vpop.permute.xlu1 %4930 }
 0xaa5   :  { %v9767_v56 = vpop.permute.xlu0 %4441 }
 0xaa8   :  { %v4933_v37 = vpop.permute.xlu1 %4932 }
 0xaa9   :  { %v9771_v39 = vpop.permute.xlu0 %4445 }
 0xaab   :  { %6856 = vmatpush3.bf16.xpose.msra.mxu1 %v4339_v7  ;;  %6890 = vmatpush3.bf16.xpose.msra.mxu0 %v4519_v4  ;;  %v10494_v7 = vld [vmem:[#allocation57_spill] sm:$0xff] }
 0xaac   :  { %7206 = vmatprep.subr.msk.bf16.mxu1 %vm808_vm0, %v4295_v8  ;;  %v4937_v14 = vpop.permute.xlu1 %4936 }
 0xaad   :  { %v9776_v35 = vpop.permute.xlu0 %4449 }
 0xab0   :  { %v5046_v8 = vpop.permute.xlu1 %5045 }
 0xab1   :  { %v9780_v53 = vpop.permute.xlu0 %4453 }
 0xab3   :  { %6858 = vmatpush3.bf16.xpose.msra.mxu1 %v4342_v42 }
 0xab4   :  { %v5050_v21 = vpop.permute.xlu1 %5049 }
 0xab5   :  { %v4923_v3 = vpop.permute.xlu0 %4922 }
 0xab6   :  { %6907 = vmatprep.subr.bf16.mxu1 %v4923_v3 }
 0xab9   :  { %v4927_v26 = vpop.permute.xlu0 %4926 }
 0xaba   :  { %6860 = vmatmul.mubr.msk.bf16.vlgmr.msra.gmra.mrb[184].mxu1 %vm808_vm0, %v9736_v49 }
 0xabb   :  { %6863 = vmatprep.mubr.msk.bf16.mxu1 %vm808_vm0, %v4269_v55  ;;  %6908 = vmatpush3.bf16.msra.mxu1 %v4923_v3 }
 0xabc   :  { %6909 = vmatprep.subr.bf16.mxu1 %v4925_v48 }
 0xabd   :  { %v4929_v16 = vpop.permute.xlu0 %4928 }
 0xabf   :  { %6910 = vmatpush3.bf16.msra.mxu1 %v4925_v48 }
 0xac0   :  { %6911 = vmatprep.subr.bf16.mxu1 %v4927_v26 }
 0xac1   :  { %v4935_v52 = vpop.permute.xlu0 %4934 }
 0xac2   :  { %6864 = vmatmul.mubr.msk.bf16.gmra.mrb[188].mxu1 %vm808_vm0, %v4271_v57 }
 0xac3   :  { %6867 = vmatprep.mubr.msk.bf16.mxu1 %vm808_vm0, %v4273_v62  ;;  %6912 = vmatpush3.bf16.msra.mxu1 %v4927_v26  ;;  %v10496_v26 = vld [vmem:[#allocation63_spill] sm:$0xff] }
 0xac4   :  { %6913 = vmatprep.subr.bf16.mxu1 %v4929_v16 }
 0xac5   :  { %v5044_v28 = vpop.permute.xlu0 %5043 }
 0xac6   :  { %6939 = vmatprep.subr.bf16.mxu0 %v5044_v28 }
 0xac7   :  { %6914 = vmatpush3.bf16.msra.mxu1 %v4929_v16 }
 0xac8   :  { %6915 = vmatprep.subr.bf16.mxu1 %v4931_v1 }
 0xac9   :  { %v5048_v63 = vpop.permute.xlu0 %5047 }
 0xaca   :  { %6868 = vmatmul.mubr.msk.bf16.gmra.mrb[192].mxu1 %vm808_vm0, %v9749_v0  ;;  %v10488_v0 = vld [vmem:[#allocation52_spill] sm:$0xff] }
 0xacb   :  { %6871 = vmatprep.mubr.msk.bf16.mxu1 %vm808_vm0, %v4277_v40  ;;  %6916 = vmatpush3.bf16.msra.mxu1 %v4931_v1  ;;  %v10489_v40 = vld [vmem:[#allocation55_spill] sm:$0xff] }
 0xacc   :  { %6917 = vmatprep.subr.bf16.mxu1 %v4933_v37 }
 0xacf   :  { %6918 = vmatpush3.bf16.msra.mxu1 %v4933_v37 }
 0xad0   :  { %6919 = vmatprep.subr.bf16.mxu1 %v4935_v52 }
 0xad2   :  { %6872 = vmatmul.mubr.msk.bf16.gmra.mrb[196].mxu1 %vm808_vm0, %v4279_v2 }
 0xad3   :  { %6920 = vmatpush3.bf16.msra.mxu1 %v4935_v52  ;;  %v10497_v52 = vld [vmem:[#allocation62_spill] sm:$0xff] }
 0xad4   :  { %6921 = vmatprep.subr.bf16.mxu1 %v4937_v14 }
 0xad7   :  { %6922 = vmatpush3.bf16.msra.mxu1 %v4937_v14 }
 0xb29   :  { %v6793_v46 = vpop.f32.mrb[168].mxu1 }
 0xb2a   :  { %v3928_v54 = vpop.f32.mrb[169].mxu1 }
 0xb2b   :  { %v6794_v32 = vpop.f32.mrb[170].mxu1 }
 0xb2c   :  { %v4000_v50 = vpack.c.bf16 %v6794_v32, %v6793_v46  ;;  %v3931_v51 = vpop.f32.mrb[171].mxu1  ;;  %v10499_v46 = vld [vmem:[#allocation60_spill] sm:$0xff] }
 0xb2d   :  { %v3999_v31 = vpack.c.bf16 %v3931_v51, %v3928_v54  ;;  %v10500_v51 = vld [vmem:[#allocation67_spill] sm:$0xff] }
 0xb2f   :  { %6827 = vmatprep.mubr.msk.bf16.mxu0 %vm808_vm0, %v3999_v31 }
 0xb30   :  { %6828 = vmatmul.mubr.msk.bf16.gmra.mrb[72].mxu0 %vm808_vm0, %v4000_v50 }
 0xb31   :  { %v6797_v5 = vpop.f32.mrb[172].mxu1 }
 0xb32   :  { %v3944_v23 = vpop.f32.mrb[173].mxu1 }
 0xb33   :  { %v6798_v60 = vpop.f32.mrb[174].mxu1 }
 0xb34   :  { %v4002_v47 = vpack.c.bf16 %v6798_v60, %v6797_v5  ;;  %v3947_v25 = vpop.f32.mrb[175].mxu1 }
 0xb35   :  { %v4001_v17 = vpack.c.bf16 %v3947_v25, %v3944_v23  ;;  %v10501_v23 = vld [vmem:[#allocation66_spill] sm:$0xff] }
 0xb37   :  { %6831 = vmatprep.mubr.msk.bf16.mxu0 %vm808_vm0, %v4001_v17  ;;  %v10503_v17 = vld [vmem:[#allocation64_spill] sm:$0xff] }
 0xb38   :  { %6832 = vmatmul.mubr.msk.bf16.gmra.mrb[76].mxu0 %vm808_vm0, %v4002_v47  ;;  %v10502_v47 = vld [vmem:[#allocation65_spill] sm:$0xff] }
 0xb39   :  { %v6801_v44 = vpop.f32.mrb[176].mxu1 }
 0xb3a   :  { %v3960_v30 = vpop.f32.mrb[177].mxu1 }
 0xb3b   :  { %v6802_v33 = vpop.f32.mrb[178].mxu1 }
 0xb3c   :  { %v4004_v49 = vpack.c.bf16 %v6802_v33, %v6801_v44  ;;  %v3963_v43 = vpop.f32.mrb[179].mxu1 }
 0xb3d   :  { %v4003_v11 = vpack.c.bf16 %v3963_v43, %v3960_v30 }
 0xb3f   :  { %6835 = vmatprep.mubr.msk.bf16.mxu0 %vm808_vm0, %v4003_v11 }
 0xb40   :  { %6836 = vmatmul.mubr.msk.bf16.gmra.mrb[80].mxu0 %vm808_vm0, %v4004_v49 }
 0xb58   :  { %v6805_v36 = vpop.f32.mrb[180].mxu1 }
 0xb59   :  { %v3976_v9 = vpop.f32.mrb[181].mxu1 }
 0xb5a   :  { %v6806_v19 = vpop.f32.mrb[182].mxu1 }
 0xb5b   :  { %v4006_v34 = vpack.c.bf16 %v6806_v19, %v6805_v36  ;;  %v3979_v55 = vpop.f32.mrb[183].mxu1 }
 0xb5c   :  { %v4005_v15 = vpack.c.bf16 %v3979_v55, %v3976_v9 }
 0xb5e   :  { %6839 = vmatprep.mubr.msk.bf16.mxu0 %vm808_vm0, %v4005_v15 }
 0xb5f   :  { %6840 = vmatmul.mubr.msk.bf16.gmra.mrb[84].mxu0 %vm808_vm0, %v4006_v34 }
 0xb60   :  { %6891 = vmatprep.mubr.msk.bf16.mxu0 %vm808_vm0, %v9767_v56 }
 0xb67   :  { %6892 = vmatmul.mubr.msk.bf16.vlgmr.msra.gmra.mrb[136].mxu0 %vm808_vm0, %v9763_v22  ;;  %v10492_v22 = vld [vmem:[#allocation59_spill] sm:$0xff] }
 0xb68   :  { %6940 = vmatpush3.bf16.msra.mxu0 %v5044_v28  ;;  %6895 = vmatprep.mubr.msk.bf16.mxu0 %vm808_vm0, %v9771_v39  ;;  %v10493_v39 = vld [vmem:[#allocation58_spill] sm:$0xff]  ;;  %v10498_v28 = vld [vmem:[#allocation61_spill] sm:$0xff] }
 0xb69   :  { %6941 = vmatprep.subr.bf16.mxu0 %v5046_v8 }
 0xb6c   :  { %6942 = vmatpush3.bf16.msra.mxu0 %v5046_v8 }
 0xb6d   :  { %6943 = vmatprep.subr.bf16.mxu0 %v5048_v63 }
 0xb6f   :  { %6896 = vmatmul.mubr.msk.bf16.gmra.mrb[140].mxu0 %vm808_vm0, %v9769_v12 }
 0xb70   :  { %6944 = vmatpush3.bf16.msra.mxu0 %v5048_v63  ;;  %6899 = vmatprep.mubr.msk.bf16.mxu0 %vm808_vm0, %v9776_v35 }
 0xb71   :  { %6945 = vmatprep.subr.bf16.mxu0 %v5050_v21 }
 0xb74   :  { %6946 = vmatpush3.bf16.msra.mxu0 %v5050_v21 }
 0xb77   :  { %6900 = vmatmul.mubr.msk.bf16.gmra.mrb[144].mxu0 %vm808_vm0, %v9778_v38 }
 0xb78   :  { %6903 = vmatprep.mubr.msk.bf16.mxu0 %vm808_vm0, %v9780_v53  ;;  %v10495_v53 = vld [vmem:[#allocation56_spill] sm:$0xff] }
 0xb7f   :  { %6904 = vmatmul.mubr.msk.bf16.gmra.mrb[148].mxu0 %vm808_vm0, %v9783_v13 }
 0xb8d   :  { %v6861_v24 = vpop.f32.mrb[184].mxu1 }
 0xb8e   :  { %v4387_v6 = vadd.f32 %v6861_v24, %v10488_v0  ;;  %v4378_v20 = vpop.f32.mrb[185].mxu1 }
 0xb8f   :  { %v6862_v61 = vpop.f32.mrb[186].mxu1  ;;  %v4379_v18 = vadd.f32 %v4378_v20, %v10490_v10 }
 0xb90   :  { %4622 = vmax.xlane.f32.xlu0 %v4387_v6  ;;  %v4381_v57 = vpop.f32.mrb[187].mxu1  ;;  %v4390_v2 = vadd.f32 %v6862_v61, %v10491_v59 }
 0xb91   :  { %v4382_v62 = vadd.f32 %v4381_v57, %v10489_v40 }
 0xb93   :  { %4620 = vmax.xlane.f32.xlu1 %v4382_v62 }
 0xb94   :  { %4618 = vmax.xlane.f32.xlu0 %v4379_v18 }
 0xb95   :  { %v6865_v45 = vpop.f32.mrb[188].mxu1 }
 0xb96   :  { %v4394_v29 = vpop.f32.mrb[189].mxu1  ;;  %v4403_v4 = vadd.f32 %v6865_v45, %v10493_v39 }
 0xb97   :  { %v6866_v58 = vpop.f32.mrb[190].mxu1  ;;  %v4395_v42 = vadd.f32 %v4394_v29, %v10495_v53 }
 0xb98   :  { %v9823_v56 = vadd.f32 %v6866_v58, %v10492_v22  ;;  %4624 = vmax.xlane.f32.xlu0 %v4390_v2  ;;  %v4397_v12 = vpop.f32.mrb[191].mxu1 }
 0xb99   :  { %v4398_v35 = vadd.f32 %v4397_v12, %v10494_v7 }
 0xb9a   :  { %4632 = vmax.xlane.f32.xlu1 %v9823_v56 }
 0xb9c   :  { %4630 = vmax.xlane.f32.xlu0 %v4403_v4 }
 0xb9d   :  { %v6869_v38 = vpop.f32.mrb[192].mxu1 }
 0xb9e   :  { %4628 = vmax.xlane.f32.xlu1 %v4398_v35  ;;  %v4410_v13 = vpop.f32.mrb[193].mxu1  ;;  %v4419_v1 = vadd.f32 %v6869_v38, %v10497_v52 }
 0xb9f   :  { %v6870_v3 = vpop.f32.mrb[194].mxu1  ;;  %v4411_v54 = vadd.f32 %v4410_v13, %v10499_v46 }
 0xba0   :  { %v9830_v48 = vadd.f32 %v6870_v3, %v10496_v26  ;;  %4626 = vmax.xlane.f32.xlu0 %v4395_v42  ;;  %v4413_v16 = vpop.f32.mrb[195].mxu1 }
 0xba1   :  { %v9835_v37 = vadd.f32 %v4413_v16, %v10498_v28 }
 0xba2   :  { %4640 = vmax.xlane.f32.xlu1 %v9830_v48 }
 0xba4   :  { %4638 = vmax.xlane.f32.xlu0 %v4419_v1 }
 0xba5   :  { %v6873_v14 = vpop.f32.mrb[196].mxu1 }
 0xba6   :  { %4636 = vmax.xlane.f32.xlu1 %v9835_v37  ;;  %v4426_v32 = vpop.f32.mrb[197].mxu1  ;;  %v9843_v60 = vadd.f32 %v6873_v14, %v10501_v23 }
 0xba7   :  { %v6874_v50 = vpop.f32.mrb[198].mxu1  ;;  %v9851_v44 = vadd.f32 %v4426_v32, %v10503_v17 }
 0xba8   :  { %v9840_v31 = vadd.f32 %v6874_v50, %v10500_v51  ;;  %4634 = vmax.xlane.f32.xlu0 %v4411_v54  ;;  %v4429_v5 = vpop.f32.mrb[199].mxu1 }
 0xba9   :  { %v9847_v25 = vadd.f32 %v4429_v5, %v10502_v47 }
 0xbaa   :  { %4648 = vmax.xlane.f32.xlu1 %v9840_v31 }
 0xbac   :  { %4646 = vmax.xlane.f32.xlu0 %v9843_v60 }
 0xbae   :  { %4644 = vmax.xlane.f32.xlu1 %v9847_v25 }
 0xbb0   :  { %4642 = vmax.xlane.f32.xlu0 %v9851_v44 }
 0xc1d   :  { %v4623_v30 = vpop.xlane.xlu0 %4622 }
 0xc1e   :  { %v4684_v33 = vsub.f32 %v4387_v6, %v4623_v30 }
 0xc20   :  { %v4718_v49 = vmul.f32 1.442695, %v4684_v33  ;;  %v4621_v11 = vpop.xlane.xlu1 %4620 }
 0xc21   :  { %v4619_v43 = vpop.xlane.xlu0 %4618  ;;  %v4683_v19 = vsub.f32 %v4382_v62, %v4621_v11 }
 0xc22   :  { %7667 = vpow2.f32 %v4718_v49  ;;  %v4682_v36 = vsub.f32 %v4379_v18, %v4619_v43 }
 0xc23   :  { %v4716_v63 = vmul.f32 1.442695, %v4683_v19 }
 0xc24   :  { %v4714_v9 = vmul.f32 1.442695, %v4682_v36 }
 0xc25   :  { %v4625_v34 = vpop.xlane.xlu0 %4624 }
 0xc26   :  { %7669 = vpow2.f32 %v4714_v9  ;;  %v4685_v55 = vsub.f32 %v4390_v2, %v4625_v34 }
 0xc27   :  { %v4633_v15 = vpop.xlane.xlu1 %4632 }
 0xc28   :  { %v4720_v8 = vmul.f32 1.442695, %v4685_v55  ;;  %v4689_v62 = vsub.f32 %v9823_v56, %v4633_v15 }
 0xc29   :  { %v4631_v21 = vpop.xlane.xlu0 %4630 }
 0xc2a   :  { %7671 = vpow2.f32 %v4720_v8  ;;  %v4688_v24 = vsub.f32 %v4403_v4, %v4631_v21  ;;  %v4728_v38 = vmul.f32 1.442695, %v4689_v62 }
 0xc2b   :  { %v4629_v20 = vpop.xlane.xlu1 %4628  ;;  %7673 = vpow2.f32 %v4716_v63 }
 0xc2c   :  { %v9855_v61 = vpop.eup %7667  ;;  %v4726_v6 = vmul.f32 1.442695, %v4688_v24  ;;  %v4687_v57 = vsub.f32 %v4398_v35, %v4629_v20 }
 0xc2d   :  { %4782 = vadd.xlane.f32.xlu1 %v9855_v61  ;;  %v4627_v18 = vpop.xlane.xlu0 %4626 }
 0xc2e   :  { %7675 = vpow2.f32 %v4726_v6  ;;  %v4724_v45 = vmul.f32 1.442695, %v4687_v57  ;;  %v4686_v2 = vsub.f32 %v4395_v42, %v4627_v18 }
 0xc2f   :  { %v4641_v29 = vpop.xlane.xlu1 %4640 }
 0xc30   :  { %v9859_v58 = vpop.eup %7669  ;;  %v4722_v12 = vmul.f32 1.442695, %v4686_v2  ;;  %7677 = vpow2.f32 %v4724_v45  ;;  %v4693_v16 = vsub.f32 %v9830_v48, %v4641_v29 }
 0xc31   :  { %4778 = vadd.xlane.f32.xlu1 %v9859_v58  ;;  %v4639_v4 = vpop.xlane.xlu0 %4638 }
 0xc32   :  { %7679 = vpow2.f32 %v4722_v12  ;;  %v4692_v35 = vsub.f32 %v4419_v1, %v4639_v4  ;;  %v4736_v30 = vmul.f32 1.442695, %v4693_v16 }
 0xc33   :  { %v4637_v13 = vpop.xlane.xlu1 %4636  ;;  %7681 = vpow2.f32 %v4728_v38 }
 0xc34   :  { %v9862_v3 = vpop.eup %7671  ;;  %v4734_v56 = vmul.f32 1.442695, %v4692_v35  ;;  %v4691_v1 = vsub.f32 %v9835_v37, %v4637_v13 }
 0xc35   :  { %4784 = vadd.xlane.f32.xlu1 %v9862_v3  ;;  %v4635_v42 = vpop.xlane.xlu0 %4634  ;;  %v9866_v32 = vpop.eup %7673 }
 0xc36   :  { %v4690_v14 = vsub.f32 %v4411_v54, %v4635_v42  ;;  %7683 = vpow2.f32 %v4734_v56  ;;  %v4732_v34 = vmul.f32 1.442695, %v4691_v1 }
 0xc37   :  { %v4649_v33 = vpop.xlane.xlu1 %4648 }
 0xc38   :  { %v9868_v50 = vpop.eup %7675  ;;  %v4730_v5 = vmul.f32 1.442695, %v4690_v14  ;;  %v4697_v15 = vsub.f32 %v9840_v31, %v4649_v33 }
 0xc39   :  { %4780 = vadd.xlane.f32.xlu1 %v9866_v32  ;;  %4790 = vadd.xlane.f32.xlu0 %v9868_v50  ;;  %v4647_v48 = vpop.xlane.xlu0 %4646 }
 0xc3a   :  { %7685 = vpow2.f32 %v4730_v5  ;;  %v4696_v49 = vsub.f32 %v9843_v60, %v4647_v48  ;;  %v6893_v43 = vpop.f32.mrb[136].mxu0  ;;  %v9874_v54 = vpop.eup %7677  ;;  %v4744_v24 = vmul.f32 1.442695, %v4697_v15 }
 0xc3b   :  { %v4555_v11 = vpop.f32.mrb[137].mxu0  ;;  %7687 = vpow2.f32 %v4736_v30  ;;  %v4645_v8 = vpop.xlane.xlu1 %4644 }
 0xc3c   :  { %v9876_v36 = vpop.eup %7679  ;;  %v4742_v9 = vmul.f32 1.442695, %v4696_v49  ;;  %v6894_v19 = vpop.f32.mrb[138].mxu0  ;;  %v4695_v20 = vsub.f32 %v9847_v25, %v4645_v8 }
 0xc3d   :  { %v4558_v37 = vpop.f32.mrb[139].mxu0  ;;  %4788 = vadd.xlane.f32.xlu1 %v9874_v54  ;;  %4786 = vadd.xlane.f32.xlu0 %v9876_v36  ;;  %v4643_v55 = vpop.xlane.xlu0 %4642  ;;  %v9905_v16 = vadd.f32 %v6894_v19, %v10491_v59  ;;  %v9919_v59 = vadd.f32 %v6893_v43, %v10488_v0 }
 0xc3e   :  { %7689 = vpow2.f32 %v4742_v9  ;;  %v4694_v60 = vsub.f32 %v9851_v44, %v4643_v55  ;;  %v9882_v63 = vpop.eup %7681  ;;  %v4740_v44 = vmul.f32 1.442695, %v4695_v20  ;;  %v9912_v14 = vadd.f32 %v4558_v37, %v10489_v40 }
 0xc3f   :  { %7691 = vpow2.f32 %v4732_v34  ;;  %v9927_v40 = vadd.f32 %v4555_v11, %v10490_v10 }
 0xc40   :  { %v4738_v21 = vmul.f32 1.442695, %v4694_v60  ;;  %v9886_v57 = vpop.eup %7683 }
 0xc41   :  { %4792 = vadd.xlane.f32.xlu0 %v9882_v63 }
 0xc42   :  { %7693 = vpow2.f32 %v4738_v21  ;;  %v6897_v6 = vpop.f32.mrb[140].mxu0 }
 0xc43   :  { %v4571_v18 = vpop.f32.mrb[141].mxu0  ;;  %7695 = vpow2.f32 %v4744_v24  ;;  %v9935_v0 = vadd.f32 %v6897_v6, %v10493_v39 }
 0xc44   :  { %v9888_v62 = vpop.eup %7685  ;;  %v6898_v31 = vpop.f32.mrb[142].mxu0  ;;  %7697 = vpow2.f32 %v4740_v44  ;;  %v9943_v10 = vadd.f32 %v4571_v18, %v10495_v53 }
 0xc45   :  { %v4574_v45 = vpop.f32.mrb[143].mxu0  ;;  %4798 = vadd.xlane.f32.xlu0 %v9886_v57  ;;  %4794 = vadd.xlane.f32.xlu1 %v9888_v62  ;;  %v9892_v2 = vpop.eup %7687  ;;  %v9922_v48 = vadd.f32 %v6898_v31, %v10492_v22 }
 0xc46   :  { %v9930_v49 = vadd.f32 %v4574_v45, %v10494_v7 }
 0xc48   :  { %v9894_v29 = vpop.eup %7689 }
 0xc49   :  { %4800 = vadd.xlane.f32.xlu0 %v9892_v2  ;;  %4806 = vadd.xlane.f32.xlu1 %v9894_v29  ;;  %v9898_v12 = vpop.eup %7691 }
 0xc4a   :  { %v6901_v25 = vpop.f32.mrb[144].mxu0 }
 0xc4b   :  { %v4587_v4 = vpop.f32.mrb[145].mxu0  ;;  %v9951_v39 = vadd.f32 %v6901_v25, %v10497_v52 }
 0xc4c   :  { %v9900_v38 = vpop.eup %7693  ;;  %v6902_v35 = vpop.f32.mrb[146].mxu0  ;;  %v9959_v53 = vadd.f32 %v4587_v4, %v10499_v46  ;;  %v10504_v46 = vld [vmem:[#allocation48_spill] sm:$0xff] }
 0xc4d   :  { %v4590_v13 = vpop.f32.mrb[147].mxu0  ;;  %4796 = vadd.xlane.f32.xlu0 %v9898_v12  ;;  %4802 = vadd.xlane.f32.xlu1 %v9900_v38  ;;  %v9907_v56 = vpop.eup %7695  ;;  %v9938_v22 = vadd.f32 %v6902_v35, %v10496_v26 }
 0xc4e   :  { %v9914_v30 = vpop.eup %7697  ;;  %v9946_v7 = vadd.f32 %v4590_v13, %v10498_v28 }
 0xc51   :  { %4808 = vadd.xlane.f32.xlu0 %v9907_v56  ;;  %4656 = vmax.xlane.f32.xlu1 %v9905_v16 }
 0xc52   :  { %v6905_v42 = vpop.f32.mrb[148].mxu0 }
 0xc53   :  { %v4603_v5 = vpop.f32.mrb[149].mxu0  ;;  %v9967_v52 = vadd.f32 %v6905_v42, %v10501_v23 }
 0xc54   :  { %v6906_v1 = vpop.f32.mrb[150].mxu0 }
 0xc55   :  { %v4606_v33 = vpop.f32.mrb[151].mxu0  ;;  %4804 = vadd.xlane.f32.xlu0 %v9914_v30  ;;  %4652 = vmax.xlane.f32.xlu1 %v9912_v14  ;;  %v9954_v26 = vadd.f32 %v6906_v1, %v10500_v51  ;;  %v9971_v51 = vadd.f32 %v4603_v5, %v10503_v17 }
 0xc56   :  { %v9962_v28 = vadd.f32 %v4606_v33, %v10502_v47  ;;  %v10505_v47 = vld [vmem:[#allocation49_spill] sm:$0xff] }
 0xc59   :  { %4654 = vmax.xlane.f32.xlu0 %v9919_v59  ;;  %4664 = vmax.xlane.f32.xlu1 %v9922_v48 }
 0xc5d   :  { %4650 = vmax.xlane.f32.xlu0 %v9927_v40  ;;  %4660 = vmax.xlane.f32.xlu1 %v9930_v49 }
 0xc61   :  { %4662 = vmax.xlane.f32.xlu0 %v9935_v0  ;;  %4672 = vmax.xlane.f32.xlu1 %v9938_v22 }
 0xc65   :  { %4658 = vmax.xlane.f32.xlu0 %v9943_v10  ;;  %4668 = vmax.xlane.f32.xlu1 %v9946_v7 }
 0xc69   :  { %4670 = vmax.xlane.f32.xlu0 %v9951_v39  ;;  %4680 = vmax.xlane.f32.xlu1 %v9954_v26 }
 0xc6d   :  { %4666 = vmax.xlane.f32.xlu0 %v9959_v53  ;;  %4676 = vmax.xlane.f32.xlu1 %v9962_v28 }
 0xc71   :  { %4678 = vmax.xlane.f32.xlu0 %v9967_v52 }
 0xc75   :  { %4674 = vmax.xlane.f32.xlu0 %v9971_v51 }
 0xc7e   :  { %5053 = vrot.lane.b32.xlu1 %v10504_v46, %s7899_s27 }
 0xc8b   :  { %5051 = vrot.lane.b32.xlu0 %v10505_v47, %s7899_s27 }
 0xcba   :  { %v4783_v43 = vpop.xlane.xlu1 %4782 }
 0xcbe   :  { %v4779_v11 = vpop.xlane.xlu1 %4778 }
 0xcc2   :  { %v4785_v9 = vpop.xlane.xlu1 %4784 }
 0xcc3   :  { %7699 = vrcp.f32 %v4785_v9 }
 0xcc4   :  { %7701 = vrcp.f32 %v4779_v11 }
 0xcc5   :  { %7703 = vrcp.f32 %v4783_v43 }
 0xcc6   :  { %v4781_v23 = vpop.xlane.xlu1 %4780  ;;  %v4791_v19 = vpop.xlane.xlu0 %4790 }
 0xcc7   :  { %7705 = vrcp.f32 %v4781_v23 }
 0xcca   :  { %v4789_v34 = vpop.xlane.xlu1 %4788  ;;  %v4787_v17 = vpop.xlane.xlu0 %4786 }
 0xccb   :  { %7707 = vrcp.f32 %v4789_v34 }
 0xccc   :  { %7709 = vrcp.f32 %v4787_v17 }
 0xccd   :  { %7711 = vrcp.f32 %v4791_v19  ;;  %v7700_v37 = vpop.eup %7699 }
 0xcce   :  { %v4793_v55 = vpop.xlane.xlu0 %4792  ;;  %v7702_v15 = vpop.eup %7701  ;;  %v4877_v21 = vmul.f32 %v7700_v37, %v9862_v3 }
 0xccf   :  { %7713 = vrcp.f32 %v4793_v55  ;;  %v7704_v60 = vpop.eup %7703  ;;  %v4874_v6 = vmul.f32 %v7702_v15, %v9859_v58 }
 0xcd0   :  { %v4876_v31 = vmul.f32 %v7704_v60, %v9855_v61 }
 0xcd1   :  { %v7706_v8 = vpop.eup %7705 }
 0xcd2   :  { %v4795_v24 = vpop.xlane.xlu1 %4794  ;;  %v4799_v20 = vpop.xlane.xlu0 %4798  ;;  %v4875_v18 = vmul.f32 %v7706_v8, %v9866_v32  ;;  %v4907_v25 = vpack.c.bf16 %v4877_v21, %v4876_v31 }
 0xcd3   :  { %7715 = vrcp.f32 %v4795_v24 }
 0xcd4   :  { %v4906_v45 = vpack.c.bf16 %v4875_v18, %v4874_v6 }
 0xcd5   :  { %v7708_v44 = vpop.eup %7707 }
 0xcd6   :  { %v7710_v4 = vpop.eup %7709  ;;  %6923 = vmatprep.mubr.bf16.mxu1 %v4906_v45  ;;  %v4807_v35 = vpop.xlane.xlu1 %4806  ;;  %v4879_v42 = vmul.f32 %v7708_v44, %v9874_v54 }
 0xcd7   :  { %v4801_v13 = vpop.xlane.xlu0 %4800  ;;  %v7712_v5 = vpop.eup %7711  ;;  %6924 = vmatmul.mubr.bf16.vlgmr.msra.gmra.mrb[200].mxu1 %v4907_v25  ;;  %v4878_v3 = vmul.f32 %v7710_v4, %v9876_v36 }
 0xcd8   :  { %7717 = vrcp.f32 %v4801_v13  ;;  %v4880_v61 = vmul.f32 %v7712_v5, %v9868_v50 }
 0xcd9   :  { %v7714_v1 = vpop.eup %7713  ;;  %v4908_v58 = vpack.c.bf16 %v4879_v42, %v4878_v3  ;;  %7719 = vrcp.f32 %v4799_v20 }
 0xcda   :  { %v4803_v32 = vpop.xlane.xlu1 %4802  ;;  %v4881_v46 = vmul.f32 %v7714_v1, %v9882_v63 }
 0xcdb   :  { %v4797_v33 = vpop.xlane.xlu0 %4796  ;;  %6927 = vmatprep.mubr.bf16.mxu1 %v4908_v58 }
 0xcdc   :  { %7721 = vrcp.f32 %v4797_v33  ;;  %v4909_v47 = vpack.c.bf16 %v4881_v46, %v4880_v61 }
 0xcdd   :  { %7723 = vrcp.f32 %v4803_v32  ;;  %v7716_v9 = vpop.eup %7715 }
 0xcde   :  { %v4657_v43 = vpop.xlane.xlu1 %4656 }
 0xcdf   :  { %v4809_v54 = vpop.xlane.xlu0 %4808  ;;  %v4701_v11 = vsub.f32 %v9905_v16, %v4657_v43  ;;  %6928 = vmatmul.mubr.bf16.gmra.mrb[204].mxu1 %v4909_v47  ;;  %v4882_v16 = vmul.f32 %v7716_v9, %v9888_v62 }
 0xce0   :  { %7725 = vrcp.f32 %v4809_v54 }
 0xce1   :  { %v4752_v36 = vmul.f32 1.442695, %v4701_v11  ;;  %7727 = vrcp.f32 %v4807_v35 }
 0xce2   :  { %v4653_v23 = vpop.xlane.xlu1 %4652  ;;  %v7718_v34 = vpop.eup %7717 }
 0xce3   :  { %v4805_v19 = vpop.xlane.xlu0 %4804  ;;  %7729 = vpow2.f32 %v4752_v36  ;;  %v4699_v50 = vsub.f32 %v9912_v14, %v4653_v23  ;;  %v7720_v63 = vpop.eup %7719  ;;  %v4885_v60 = vmul.f32 %v7718_v34, %v9892_v2 }
 0xce4   :  { %7731 = vrcp.f32 %v4805_v19  ;;  %v4884_v20 = vmul.f32 %v7720_v63, %v9886_v57 }
 0xce5   :  { %v4748_v17 = vmul.f32 1.442695, %v4699_v50 }
 0xce6   :  { %v7722_v37 = vpop.eup %7721  ;;  %v4665_v55 = vpop.xlane.xlu1 %4664  ;;  %v4911_v25 = vpack.c.bf16 %v4885_v60, %v4884_v20 }
 0xce7   :  { %v4655_v15 = vpop.xlane.xlu0 %4654  ;;  %7733 = vpow2.f32 %v4748_v17  ;;  %v4705_v8 = vsub.f32 %v9922_v48, %v4665_v55  ;;  %v4883_v24 = vmul.f32 %v7722_v37, %v9898_v12  ;;  %v7724_v31 = vpop.eup %7723 }
 0xce8   :  { %v4700_v21 = vsub.f32 %v9919_v59, %v4655_v15  ;;  %v4886_v5 = vmul.f32 %v7724_v31, %v9900_v38 }
 0xce9   :  { %v4760_v14 = vmul.f32 1.442695, %v4705_v8  ;;  %v4910_v18 = vpack.c.bf16 %v4883_v24, %v4882_v16 }
 0xcea   :  { %v4750_v6 = vmul.f32 1.442695, %v4700_v21  ;;  %v4661_v45 = vpop.xlane.xlu1 %4660  ;;  %v7726_v4 = vpop.eup %7725 }
 0xceb   :  { %v4651_v44 = vpop.xlane.xlu0 %4650  ;;  %7735 = vpow2.f32 %v4760_v14  ;;  %v4703_v62 = vsub.f32 %v9930_v49, %v4661_v45  ;;  %6931 = vmatprep.mubr.bf16.mxu1 %v4910_v18  ;;  %v7728_v48 = vpop.eup %7727  ;;  %v4889_v3 = vmul.f32 %v7726_v4, %v9907_v56 }
 0xcec   :  { %v4698_v2 = vsub.f32 %v9927_v40, %v4651_v44  ;;  %7737 = vpow2.f32 %v4750_v6  ;;  %6932 = vmatmul.mubr.bf16.gmra.mrb[208].mxu1 %v4911_v25  ;;  %v4888_v58 = vmul.f32 %v7728_v48, %v9894_v29 }
 0xced   :  { %v9996_v12 = vpop.eup %7729  ;;  %v4756_v57 = vmul.f32 1.442695, %v4703_v62 }
 0xcee   :  { %v4746_v59 = vmul.f32 1.442695, %v4698_v2  ;;  %v7732_v35 = vpop.eup %7731  ;;  %4816 = vadd.xlane.f32.xlu0 %v9996_v12  ;;  %v4673_v13 = vpop.xlane.xlu1 %4672  ;;  %v4913_v56 = vpack.c.bf16 %v4889_v3, %v4888_v58 }
 0xcef   :  { %v4663_v42 = vpop.xlane.xlu0 %4662  ;;  %7739 = vpow2.f32 %v4756_v57  ;;  %v4709_v49 = vsub.f32 %v9938_v22, %v4673_v13  ;;  %v4887_v1 = vmul.f32 %v7732_v35, %v9914_v30 }
 0xcf0   :  { %v4704_v40 = vsub.f32 %v9935_v0, %v4663_v42  ;;  %7741 = vpow2.f32 %v4746_v59 }
 0xcf1   :  { %v10005_v32 = vpop.eup %7733  ;;  %v4768_v33 = vmul.f32 1.442695, %v4709_v49  ;;  %v4912_v46 = vpack.c.bf16 %v4887_v1, %v4886_v5 }
 0xcf2   :  { %v4758_v61 = vmul.f32 1.442695, %v4704_v40  ;;  %4812 = vadd.xlane.f32.xlu0 %v10005_v32  ;;  %v4669_v38 = vpop.xlane.xlu1 %4668 }
 0xcf3   :  { %v4659_v47 = vpop.xlane.xlu0 %4658  ;;  %7743 = vpow2.f32 %v4768_v33  ;;  %v4707_v22 = vsub.f32 %v9946_v7, %v4669_v38  ;;  %6935 = vmatprep.mubr.bf16.mxu1 %v4912_v46 }
 0xcf4   :  { %v4702_v0 = vsub.f32 %v9943_v10, %v4659_v47  ;;  %7745 = vpow2.f32 %v4758_v61  ;;  %6936 = vmatmul.mubr.bf16.gmra.mrb[212].mxu1 %v4913_v56 }
 0xcf5   :  { %v10010_v30 = vpop.eup %7735  ;;  %v4764_v29 = vmul.f32 1.442695, %v4707_v22  ;;  %v7281_v22 = vld [vmem:[#allocation7 + $0x30] sm:$0xff]  }
 0xcf6   :  { %v4754_v43 = vmul.f32 1.442695, %v4702_v0  ;;  %v10012_v54 = vpop.eup %7737  ;;  %4824 = vadd.xlane.f32.xlu0 %v10010_v30  ;;  %v4681_v34 = vpop.xlane.xlu1 %4680 }
 0xcf7   :  { %v4671_v11 = vpop.xlane.xlu0 %4670  ;;  %7747 = vpow2.f32 %v4764_v29  ;;  %4814 = vadd.xlane.f32.xlu1 %v10012_v54  ;;  %v4713_v31 = vsub.f32 %v9954_v26, %v4681_v34 }
 0xcf8   :  { %v4708_v36 = vsub.f32 %v9951_v39, %v4671_v11  ;;  %7749 = vpow2.f32 %v4754_v43 }
 0xcf9   :  { %v10017_v7 = vpop.eup %7739  ;;  %v4776_v44 = vmul.f32 1.442695, %v4713_v31 }
 0xcfa   :  { %v4766_v10 = vmul.f32 1.442695, %v4708_v36  ;;  %v10019_v9 = vpop.eup %7741  ;;  %4820 = vadd.xlane.f32.xlu0 %v10017_v7 }
 0xcfb   :  { %v4667_v23 = vpop.xlane.xlu0 %4666  ;;  %4810 = vadd.xlane.f32.xlu1 %v10019_v9 }
 0xcfc   :  { %v4706_v19 = vsub.f32 %v9959_v53, %v4667_v23  ;;  %7751 = vpow2.f32 %v4766_v10  ;;  %v4677_v53 = vpop.xlane.xlu1 %4676  ;;  %v7282_v10 = vld [vmem:[#allocation7 + $0x38] sm:$0xff]  }
 0xcfd   :  { %v10024_v50 = vpop.eup %7743  ;;  %v4711_v18 = vsub.f32 %v9962_v28, %v4677_v53 }
 0xcfe   :  { %v4762_v63 = vmul.f32 1.442695, %v4706_v19  ;;  %v10026_v17 = vpop.eup %7745  ;;  %4832 = vadd.xlane.f32.xlu0 %v10024_v50 }
 0xcff   :  { %v4679_v39 = vpop.xlane.xlu0 %4678  ;;  %4822 = vadd.xlane.f32.xlu1 %v10026_v17  ;;  %v4772_v45 = vmul.f32 1.442695, %v4711_v18 }
 0xd00   :  { %v4712_v37 = vsub.f32 %v9967_v52, %v4679_v39  ;;  %7753 = vpow2.f32 %v4762_v63  ;;  %v5054_v52 = vpop.permute.xlu1 %5053 }
 0xd01   :  { %v10031_v55 = vpop.eup %7747 }
 0xd02   :  { %v4774_v15 = vmul.f32 1.442695, %v4712_v37  ;;  %v10033_v16 = vpop.eup %7749  ;;  %4828 = vadd.xlane.f32.xlu0 %v10031_v55 }
 0xd03   :  { %v4675_v60 = vpop.xlane.xlu0 %4674  ;;  %4818 = vadd.xlane.f32.xlu1 %v10033_v16 }
 0xd04   :  { %7755 = vpow2.f32 %v4774_v15  ;;  %v4710_v8 = vsub.f32 %v9971_v51, %v4675_v60 }
 0xd06   :  { %v4770_v21 = vmul.f32 1.442695, %v4710_v8  ;;  %v10038_v24 = vpop.eup %7751 }
 0xd07   :  { %v5052_v20 = vpop.permute.xlu0 %5051  ;;  %4830 = vadd.xlane.f32.xlu1 %v10038_v24 }
 0xd08   :  { %7757 = vpow2.f32 %v4770_v21  ;;  %6947 = vmatprep.subr.bf16.mxu0 %v5052_v20 }
 0xd09   :  { %6948 = vmatpush3.bf16.msra.mxu0 %v5052_v20  ;;  %7759 = vpow2.f32 %v4772_v45 }
 0xd0a   :  { %6949 = vmatprep.subr.bf16.mxu0 %v5054_v52  ;;  %v10041_v14 = vpop.eup %7753  ;;  %7761 = vpow2.f32 %v4776_v44 }
 0xd0b   :  { %4826 = vadd.xlane.f32.xlu1 %v10041_v14 }
 0xd0d   :  { %6950 = vmatpush3.bf16.msra.mxu0 %v5054_v52 }
 0xd0e   :  { %v10044_v6 = vpop.eup %7755 }
 0xd0f   :  { %4838 = vadd.xlane.f32.xlu1 %v10044_v6 }
 0xd12   :  { %v10047_v51 = vpop.eup %7757 }
 0xd13   :  { %4834 = vadd.xlane.f32.xlu1 %v10047_v51  ;;  %v10056_v25 = vpop.eup %7759 }
 0xd14   :  { %v10059_v4 = vpop.eup %7761 }
 0xd18   :  { %5055 = vrot.lane.b32.xlu0 %v10377_v27, %s7899_s27 }
 0xd24   :  { %5057 = vrot.lane.b32.xlu1 %v10379_v41, %s7899_s27 }
 0xd37   :  { %4836 = vadd.xlane.f32.xlu0 %v10056_v25 }
 0xd3b   :  { %4840 = vadd.xlane.f32.xlu0 %v10059_v4 }
 0xd7b   :  { %v4817_v27 = vpop.xlane.xlu0 %4816 }
 0xd7f   :  { %v4813_v62 = vpop.xlane.xlu0 %4812 }
 0xd80   :  { %7763 = vrcp.f32 %v4813_v62 }
 0xd83   :  { %v4825_v28 = vpop.xlane.xlu0 %4824 }
 0xd84   :  { %v4815_v2 = vpop.xlane.xlu1 %4814 }
 0xd87   :  { %v4821_v41 = vpop.xlane.xlu0 %4820 }
 0xd88   :  { %v4811_v48 = vpop.xlane.xlu1 %4810 }
 0xd89   :  { %7765 = vrcp.f32 %v4811_v48 }
 0xd8a   :  { %v7764_v13 = vpop.eup %7763  ;;  %7767 = vrcp.f32 %v4815_v2 }
 0xd8b   :  { %v4833_v26 = vpop.xlane.xlu0 %4832  ;;  %v4891_v40 = vmul.f32 %v7764_v13, %v10005_v32 }
 0xd8c   :  { %v4823_v57 = vpop.xlane.xlu1 %4822 }
 0xd8f   :  { %v4829_v59 = vpop.xlane.xlu0 %4828 }
 0xd90   :  { %v4819_v35 = vpop.xlane.xlu1 %4818 }
 0xd91   :  { %7769 = vrcp.f32 %v4819_v35 }
 0xd92   :  { %7771 = vrcp.f32 %v4817_v27 }
 0xd93   :  { %v7766_v42 = vpop.eup %7765  ;;  %v5056_v5 = vpop.permute.xlu0 %5055  ;;  %7773 = vrcp.f32 %v4821_v41 }
 0xd94   :  { %v4831_v3 = vpop.xlane.xlu1 %4830  ;;  %6951 = vmatprep.subr.bf16.mxu0 %v5056_v5  ;;  %v4890_v49 = vmul.f32 %v7766_v42, %v10019_v9  ;;  %7775 = vrcp.f32 %v4823_v57  ;;  %v7768_v61 = vpop.eup %7767 }
 0xd95   :  { %6952 = vmatpush3.bf16.msra.mxu0 %v5056_v5  ;;  %v4892_v32 = vmul.f32 %v7768_v61, %v10012_v54 }
 0xd96   :  { %v4914_v1 = vpack.c.bf16 %v4891_v40, %v4890_v49 }
 0xd98   :  { %v4827_v58 = vpop.xlane.xlu1 %4826  ;;  %6955 = vmatprep.mubr.bf16.mxu0 %v4914_v1 }
 0xd99   :  { %7777 = vrcp.f32 %v4827_v58 }
 0xd9a   :  { %7779 = vrcp.f32 %v4825_v28 }
 0xd9b   :  { %v7770_v38 = vpop.eup %7769  ;;  %7781 = vrcp.f32 %v4829_v59 }
 0xd9c   :  { %v10064_v33 = vpop.xlane.xlu1 %4838  ;;  %v7772_v47 = vpop.eup %7771  ;;  %v4894_v29 = vmul.f32 %v7770_v38, %v10033_v16  ;;  %7783 = vrcp.f32 %v4831_v3 }
 0xd9d   :  { %v7774_v56 = vpop.eup %7773  ;;  %v4893_v43 = vmul.f32 %v7772_v47, %v9996_v12  ;;  %7785 = vrcp.f32 %v4833_v26 }
 0xd9e   :  { %v4895_v11 = vmul.f32 %v7774_v56, %v10017_v7  ;;  %v7776_v9 = vpop.eup %7775 }
 0xd9f   :  { %v4915_v36 = vpack.c.bf16 %v4893_v43, %v4892_v32  ;;  %v4896_v12 = vmul.f32 %v7776_v9, %v10026_v17 }
 0xda0   :  { %v4835_v46 = vpop.xlane.xlu1 %4834  ;;  %v4916_v23 = vpack.c.bf16 %v4895_v11, %v4894_v29 }
 0xda1   :  { %7787 = vrcp.f32 %v4835_v46 }
 0xda3   :  { %v7778_v19 = vpop.eup %7777 }
 0xda4   :  { %v5058_v0 = vpop.permute.xlu1 %5057  ;;  %v7780_v54 = vpop.eup %7779  ;;  %v4898_v7 = vmul.f32 %v7778_v19, %v10041_v14 }
 0xda5   :  { %6953 = vmatprep.subr.bf16.mxu0 %v5058_v0  ;;  %v7782_v63 = vpop.eup %7781  ;;  %v4897_v53 = vmul.f32 %v7780_v54, %v10010_v30 }
 0xda6   :  { %6954 = vmatpush3.bf16.msra.mxu0 %v5058_v0  ;;  %v4899_v8 = vmul.f32 %v7782_v63, %v10031_v55  ;;  %v7784_v20 = vpop.eup %7783 }
 0xda7   :  { %6971 = vmatprep.subr.bf16.mxu0 %v7281_v22  ;;  %v4917_v21 = vpack.c.bf16 %v4897_v53, %v4896_v12  ;;  %v7786_v18 = vpop.eup %7785  ;;  %v4900_v45 = vmul.f32 %v7784_v20, %v10038_v24  ;;  %v10100_v53 = vld [vmem:[%s10152_s3] ss:$0 sm:$0xff]  ;;  %s7900_s3 = smov [#allocation8]  }
 0xda8   :  { %v4918_v52 = vpack.c.bf16 %v4899_v8, %v4898_v7  ;;  %v4901_v62 = vmul.f32 %v7786_v18, %v10024_v50  ;;  %s5602_s30 = sshll.u32 %s7900_s3, 4  ;;  %s5603_s30 = int_to_ptr.vmem [resolvable:$true] %s5602_s30 }
 0xda9   :  { %6956 = vmatmul.mubr.bf16.vlgmr.msra.gmra.mrb[152].mxu0 %v4915_v36  ;;  %s7861_s5 = scalar_lea.vmem %s5603_s30, 2048  ;;  %p7866_p11 = scmp.lt.s32.totalorder %s5603_s30, %s5603_s30 }
 0xdaa   :  { %6959 = vmatprep.mubr.bf16.mxu0 %v4916_v23  ;;  %v6925_v34 = vpop.f32.mrb[200].mxu1  ;;  %6972 = vmatpush3.bf16.msra.mxu0 %v7281_v22  ;;  %v4919_v28 = vpack.c.bf16 %v4901_v62, %v4900_v45  ;;  %p7862_p10 = scmp.ne.s32.totalorder %s5603_s30, %s7861_s5  ;;  %p7867_p12 = scmp.lt.s32.totalorder %s7861_s5, %s7861_s5 }
 0xdab   :  { %v4980_v39 = vpop.f32.mrb[201].mxu1  ;;  %6973 = vmatprep.subr.bf16.mxu0 %v7282_v10  ;;  %v7788_v49 = vpop.eup %7787 }
 0xdac   :  { %v6926_v37 = vpop.f32.mrb[202].mxu1  ;;  %v4902_v1 = vmul.f32 %v7788_v49, %v10047_v51  ;;  %p7868_p13 = por %p7867_p12, %p7866_p11 }
 0xdad   :  { %v5165_v15 = vpack.c.bf16 %v6926_v37, %v6925_v34  ;;  %v4983_v16 = vpop.f32.mrb[203].mxu1 }
 0xdae   :  { %v5164_v60 = vpack.c.bf16 %v4983_v16, %v4980_v39  ;;  %6974 = vmatpush3.bf16.msra.mxu0 %v7282_v10  ;;  %p7869_p0 = pnand %p7868_p13, %p7862_p10 }
 0xdb1   :  { %6960 = vmatmul.mubr.bf16.gmra.mrb[156].mxu0 %v4917_v21 }
 0xdb2   :  { %6963 = vmatprep.mubr.bf16.mxu0 %v4918_v52  ;;  %v6929_v31 = vpop.f32.mrb[204].mxu1 }
 0xdb3   :  { %v4996_v17 = vpop.f32.mrb[205].mxu1 }
 0xdb4   :  { %v6930_v44 = vpop.f32.mrb[206].mxu1 }
 0xdb5   :  { %v5167_v14 = vpack.c.bf16 %v6930_v44, %v6929_v31  ;;  %v4999_v27 = vpop.f32.mrb[207].mxu1 }
 0xdb6   :  { %v5166_v30 = vpack.c.bf16 %v4999_v27, %v4996_v17 }
 0xdb9   :  { %6964 = vmatmul.mubr.bf16.gmra.mrb[160].mxu0 %v4919_v28 }
 0xdbf   :  { %v6933_v55 = vpop.f32.mrb[208].mxu1 }
 0xdc0   :  { %v5012_v2 = vpop.f32.mrb[209].mxu1 }
 0xdc1   :  { %v6934_v41 = vpop.f32.mrb[210].mxu1 }
 0xdc2   :  { %v5169_v48 = vpack.c.bf16 %v6934_v41, %v6933_v55  ;;  %v5015_v26 = vpop.f32.mrb[211].mxu1 }
 0xdc3   :  { %v5168_v57 = vpack.c.bf16 %v5015_v26, %v5012_v2 }
 0xdc4   :  { %v4837_v59 = vpop.xlane.xlu0 %4836 }
 0xdc5   :  { %7789 = vrcp.f32 %v4837_v59 }
 0xdc6   :  { %7791 = vrcp.f32 %v10064_v33 }
 0xdc7   :  { %v6937_v24 = vpop.f32.mrb[212].mxu1 }
 0xdc8   :  { %v5028_v35 = vpop.f32.mrb[213].mxu1  ;;  %v4841_v13 = vpop.xlane.xlu0 %4840 }
 0xdc9   :  { %v6938_v42 = vpop.f32.mrb[214].mxu1  ;;  %7793 = vrcp.f32 %v4841_v13 }
 0xdca   :  { %v5171_v50 = vpack.c.bf16 %v6938_v42, %v6937_v24  ;;  %v5031_v5 = vpop.f32.mrb[215].mxu1 }
 0xdcb   :  { %v5170_v3 = vpack.c.bf16 %v5031_v5, %v5028_v35 }
 0xdcf   :  { %v7790_v40 = vpop.eup %7789 }
 0xdd0   :  { %v4903_v58 = vmul.f32 %v7790_v40, %v10056_v25  ;;  %v7792_v61 = vpop.eup %7791 }
 0xdd1   :  { %v4904_v33 = vmul.f32 %v7792_v61, %v10044_v6 }
 0xdd2   :  { %v4920_v46 = vpack.c.bf16 %v4903_v58, %v4902_v1 }
 0xdd3   :  { %v7794_v38 = vpop.eup %7793 }
 0xdd4   :  { %6967 = vmatprep.mubr.bf16.mxu0 %v4920_v46  ;;  %v4905_v47 = vmul.f32 %v7794_v38, %v10059_v4 }
 0xdd6   :  { %v4921_v56 = vpack.c.bf16 %v4905_v47, %v4904_v33 }
 0xdd8   :  { %6968 = vmatmul.mubr.bf16.gmra.mrb[164].mxu0 %v4921_v56 }
 0xdd9   :  { %6975 = vmatprep.mubr.msk.bf16.mxu0 %vm808_vm0, %v5164_v60 }
 0xde0   :  { %6976 = vmatmul.mubr.msk.bf16.vlgmr.msra.gmra.mrb[56].mxu0 %vm808_vm0, %v5165_v15 }
 0xde1   :  { %6979 = vmatprep.mubr.msk.bf16.mxu0 %vm808_vm0, %v5166_v30 }
 0xde8   :  { %6980 = vmatmul.mubr.msk.bf16.gmra.mrb[60].mxu0 %vm808_vm0, %v5167_v14 }
 0xde9   :  { %6983 = vmatprep.mubr.msk.bf16.mxu0 %vm808_vm0, %v5168_v57 }
 0xdf0   :  { %6984 = vmatmul.mubr.msk.bf16.gmra.mrb[64].mxu0 %vm808_vm0, %v5169_v48 }
 0xdf1   :  { %6987 = vmatprep.mubr.msk.bf16.mxu0 %vm808_vm0, %v5170_v3 }
 0xdf8   :  { %6988 = vmatmul.mubr.msk.bf16.gmra.mrb[68].mxu0 %vm808_vm0, %v5171_v50 }
 0xe7c   :  { %v6957_v6 = vpop.f32.mrb[152].mxu0 }
 0xe7d   :  { %v5101_v51 = vpop.f32.mrb[153].mxu0 }
 0xe7e   :  { %v6958_v25 = vpop.f32.mrb[154].mxu0 }
 0xe7f   :  { %v5173_v4 = vpack.c.bf16 %v6958_v25, %v6957_v6  ;;  %v5104_v32 = vpop.f32.mrb[155].mxu0 }
 0xe80   :  { %v5172_v22 = vpack.c.bf16 %v5104_v32, %v5101_v51 }
 0xe82   :  { %6991 = vmatprep.mubr.msk.bf16.mxu0 %vm808_vm0, %v5172_v22 }
 0xe83   :  { %6992 = vmatmul.mubr.msk.bf16.gmra.mrb[72].mxu0 %vm808_vm0, %v5173_v4 }
 0xe84   :  { %v6961_v0 = vpop.f32.mrb[156].mxu0 }
 0xe85   :  { %v5117_v29 = vpop.f32.mrb[157].mxu0 }
 0xe86   :  { %v6962_v43 = vpop.f32.mrb[158].mxu0 }
 0xe87   :  { %v5175_v11 = vpack.c.bf16 %v6962_v43, %v6961_v0  ;;  %v5120_v36 = vpop.f32.mrb[159].mxu0 }
 0xe88   :  { %v5174_v10 = vpack.c.bf16 %v5120_v36, %v5117_v29 }
 0xe8a   :  { %6995 = vmatprep.mubr.msk.bf16.mxu0 %vm808_vm0, %v5174_v10 }
 0xe8b   :  { %6996 = vmatmul.mubr.msk.bf16.gmra.mrb[76].mxu0 %vm808_vm0, %v5175_v11 }
 0xe8c   :  { %v6965_v9 = vpop.f32.mrb[160].mxu0 }
 0xe8d   :  { %v5133_v23 = vpop.f32.mrb[161].mxu0 }
 0xe8e   :  { %v6966_v19 = vpop.f32.mrb[162].mxu0 }
 0xe8f   :  { %v5177_v54 = vpack.c.bf16 %v6966_v19, %v6965_v9  ;;  %v5136_v34 = vpop.f32.mrb[163].mxu0 }
 0xe90   :  { %v5176_v63 = vpack.c.bf16 %v5136_v34, %v5133_v23 }
 0xe92   :  { %6999 = vmatprep.mubr.msk.bf16.mxu0 %vm808_vm0, %v5176_v63 }
 0xe93   :  { %7000 = vmatmul.mubr.msk.bf16.gmra.mrb[80].mxu0 %vm808_vm0, %v5177_v54 }
 0xeab   :  { %v6969_v39 = vpop.f32.mrb[164].mxu0 }
 0xeac   :  { %v5149_v12 = vpop.f32.mrb[165].mxu0 }
 0xead   :  { %v6970_v37 = vpop.f32.mrb[166].mxu0 }
 0xeae   :  { %v5179_v7 = vpack.c.bf16 %v6970_v37, %v6969_v39  ;;  %v5152_v15 = vpop.f32.mrb[167].mxu0 }
 0xeaf   :  { %v5178_v16 = vpack.c.bf16 %v5152_v15, %v5149_v12 }
 0xeb1   :  { %7003 = vmatprep.mubr.msk.bf16.mxu0 %vm808_vm0, %v5178_v16 }
 0xeb2   :  { %7004 = vmatmul.mubr.msk.bf16.gmra.mrb[84].mxu0 %vm808_vm0, %v5179_v7 }
 0xeb3   :  { %v6977_v60 = vpop.f32.mrb[56].mxu0 }
 0xeb4   :  { %v5278_v8 = vpop.f32.mrb[57].mxu0  ;;  %v7023_v20 = vadd.f32 %v6977_v60, %v10100_v53 }
 0xeb5   :  { %v6978_v21 = vpop.f32.mrb[58].mxu0  ;;  %v7024_v31 = vadd.f32 %v10100_v53, %v5278_v8 }
 0xeb6   :  { %v7025_v52 = vadd.f32 %v6978_v21, %v10100_v53  ;;  %v5281_v18 = vpop.f32.mrb[59].mxu0 }
 0xeb7   :  { %v7026_v17 = vadd.f32 %v10100_v53, %v5281_v18 }
 0xeb8   :  { %v5864_v45 = vpack.c.bf16 %v7025_v52, %v7023_v20 }
 0xeb9   :  { %v5859_v44 = vpack.c.bf16 %v7026_v17, %v7024_v31 }
 0xeba   :  { %5936 = vst [vmem:[#allocation8 + $0x8] sm:$0xff] %v5864_v45  }
 0xebb   :  { %5860 = vst [vmem:[#allocation8] sm:$0xff] %v5859_v44   ;;  %v6981_v14 = vpop.f32.mrb[60].mxu0 }
 0xebc   :  { %v5294_v27 = vpop.f32.mrb[61].mxu0  ;;  %v7027_v30 = vadd.f32 %v6981_v14, %v10100_v53 }
 0xebd   :  { %v6982_v62 = vpop.f32.mrb[62].mxu0  ;;  %v7028_v2 = vadd.f32 %v10100_v53, %v5294_v27 }
 0xebe   :  { %v7029_v28 = vadd.f32 %v6982_v62, %v10100_v53  ;;  %v5297_v55 = vpop.f32.mrb[63].mxu0 }
 0xebf   :  { %v7030_v41 = vadd.f32 %v10100_v53, %v5297_v55 }
 0xec0   :  { %v5874_v48 = vpack.c.bf16 %v7029_v28, %v7027_v30 }
 0xec1   :  { %v5869_v26 = vpack.c.bf16 %v7030_v41, %v7028_v2 }
 0xec2   :  { %5938 = vst [vmem:[#allocation8 + $0x18] sm:$0xff] %v5874_v48  }
 0xec3   :  { %5937 = vst [vmem:[#allocation8 + $0x10] sm:$0xff] %v5869_v26   ;;  %v6985_v57 = vpop.f32.mrb[64].mxu0 }
 0xec4   :  { %v5310_v59 = vpop.f32.mrb[65].mxu0  ;;  %v7031_v35 = vadd.f32 %v6985_v57, %v10100_v53 }
 0xec5   :  { %v6986_v24 = vpop.f32.mrb[66].mxu0  ;;  %v7032_v50 = vadd.f32 %v10100_v53, %v5310_v59 }
 0xec6   :  { %v7033_v13 = vadd.f32 %v6986_v24, %v10100_v53  ;;  %v5313_v42 = vpop.f32.mrb[67].mxu0 }
 0xec7   :  { %v7034_v5 = vadd.f32 %v10100_v53, %v5313_v42 }
 0xec8   :  { %v5884_v3 = vpack.c.bf16 %v7033_v13, %v7031_v35 }
 0xec9   :  { %v5879_v49 = vpack.c.bf16 %v7034_v5, %v7032_v50 }
 0xeca   :  { %5940 = vst [vmem:[#allocation8 + $0x28] sm:$0xff] %v5884_v3  }
 0xecb   :  { %5939 = vst [vmem:[#allocation8 + $0x20] sm:$0xff] %v5879_v49   ;;  %v6989_v40 = vpop.f32.mrb[68].mxu0 }
 0xecc   :  { %v5326_v1 = vpop.f32.mrb[69].mxu0  ;;  %v7035_v61 = vadd.f32 %v6989_v40, %v10100_v53 }
 0xecd   :  { %v6990_v58 = vpop.f32.mrb[70].mxu0  ;;  %v7036_v33 = vadd.f32 %v10100_v53, %v5326_v1 }
 0xece   :  { %v7037_v46 = vadd.f32 %v6990_v58, %v10100_v53  ;;  %v5329_v38 = vpop.f32.mrb[71].mxu0 }
 0xecf   :  { %v7038_v47 = vadd.f32 %v10100_v53, %v5329_v38 }
 0xed0   :  { %v5894_v56 = vpack.c.bf16 %v7037_v46, %v7035_v61 }
 0xed1   :  { %v5889_v6 = vpack.c.bf16 %v7038_v47, %v7036_v33 }
 0xed2   :  { %5942 = vst [vmem:[#allocation8 + $0x38] sm:$0xff] %v5894_v56  }
 0xed3   :  { %5941 = vst [vmem:[#allocation8 + $0x30] sm:$0xff] %v5889_v6  }
 0xf56   :  { %v6993_v51 = vpop.f32.mrb[72].mxu0 }
 0xf57   :  { %v5342_v25 = vpop.f32.mrb[73].mxu0  ;;  %v7039_v32 = vadd.f32 %v6993_v51, %v10100_v53 }
 0xf58   :  { %v6994_v4 = vpop.f32.mrb[74].mxu0  ;;  %v7040_v29 = vadd.f32 %v10100_v53, %v5342_v25 }
 0xf59   :  { %v7041_v22 = vadd.f32 %v6994_v4, %v10100_v53  ;;  %v5345_v0 = vpop.f32.mrb[75].mxu0 }
 0xf5a   :  { %v7042_v43 = vadd.f32 %v10100_v53, %v5345_v0 }
 0xf5b   :  { %v5904_v11 = vpack.c.bf16 %v7041_v22, %v7039_v32 }
 0xf5c   :  { %v5899_v36 = vpack.c.bf16 %v7042_v43, %v7040_v29 }
 0xf5d   :  { %5944 = vst [vmem:[#allocation8 + $0x48] sm:$0xff] %v5904_v11  }
 0xf5e   :  { %5943 = vst [vmem:[#allocation8 + $0x40] sm:$0xff] %v5899_v36   ;;  %v6997_v10 = vpop.f32.mrb[76].mxu0 }
 0xf5f   :  { %v5358_v9 = vpop.f32.mrb[77].mxu0  ;;  %v7043_v19 = vadd.f32 %v6997_v10, %v10100_v53 }
 0xf60   :  { %v6998_v23 = vpop.f32.mrb[78].mxu0  ;;  %v7044_v63 = vadd.f32 %v10100_v53, %v5358_v9 }
 0xf61   :  { %v7045_v54 = vadd.f32 %v6998_v23, %v10100_v53  ;;  %v5361_v34 = vpop.f32.mrb[79].mxu0 }
 0xf62   :  { %v7046_v39 = vadd.f32 %v10100_v53, %v5361_v34 }
 0xf63   :  { %v5914_v12 = vpack.c.bf16 %v7045_v54, %v7043_v19 }
 0xf64   :  { %v5909_v37 = vpack.c.bf16 %v7046_v39, %v7044_v63 }
 0xf65   :  { %5946 = vst [vmem:[#allocation8 + $0x58] sm:$0xff] %v5914_v12  }
 0xf66   :  { %5945 = vst [vmem:[#allocation8 + $0x50] sm:$0xff] %v5909_v37   ;;  %v7001_v7 = vpop.f32.mrb[80].mxu0 }
 0xf67   :  { %v5374_v15 = vpop.f32.mrb[81].mxu0  ;;  %v7047_v60 = vadd.f32 %v7001_v7, %v10100_v53 }
 0xf68   :  { %v7002_v16 = vpop.f32.mrb[82].mxu0  ;;  %v7048_v20 = vadd.f32 %v10100_v53, %v5374_v15 }
 0xf69   :  { %v7049_v8 = vadd.f32 %v7002_v16, %v10100_v53  ;;  %v5377_v21 = vpop.f32.mrb[83].mxu0 }
 0xf6a   :  { %v7050_v52 = vadd.f32 %v10100_v53, %v5377_v21 }
 0xf6b   :  { %v5924_v18 = vpack.c.bf16 %v7049_v8, %v7047_v60 }
 0xf6c   :  { %v5919_v31 = vpack.c.bf16 %v7050_v52, %v7048_v20 }
 0xf6d   :  { %5948 = vst [vmem:[#allocation8 + $0x68] sm:$0xff] %v5924_v18  }
 0xf6e   :  { %5947 = vst [vmem:[#allocation8 + $0x60] sm:$0xff] %v5919_v31  }
 0xf85   :  { %v7005_v17 = vpop.f32.mrb[84].mxu0 }
 0xf86   :  { %v5390_v45 = vpop.f32.mrb[85].mxu0  ;;  %v7051_v14 = vadd.f32 %v7005_v17, %v10100_v53 }
 0xf87   :  { %v7006_v44 = vpop.f32.mrb[86].mxu0  ;;  %v7052_v30 = vadd.f32 %v10100_v53, %v5390_v45 }
 0xf88   :  { %v7053_v27 = vadd.f32 %v7006_v44, %v10100_v53  ;;  %v5393_v62 = vpop.f32.mrb[87].mxu0 }
 0xf89   :  { %v7054_v28 = vadd.f32 %v10100_v53, %v5393_v62 }
 0xf8a   :  { %v5934_v55 = vpack.c.bf16 %v7053_v27, %v7051_v14 }
 0xf8b   :  { %v5929_v2 = vpack.c.bf16 %v7054_v28, %v7052_v30 }
 0xf8c   :  { %5950 = vst [vmem:[#allocation8 + $0x78] sm:$0xff] %v5934_v55  }
 0xf8d   :  { %5949 = vst [vmem:[#allocation8 + $0x70] sm:$0xff] %v5929_v2  }
 0xf8e   :  { %7872 = shalt.err (!%p7869_p0)
}
 0xf8f   :  { %s7873_s8 = scalar_lea.hbm %s10153_s4, 2048 }
 0xf90   :  { %p7874_p1 = scmp.ne.s32.totalorder %s10153_s4, %s7873_s8  ;;  %p7877_p2 = scmp.lt.u32.totalorder %s7873_s8, %s10153_s4 }
 0xf92   :  { %p7879_p3 = pnand %p7877_p2, %p7874_p1 }
 0xf94   :  { %7882 = shalt.err (!%p7879_p3)
}
 0xf95   :  { %5608 = dma.vmem_to_hbm [thread:$0]  %s5603_s30, 2048, %s10153_s4, [#allocation4], %s7893_s1, %s7893_s1, %s7894_s13  }
 0xf96   :  { %7887 = dma.done.wait [#allocation4], 2048  }
 0xf97   :  { %7888 = vsyncadd [#allocation4], 4294965248 }
 0xf98   :  { %5612 = vsyncpa [#allocation3], 1 }
 0xf99   :  { %5613 = vsyncpa [#allocation6], 1 }
 0xf9a   :  { %5614 = vsyncpa [#allocation4], 1 }

</bundles_post_ra>
